<compile_context>
chip_gen: v5e
topology: v5e:2x2
jax: 0.10.0
libtpu: 0.0.40
codegen_flags: <defaults>
</compile_context>

<pallas_src>
import math
import functools

import jax
import jax.numpy as jnp
from jax.experimental import pallas as pl
from jax.experimental.pallas import tpu as pltpu

NEG_SLOPE = 0.01  # F.leaky_relu_ default negative slope


def _leaky_relu(x):
    return jnp.where(x >= 0, x, NEG_SLOPE * x)


# --------------------------------------------------------------------------
# Conv2d(3x3, pad=1) expressed as a dense matrix acting on NCHW-flattened
# features:  flatten(conv(x)) == flatten(x) @ M,  M: (Cin*P*P, Cout*P*P).
# Built once at init (f32) and validated against a real conv in __main__.
# --------------------------------------------------------------------------
def _build_conv_matrix(w_taps, P):
    # w_taps: (Cout, Cin, 3, 3)  (PyTorch OIHW layout)
    Cout, Cin, _, _ = w_taps.shape
    idx = jnp.arange(P)
    d = idx[:, None] - idx[None, :] + 1          # (P_in, P_out) kernel index
    valid = (d >= 0) & (d <= 2)
    dc = jnp.clip(d, 0, 2)
    g = w_taps[:, :, dc, :]                      # (Cout, Cin, Piy, Poy, 3)
    g = g[:, :, :, :, dc]                        # (Cout, Cin, Piy, Poy, Pix, Pox)
    mask = valid[None, None, :, :, None, None] & valid[None, None, None, None, :, :]
    g = jnp.where(mask, g, 0.0)
    # row index = ci*P*P + iy*P + ix ; col index = co*P*P + oy*P + ox
    m = jnp.transpose(g, (1, 2, 4, 0, 3, 5)).reshape(Cin * P * P, Cout * P * P)
    return m


def _spatial_conv3x3(x_nchw, w_oihw):
    return jax.lax.conv_general_dilated(
        x_nchw, w_oihw, window_strides=(1, 1), padding=((1, 1), (1, 1)),
        dimension_numbers=("NCHW", "OIHW", "NCHW"),
        precision=jax.lax.Precision.HIGHEST)


# --------------------------------------------------------------------------
# Single fused kernel: 2 self-attn + 2 cross-attn + conv-as-matmul(+BN+lrelu)
# + num_fc (Linear + lrelu).  All matmuls: bf16 inputs, f32 accumulation.
# --------------------------------------------------------------------------
def _fused_kernel(num_fc, D, *refs):
    (radar_ref, lidar_ref,
     w_rs_ref, b_rs_ref, w_ls_ref, b_ls_ref,
     wq_rc_ref, bq_rc_ref, wkv_rc_ref, bkv_rc_ref,
     wq_lc_ref, bq_lc_ref, wkv_lc_ref, bkv_lc_ref,
     wconv_r_ref, wconv_l_ref, bconv_ref) = refs[:17]
    fc_refs = refs[17:17 + 2 * num_fc]
    out_ref = refs[17 + 2 * num_fc]

    inv_sqrt_d = 1.0 / math.sqrt(D)

    def mm(x_f32, w_ref):
        # bf16 operands, f32 accumulation on the MXU.
        return jnp.dot(x_f32.astype(jnp.bfloat16), w_ref[...],
                       preferred_element_type=jnp.float32)

    def softmax_attend(q, k, v, x1):
        s = q * k * inv_sqrt_d
        s = s - jnp.max(s, axis=1, keepdims=True)
        e = jnp.exp(s)
        inv_denom = pl.reciprocal(jnp.sum(e, axis=1, keepdims=True), approx=True)
        return (e * inv_denom) * v + x1

    def self_attn(x, w_ref, b_ref):
        qkv = mm(x, w_ref) + b_ref[...]          # one (N, 3D) matmul
        return softmax_attend(qkv[:, :D], qkv[:, D:2 * D], qkv[:, 2 * D:], x)

    def cross_attn(x1, x2, wq_ref, bq_ref, wkv_ref, bkv_ref):
        q = mm(x1, wq_ref) + bq_ref[...]         # (N, D)
        kv = mm(x2, wkv_ref) + bkv_ref[...]      # (N, 2D)
        return softmax_attend(q, kv[:, :D], kv[:, D:], x1)

    radar_x = self_attn(radar_ref[...], w_rs_ref, b_rs_ref)
    lidar_x = self_attn(lidar_ref[...], w_ls_ref, b_ls_ref)
    radar_y = cross_attn(radar_x, lidar_x, wq_rc_ref, bq_rc_ref, wkv_rc_ref, bkv_rc_ref)
    lidar_y = cross_attn(lidar_x, radar_x, wq_lc_ref, bq_lc_ref, wkv_lc_ref, bkv_lc_ref)

    # concat([radar_y, lidar_y], channel) @ W_conv  ==  two half-K matmuls.
    # BN scale is folded into the weights, BN shift is the bias; output is
    # already the lane-dense (N, C*P*P) NCHW-flattened fusion feature.
    fusion = mm(radar_y, wconv_r_ref) + mm(lidar_y, wconv_l_ref) + bconv_ref[...]
    fusion = _leaky_relu(fusion)

    for i in range(num_fc):
        fusion = _leaky_relu(mm(fusion, fc_refs[2 * i]) + fc_refs[2 * i + 1][...])

    out_ref[...] = fusion


def mvdnet_box_head_forward(params, radar_features, lidar_features, C, P):
    N = radar_features.shape[0]
    D = C * P * P
    radar_x = radar_features.reshape(N, D)   # torch.flatten(NCHW, start_dim=1)
    lidar_x = lidar_features.reshape(N, D)
    num_fc = len(params["fcs"])
    fc_dim = params["fcs"][-1][0].shape[1]

    args = [radar_x, lidar_x,
            params["w_rs"], params["b_rs"], params["w_ls"], params["b_ls"],
            params["wq_rc"], params["bq_rc"], params["wkv_rc"], params["bkv_rc"],
            params["wq_lc"], params["bq_lc"], params["wkv_lc"], params["bkv_lc"],
            params["wconv_r"], params["wconv_l"], params["bconv"]]
    for w, b in params["fcs"]:
        args += [w, b]

    kern = functools.partial(_fused_kernel, num_fc, D)
    # Single invocation (no grid): every operand is a whole-array VMEM block;
    # no per-layer launches, no intermediate HBM traffic.
    return pl.pallas_call(
        kern,
        out_shape=jax.ShapeDtypeStruct((N, fc_dim), jnp.float32),
    )(*args)


# --------------------------------------------------------------------------
# Parameter initialization (deterministic, synthetic) + kernel-side packing.
# --------------------------------------------------------------------------
def init_params(key, C, P, fc_dim, num_fc):
    D = C * P * P
    keys = iter(jax.random.split(key, 64))

    def lin(din, dout):
        limit = math.sqrt(1.0 / din)
        w = jax.random.uniform(next(keys), (din, dout), jnp.float32, -limit, limit)
        b = jax.random.uniform(next(keys), (1, dout), jnp.float32, -limit, limit)
        return w, b

    def attn_raw():
        wq, bq = lin(D, D)
        wk, bk = lin(D, D)
        wv, bv = lin(D, D)
        return (wq, bq, wk, bk, wv, bv)

    raw = {
        "radar_self": attn_raw(),
        "lidar_self": attn_raw(),
        "radar_cross": attn_raw(),
        "lidar_cross": attn_raw(),
    }

    # tnn: Conv2d(2C -> C, 3x3, bias=False), msra-style init (OIHW)
    std = math.sqrt(2.0 / (2 * C * 9))
    conv_w = std * jax.random.normal(next(keys), (C, 2 * C, 3, 3), jnp.float32)

    # BatchNorm2d(C), eval mode -> per-channel affine
    gamma = 1.0 + 0.1 * jax.random.normal(next(keys), (C,), jnp.float32)
    beta = 0.1 * jax.random.normal(next(keys), (C,), jnp.float32)
    rmean = 0.1 * jax.random.normal(next(keys), (C,), jnp.float32)
    rvar = jnp.abs(1.0 + 0.1 * jax.random.normal(next(keys), (C,), jnp.float32))
    eps = 1e-5
    bn_scale = gamma / jnp.sqrt(rvar + eps)
    bn_shift = beta - rmean * bn_scale
    raw["conv_w"] = conv_w
    raw["bn_scale"] = bn_scale
    raw["bn_shift"] = bn_shift

    fcs_raw = []
    din = D
    for _ in range(num_fc):
        fcs_raw.append(lin(din, fc_dim))
        din = fc_dim
    raw["fcs"] = fcs_raw

    # Conv -> dense-matrix form (f32; validated in __main__)
    conv_matrix = _build_conv_matrix(conv_w, P)          # (2D, D)
    raw["conv_matrix"] = conv_matrix

    # ---- kernel-side packed params (bf16 matmul weights, f32 bias/affine) ----
    def pack_self(p):
        wq, bq, wk, bk, wv, bv = p
        return (jnp.concatenate([wq, wk, wv], axis=1).astype(jnp.bfloat16),
                jnp.concatenate([bq, bk, bv], axis=1))

    def pack_cross(p):
        wq, bq, wk, bk, wv, bv = p
        return (wq.astype(jnp.bfloat16), bq,
                jnp.concatenate([wk, wv], axis=1).astype(jnp.bfloat16),
                jnp.concatenate([bk, bv], axis=1))

    params = {}
    params["w_rs"], params["b_rs"] = pack_self(raw["radar_self"])
    params["w_ls"], params["b_ls"] = pack_self(raw["lidar_self"])
    (params["wq_rc"], params["bq_rc"],
     params["wkv_rc"], params["bkv_rc"]) = pack_cross(raw["radar_cross"])
    (params["wq_lc"], params["bq_lc"],
     params["wkv_lc"], params["bkv_lc"]) = pack_cross(raw["lidar_cross"])

    scale_rep = jnp.repeat(bn_scale, P * P)              # (D,) BN scale folded in
    w_big = (conv_matrix * scale_rep[None, :]).astype(jnp.bfloat16)   # (2D, D)
    params["wconv_r"] = w_big[:D]
    params["wconv_l"] = w_big[D:]
    params["bconv"] = jnp.repeat(bn_shift, P * P).reshape(1, D)

    params["fcs"] = [(w.astype(jnp.bfloat16), b) for w, b in fcs_raw]
    return params, raw


# --------------------------------------------------------------------------
# Reference 1: pure-JAX, same math and same bf16-input / f32-accumulate
# precision policy as the kernel (tight check of the Pallas kernel itself).
# --------------------------------------------------------------------------
def reference_forward_matched(params, radar_features, lidar_features, C, P):
    N = radar_features.shape[0]
    D = C * P * P
    inv_sqrt_d = 1.0 / math.sqrt(D)

    def mm(x, w_bf16):
        return jnp.dot(x.astype(jnp.bfloat16), w_bf16,
                       preferred_element_type=jnp.float32)

    def softmax_attend(q, k, v, x1):
        s = q * k * inv_sqrt_d
        s = s - jnp.max(s, axis=1, keepdims=True)
        e = jnp.exp(s)
        return (e / jnp.sum(e, axis=1, keepdims=True)) * v + x1

    def self_attn(x, w, b):
        qkv = mm(x, w) + b
        return softmax_attend(qkv[:, :D], qkv[:, D:2 * D], qkv[:, 2 * D:], x)

    def cross_attn(x1, x2, wq, bq, wkv, bkv):
        q = mm(x1, wq) + bq
        kv = mm(x2, wkv) + bkv
        return softmax_attend(q, kv[:, :D], kv[:, D:], x1)

    radar_x = radar_features.reshape(N, D)
    lidar_x = lidar_features.reshape(N, D)
    radar_x = self_attn(radar_x, params["w_rs"], params["b_rs"])
    lidar_x = self_attn(lidar_x, params["w_ls"], params["b_ls"])
    radar_y = cross_attn(radar_x, lidar_x, params["wq_rc"], params["bq_rc"],
                         params["wkv_rc"], params["bkv_rc"])
    lidar_y = cross_attn(lidar_x, radar_x, params["wq_lc"], params["bq_lc"],
                         params["wkv_lc"], params["bkv_lc"])
    fusion = _leaky_relu(mm(radar_y, params["wconv_r"]) +
                         mm(lidar_y, params["wconv_l"]) + params["bconv"])
    for w, b in params["fcs"]:
        fusion = _leaky_relu(mm(fusion, w) + b)
    return fusion


# --------------------------------------------------------------------------
# Reference 2: full-f32 (HIGHEST precision) faithful rendition of the PyTorch
# module (separate Q/K/V linears, real spatial 3x3 conv + BN affine).  Used to
# bound the drift introduced by the bf16 mixed-precision matmul policy.
# --------------------------------------------------------------------------
def reference_forward_f32(raw, radar_features, lidar_features, C, P):
    hp = jax.lax.Precision.HIGHEST
    N = radar_features.shape[0]
    D = C * P * P

    def attn(x1, x2, p):
        wq, bq, wk, bk, wv, bv = p
        q = jnp.dot(x1, wq, precision=hp) + bq
        k = jnp.dot(x2, wk, precision=hp) + bk
        v = jnp.dot(x2, wv, precision=hp) + bv
        s = q * k / math.sqrt(D)
        w = jax.nn.softmax(s, axis=1)
        return w * v + x1

    radar_x = radar_features.reshape(N, D)
    lidar_x = lidar_features.reshape(N, D)
    radar_x = attn(radar_x, radar_x, raw["radar_self"])
    lidar_x = attn(lidar_x, lidar_x, raw["lidar_self"])
    radar_y = attn(radar_x, lidar_x, raw["radar_cross"])
    lidar_y = attn(lidar_x, radar_x, raw["lidar_cross"])
    feat = jnp.concatenate([radar_y.reshape(N, C, P, P),
                            lidar_y.reshape(N, C, P, P)], axis=1)
    conv = _spatial_conv3x3(feat, raw["conv_w"])
    conv = conv * raw["bn_scale"].reshape(1, C, 1, 1) + raw["bn_shift"].reshape(1, C, 1, 1)
    fusion = _leaky_relu(conv).reshape(N, D)
    for w, b in raw["fcs"]:
        fusion = _leaky_relu(jnp.dot(fusion, w, precision=hp) + b)
    return fusion


if __name__ == "__main__":
    N, C, P = 8, 4, 8          # rois, radar_input_channels, pooler_size
    fc_dim, num_fc = 128, 2
    key = jax.random.PRNGKey(0)
    k_radar, k_lidar, k_params = jax.random.split(key, 3)
    radar = jax.random.normal(k_radar, (N, C, P, P), jnp.float32)
    lidar = jax.random.normal(k_lidar, (N, C, P, P), jnp.float32)
    params, raw = init_params(k_params, C, P, fc_dim, num_fc)

    # (a) validate the conv-as-matmul construction against a real 3x3 conv (f32)
    xt = jax.random.normal(jax.random.PRNGKey(1), (2, 2 * C, P, P), jnp.float32)
    y_conv = _spatial_conv3x3(xt, raw["conv_w"]).reshape(2, C * P * P)
    y_mat = jnp.dot(xt.reshape(2, 2 * C * P * P), raw["conv_matrix"],
                    precision=jax.lax.Precision.HIGHEST)
    err_conv = float(jnp.max(jnp.abs(y_conv - y_mat)))
    assert err_conv < 1e-4, f"conv-matrix construction error {err_conv}"

    # (b) run the fused Pallas kernel
    out = mvdnet_box_head_forward(params, radar, lidar, C, P)
    out = jax.block_until_ready(out)
    assert out.shape == (N, fc_dim), out.shape

    # (c) tight check vs the precision-matched reference
    #     (margin covers f32 accumulation order + EUP approximate reciprocal)
    ref = reference_forward_matched(params, radar, lidar, C, P)
    err = float(jnp.max(jnp.abs(out - ref)))
    assert err < 3e-3, f"kernel vs matched reference: max abs error {err}"

    # (d) semantic check vs the full-f32 PyTorch-equivalent reference
    #     (bound on bf16 mixed-precision drift)
    ref32 = reference_forward_f32(raw, radar, lidar, C, P)
    err32 = float(jnp.max(jnp.abs(out - ref32)))
    assert err32 < 2e-2, f"kernel vs f32 reference: max abs error {err32}"

    print("KERNEL_OK")
</pallas_src>

<mosaic_0001>
module attributes {stable_mosaic.version = 11 : i64} {
  func.func @_fused_kernel(%arg0: memref<8x256xf32, #tpu.memory_space<vmem>>, %arg1: memref<8x256xf32, #tpu.memory_space<vmem>>, %arg2: memref<256x768xbf16, #tpu.memory_space<vmem>>, %arg3: memref<1x768xf32, #tpu.memory_space<vmem>>, %arg4: memref<256x768xbf16, #tpu.memory_space<vmem>>, %arg5: memref<1x768xf32, #tpu.memory_space<vmem>>, %arg6: memref<256x256xbf16, #tpu.memory_space<vmem>>, %arg7: memref<1x256xf32, #tpu.memory_space<vmem>>, %arg8: memref<256x512xbf16, #tpu.memory_space<vmem>>, %arg9: memref<1x512xf32, #tpu.memory_space<vmem>>, %arg10: memref<256x256xbf16, #tpu.memory_space<vmem>>, %arg11: memref<1x256xf32, #tpu.memory_space<vmem>>, %arg12: memref<256x512xbf16, #tpu.memory_space<vmem>>, %arg13: memref<1x512xf32, #tpu.memory_space<vmem>>, %arg14: memref<256x256xbf16, #tpu.memory_space<vmem>>, %arg15: memref<256x256xbf16, #tpu.memory_space<vmem>>, %arg16: memref<1x256xf32, #tpu.memory_space<vmem>>, %arg17: memref<256x128xbf16, #tpu.memory_space<vmem>>, %arg18: memref<1x128xf32, #tpu.memory_space<vmem>>, %arg19: memref<128x128xbf16, #tpu.memory_space<vmem>>, %arg20: memref<1x128xf32, #tpu.memory_space<vmem>>, %arg21: memref<8x128xf32, #tpu.memory_space<vmem>>) attributes {dimension_semantics = [], scalar_prefetch = 0 : i64, scratch_operands = 0 : i64, tpu.core_type = #tpu.core_type<tc>} {
    %c0 = arith.constant 0 : index
    %c0_0 = arith.constant 0 : index
    %0 = vector.load %arg0[%c0, %c0_0] : memref<8x256xf32, #tpu.memory_space<vmem>>, vector<8x256xf32>
    %1 = arith.truncf %0 : vector<8x256xf32> to vector<8x256xbf16>
    %c0_1 = arith.constant 0 : index
    %c0_2 = arith.constant 0 : index
    %2 = vector.load %arg2[%c0_1, %c0_2] : memref<256x768xbf16, #tpu.memory_space<vmem>>, vector<256x768xbf16>
    %cst = arith.constant dense<0.000000e+00> : vector<8x768xf32>
    %3 = tpu.matmul %1, %2, %cst {dimension_numbers = #tpu.dot_dimension_numbers<[1], [0], [0], [1], [0, 0, 1, 1], [], []>} : vector<8x256xbf16>, vector<256x768xbf16>, vector<8x768xf32> -> vector<8x768xf32>
    %c0_3 = arith.constant 0 : index
    %c0_4 = arith.constant 0 : index
    %4 = vector.load %arg3[%c0_3, %c0_4] : memref<1x768xf32, #tpu.memory_space<vmem>>, vector<1x768xf32>
    %5 = vector.broadcast %4 : vector<1x768xf32> to vector<8x768xf32>
    %6 = arith.addf %3, %5 : vector<8x768xf32>
    %7 = vector.extract_strided_slice %6 {offsets = [0, 0], sizes = [8, 256], strides = [1, 1]} : vector<8x768xf32> to vector<8x256xf32>
    %8 = vector.extract_strided_slice %6 {offsets = [0, 256], sizes = [8, 256], strides = [1, 1]} : vector<8x768xf32> to vector<8x256xf32>
    %9 = vector.extract_strided_slice %6 {offsets = [0, 512], sizes = [8, 256], strides = [1, 1]} : vector<8x768xf32> to vector<8x256xf32>
    %10 = arith.mulf %7, %8 : vector<8x256xf32>
    %cst_5 = arith.constant 6.250000e-02 : f32
    %11 = vector.broadcast %cst_5 : f32 to vector<8x256xf32>
    %12 = arith.mulf %10, %11 : vector<8x256xf32>
    %cst_6 = arith.constant dense<0xFF800000> : vector<8xf32>
    %13 = vector.multi_reduction <maximumf>, %12, %cst_6 [1] : vector<8x256xf32> to vector<8xf32>
    %14 = vector.shape_cast %13 : vector<8xf32> to vector<8x1xf32>
    %15 = vector.broadcast %14 : vector<8x1xf32> to vector<8x256xf32>
    %16 = arith.subf %12, %15 : vector<8x256xf32>
    %17 = math.exp %16 : vector<8x256xf32>
    %cst_7 = arith.constant dense<0.000000e+00> : vector<8xf32>
    %18 = vector.multi_reduction <add>, %17, %cst_7 [1] : vector<8x256xf32> to vector<8xf32>
    %19 = vector.shape_cast %18 : vector<8xf32> to vector<8x1xf32>
    %20 = tpu.reciprocal %19 {approx = true} : vector<8x1xf32> -> vector<8x1xf32>
    %21 = vector.broadcast %20 : vector<8x1xf32> to vector<8x256xf32>
    %22 = arith.mulf %17, %21 : vector<8x256xf32>
    %23 = arith.mulf %22, %9 : vector<8x256xf32>
    %24 = arith.addf %23, %0 : vector<8x256xf32>
    %c0_8 = arith.constant 0 : index
    %c0_9 = arith.constant 0 : index
    %25 = vector.load %arg1[%c0_8, %c0_9] : memref<8x256xf32, #tpu.memory_space<vmem>>, vector<8x256xf32>
    %26 = arith.truncf %25 : vector<8x256xf32> to vector<8x256xbf16>
    %c0_10 = arith.constant 0 : index
    %c0_11 = arith.constant 0 : index
    %27 = vector.load %arg4[%c0_10, %c0_11] : memref<256x768xbf16, #tpu.memory_space<vmem>>, vector<256x768xbf16>
    %cst_12 = arith.constant dense<0.000000e+00> : vector<8x768xf32>
    %28 = tpu.matmul %26, %27, %cst_12 {dimension_numbers = #tpu.dot_dimension_numbers<[1], [0], [0], [1], [0, 0, 1, 1], [], []>} : vector<8x256xbf16>, vector<256x768xbf16>, vector<8x768xf32> -> vector<8x768xf32>
    %c0_13 = arith.constant 0 : index
    %c0_14 = arith.constant 0 : index
    %29 = vector.load %arg5[%c0_13, %c0_14] : memref<1x768xf32, #tpu.memory_space<vmem>>, vector<1x768xf32>
    %30 = vector.broadcast %29 : vector<1x768xf32> to vector<8x768xf32>
    %31 = arith.addf %28, %30 : vector<8x768xf32>
    %32 = vector.extract_strided_slice %31 {offsets = [0, 0], sizes = [8, 256], strides = [1, 1]} : vector<8x768xf32> to vector<8x256xf32>
    %33 = vector.extract_strided_slice %31 {offsets = [0, 256], sizes = [8, 256], strides = [1, 1]} : vector<8x768xf32> to vector<8x256xf32>
    %34 = vector.extract_strided_slice %31 {offsets = [0, 512], sizes = [8, 256], strides = [1, 1]} : vector<8x768xf32> to vector<8x256xf32>
    %35 = arith.mulf %32, %33 : vector<8x256xf32>
    %cst_15 = arith.constant 6.250000e-02 : f32
    %36 = vector.broadcast %cst_15 : f32 to vector<8x256xf32>
    %37 = arith.mulf %35, %36 : vector<8x256xf32>
    %cst_16 = arith.constant dense<0xFF800000> : vector<8xf32>
    %38 = vector.multi_reduction <maximumf>, %37, %cst_16 [1] : vector<8x256xf32> to vector<8xf32>
    %39 = vector.shape_cast %38 : vector<8xf32> to vector<8x1xf32>
    %40 = vector.broadcast %39 : vector<8x1xf32> to vector<8x256xf32>
    %41 = arith.subf %37, %40 : vector<8x256xf32>
    %42 = math.exp %41 : vector<8x256xf32>
    %cst_17 = arith.constant dense<0.000000e+00> : vector<8xf32>
    %43 = vector.multi_reduction <add>, %42, %cst_17 [1] : vector<8x256xf32> to vector<8xf32>
    %44 = vector.shape_cast %43 : vector<8xf32> to vector<8x1xf32>
    %45 = tpu.reciprocal %44 {approx = true} : vector<8x1xf32> -> vector<8x1xf32>
    %46 = vector.broadcast %45 : vector<8x1xf32> to vector<8x256xf32>
    %47 = arith.mulf %42, %46 : vector<8x256xf32>
    %48 = arith.mulf %47, %34 : vector<8x256xf32>
    %49 = arith.addf %48, %25 : vector<8x256xf32>
    %50 = arith.truncf %24 : vector<8x256xf32> to vector<8x256xbf16>
    %c0_18 = arith.constant 0 : index
    %c0_19 = arith.constant 0 : index
    %51 = vector.load %arg6[%c0_18, %c0_19] : memref<256x256xbf16, #tpu.memory_space<vmem>>, vector<256x256xbf16>
    %cst_20 = arith.constant dense<0.000000e+00> : vector<8x256xf32>
    %52 = tpu.matmul %50, %51, %cst_20 {dimension_numbers = #tpu.dot_dimension_numbers<[1], [0], [0], [1], [0, 0, 1, 1], [], []>} : vector<8x256xbf16>, vector<256x256xbf16>, vector<8x256xf32> -> vector<8x256xf32>
    %c0_21 = arith.constant 0 : index
    %c0_22 = arith.constant 0 : index
    %53 = vector.load %arg7[%c0_21, %c0_22] : memref<1x256xf32, #tpu.memory_space<vmem>>, vector<1x256xf32>
    %54 = vector.broadcast %53 : vector<1x256xf32> to vector<8x256xf32>
    %55 = arith.addf %52, %54 : vector<8x256xf32>
    %56 = arith.truncf %49 : vector<8x256xf32> to vector<8x256xbf16>
    %c0_23 = arith.constant 0 : index
    %c0_24 = arith.constant 0 : index
    %57 = vector.load %arg8[%c0_23, %c0_24] : memref<256x512xbf16, #tpu.memory_space<vmem>>, vector<256x512xbf16>
    %cst_25 = arith.constant dense<0.000000e+00> : vector<8x512xf32>
    %58 = tpu.matmul %56, %57, %cst_25 {dimension_numbers = #tpu.dot_dimension_numbers<[1], [0], [0], [1], [0, 0, 1, 1], [], []>} : vector<8x256xbf16>, vector<256x512xbf16>, vector<8x512xf32> -> vector<8x512xf32>
    %c0_26 = arith.constant 0 : index
    %c0_27 = arith.constant 0 : index
    %59 = vector.load %arg9[%c0_26, %c0_27] : memref<1x512xf32, #tpu.memory_space<vmem>>, vector<1x512xf32>
    %60 = vector.broadcast %59 : vector<1x512xf32> to vector<8x512xf32>
    %61 = arith.addf %58, %60 : vector<8x512xf32>
    %62 = vector.extract_strided_slice %61 {offsets = [0, 0], sizes = [8, 256], strides = [1, 1]} : vector<8x512xf32> to vector<8x256xf32>
    %63 = vector.extract_strided_slice %61 {offsets = [0, 256], sizes = [8, 256], strides = [1, 1]} : vector<8x512xf32> to vector<8x256xf32>
    %64 = arith.mulf %55, %62 : vector<8x256xf32>
    %cst_28 = arith.constant 6.250000e-02 : f32
    %65 = vector.broadcast %cst_28 : f32 to vector<8x256xf32>
    %66 = arith.mulf %64, %65 : vector<8x256xf32>
    %cst_29 = arith.constant dense<0xFF800000> : vector<8xf32>
    %67 = vector.multi_reduction <maximumf>, %66, %cst_29 [1] : vector<8x256xf32> to vector<8xf32>
    %68 = vector.shape_cast %67 : vector<8xf32> to vector<8x1xf32>
    %69 = vector.broadcast %68 : vector<8x1xf32> to vector<8x256xf32>
    %70 = arith.subf %66, %69 : vector<8x256xf32>
    %71 = math.exp %70 : vector<8x256xf32>
    %cst_30 = arith.constant dense<0.000000e+00> : vector<8xf32>
    %72 = vector.multi_reduction <add>, %71, %cst_30 [1] : vector<8x256xf32> to vector<8xf32>
    %73 = vector.shape_cast %72 : vector<8xf32> to vector<8x1xf32>
    %74 = tpu.reciprocal %73 {approx = true} : vector<8x1xf32> -> vector<8x1xf32>
    %75 = vector.broadcast %74 : vector<8x1xf32> to vector<8x256xf32>
    %76 = arith.mulf %71, %75 : vector<8x256xf32>
    %77 = arith.mulf %76, %63 : vector<8x256xf32>
    %78 = arith.addf %77, %24 : vector<8x256xf32>
    %79 = arith.truncf %49 : vector<8x256xf32> to vector<8x256xbf16>
    %c0_31 = arith.constant 0 : index
    %c0_32 = arith.constant 0 : index
    %80 = vector.load %arg10[%c0_31, %c0_32] : memref<256x256xbf16, #tpu.memory_space<vmem>>, vector<256x256xbf16>
    %cst_33 = arith.constant dense<0.000000e+00> : vector<8x256xf32>
    %81 = tpu.matmul %79, %80, %cst_33 {dimension_numbers = #tpu.dot_dimension_numbers<[1], [0], [0], [1], [0, 0, 1, 1], [], []>} : vector<8x256xbf16>, vector<256x256xbf16>, vector<8x256xf32> -> vector<8x256xf32>
    %c0_34 = arith.constant 0 : index
    %c0_35 = arith.constant 0 : index
    %82 = vector.load %arg11[%c0_34, %c0_35] : memref<1x256xf32, #tpu.memory_space<vmem>>, vector<1x256xf32>
    %83 = vector.broadcast %82 : vector<1x256xf32> to vector<8x256xf32>
    %84 = arith.addf %81, %83 : vector<8x256xf32>
    %85 = arith.truncf %24 : vector<8x256xf32> to vector<8x256xbf16>
    %c0_36 = arith.constant 0 : index
    %c0_37 = arith.constant 0 : index
    %86 = vector.load %arg12[%c0_36, %c0_37] : memref<256x512xbf16, #tpu.memory_space<vmem>>, vector<256x512xbf16>
    %cst_38 = arith.constant dense<0.000000e+00> : vector<8x512xf32>
    %87 = tpu.matmul %85, %86, %cst_38 {dimension_numbers = #tpu.dot_dimension_numbers<[1], [0], [0], [1], [0, 0, 1, 1], [], []>} : vector<8x256xbf16>, vector<256x512xbf16>, vector<8x512xf32> -> vector<8x512xf32>
    %c0_39 = arith.constant 0 : index
    %c0_40 = arith.constant 0 : index
    %88 = vector.load %arg13[%c0_39, %c0_40] : memref<1x512xf32, #tpu.memory_space<vmem>>, vector<1x512xf32>
    %89 = vector.broadcast %88 : vector<1x512xf32> to vector<8x512xf32>
    %90 = arith.addf %87, %89 : vector<8x512xf32>
    %91 = vector.extract_strided_slice %90 {offsets = [0, 0], sizes = [8, 256], strides = [1, 1]} : vector<8x512xf32> to vector<8x256xf32>
    %92 = vector.extract_strided_slice %90 {offsets = [0, 256], sizes = [8, 256], strides = [1, 1]} : vector<8x512xf32> to vector<8x256xf32>
    %93 = arith.mulf %84, %91 : vector<8x256xf32>
    %cst_41 = arith.constant 6.250000e-02 : f32
    %94 = vector.broadcast %cst_41 : f32 to vector<8x256xf32>
    %95 = arith.mulf %93, %94 : vector<8x256xf32>
    %cst_42 = arith.constant dense<0xFF800000> : vector<8xf32>
    %96 = vector.multi_reduction <maximumf>, %95, %cst_42 [1] : vector<8x256xf32> to vector<8xf32>
    %97 = vector.shape_cast %96 : vector<8xf32> to vector<8x1xf32>
    %98 = vector.broadcast %97 : vector<8x1xf32> to vector<8x256xf32>
    %99 = arith.subf %95, %98 : vector<8x256xf32>
    %100 = math.exp %99 : vector<8x256xf32>
    %cst_43 = arith.constant dense<0.000000e+00> : vector<8xf32>
    %101 = vector.multi_reduction <add>, %100, %cst_43 [1] : vector<8x256xf32> to vector<8xf32>
    %102 = vector.shape_cast %101 : vector<8xf32> to vector<8x1xf32>
    %103 = tpu.reciprocal %102 {approx = true} : vector<8x1xf32> -> vector<8x1xf32>
    %104 = vector.broadcast %103 : vector<8x1xf32> to vector<8x256xf32>
    %105 = arith.mulf %100, %104 : vector<8x256xf32>
    %106 = arith.mulf %105, %92 : vector<8x256xf32>
    %107 = arith.addf %106, %49 : vector<8x256xf32>
    %108 = arith.truncf %78 : vector<8x256xf32> to vector<8x256xbf16>
    %c0_44 = arith.constant 0 : index
    %c0_45 = arith.constant 0 : index
    %109 = vector.load %arg14[%c0_44, %c0_45] : memref<256x256xbf16, #tpu.memory_space<vmem>>, vector<256x256xbf16>
    %cst_46 = arith.constant dense<0.000000e+00> : vector<8x256xf32>
    %110 = tpu.matmul %108, %109, %cst_46 {dimension_numbers = #tpu.dot_dimension_numbers<[1], [0], [0], [1], [0, 0, 1, 1], [], []>} : vector<8x256xbf16>, vector<256x256xbf16>, vector<8x256xf32> -> vector<8x256xf32>
    %111 = arith.truncf %107 : vector<8x256xf32> to vector<8x256xbf16>
    %c0_47 = arith.constant 0 : index
    %c0_48 = arith.constant 0 : index
    %112 = vector.load %arg15[%c0_47, %c0_48] : memref<256x256xbf16, #tpu.memory_space<vmem>>, vector<256x256xbf16>
    %cst_49 = arith.constant dense<0.000000e+00> : vector<8x256xf32>
    %113 = tpu.matmul %111, %112, %cst_49 {dimension_numbers = #tpu.dot_dimension_numbers<[1], [0], [0], [1], [0, 0, 1, 1], [], []>} : vector<8x256xbf16>, vector<256x256xbf16>, vector<8x256xf32> -> vector<8x256xf32>
    %114 = arith.addf %110, %113 : vector<8x256xf32>
    %c0_50 = arith.constant 0 : index
    %c0_51 = arith.constant 0 : index
    %115 = vector.load %arg16[%c0_50, %c0_51] : memref<1x256xf32, #tpu.memory_space<vmem>>, vector<1x256xf32>
    %116 = vector.broadcast %115 : vector<1x256xf32> to vector<8x256xf32>
    %117 = arith.addf %114, %116 : vector<8x256xf32>
    %cst_52 = arith.constant 0.000000e+00 : f32
    %118 = vector.broadcast %cst_52 : f32 to vector<8x256xf32>
    %119 = arith.cmpf oge, %117, %118 : vector<8x256xf32>
    %cst_53 = arith.constant 0.00999999977 : f32
    %120 = vector.broadcast %cst_53 : f32 to vector<8x256xf32>
    %121 = arith.mulf %120, %117 : vector<8x256xf32>
    %122 = arith.select %119, %117, %121 : vector<8x256xi1>, vector<8x256xf32>
    %123 = arith.truncf %122 : vector<8x256xf32> to vector<8x256xbf16>
    %c0_54 = arith.constant 0 : index
    %c0_55 = arith.constant 0 : index
    %124 = vector.load %arg17[%c0_54, %c0_55] : memref<256x128xbf16, #tpu.memory_space<vmem>>, vector<256x128xbf16>
    %cst_56 = arith.constant dense<0.000000e+00> : vector<8x128xf32>
    %125 = tpu.matmul %123, %124, %cst_56 {dimension_numbers = #tpu.dot_dimension_numbers<[1], [0], [0], [1], [0, 0, 1, 1], [], []>} : vector<8x256xbf16>, vector<256x128xbf16>, vector<8x128xf32> -> vector<8x128xf32>
    %c0_57 = arith.constant 0 : index
    %c0_58 = arith.constant 0 : index
    %126 = vector.load %arg18[%c0_57, %c0_58] : memref<1x128xf32, #tpu.memory_space<vmem>>, vector<1x128xf32>
    %127 = vector.broadcast %126 : vector<1x128xf32> to vector<8x128xf32>
    %128 = arith.addf %125, %127 : vector<8x128xf32>
    %cst_59 = arith.constant 0.000000e+00 : f32
    %129 = vector.broadcast %cst_59 : f32 to vector<8x128xf32>
    %130 = arith.cmpf oge, %128, %129 : vector<8x128xf32>
    %cst_60 = arith.constant 0.00999999977 : f32
    %131 = vector.broadcast %cst_60 : f32 to vector<8x128xf32>
    %132 = arith.mulf %131, %128 : vector<8x128xf32>
    %133 = arith.select %130, %128, %132 : vector<8x128xi1>, vector<8x128xf32>
    %134 = arith.truncf %133 : vector<8x128xf32> to vector<8x128xbf16>
    %c0_61 = arith.constant 0 : index
    %c0_62 = arith.constant 0 : index
    %135 = vector.load %arg19[%c0_61, %c0_62] : memref<128x128xbf16, #tpu.memory_space<vmem>>, vector<128x128xbf16>
    %cst_63 = arith.constant dense<0.000000e+00> : vector<8x128xf32>
    %136 = tpu.matmul %134, %135, %cst_63 {dimension_numbers = #tpu.dot_dimension_numbers<[1], [0], [0], [1], [0, 0, 1, 1], [], []>} : vector<8x128xbf16>, vector<128x128xbf16>, vector<8x128xf32> -> vector<8x128xf32>
    %c0_64 = arith.constant 0 : index
    %c0_65 = arith.constant 0 : index
    %137 = vector.load %arg20[%c0_64, %c0_65] : memref<1x128xf32, #tpu.memory_space<vmem>>, vector<1x128xf32>
    %138 = vector.broadcast %137 : vector<1x128xf32> to vector<8x128xf32>
    %139 = arith.addf %136, %138 : vector<8x128xf32>
    %cst_66 = arith.constant 0.000000e+00 : f32
    %140 = vector.broadcast %cst_66 : f32 to vector<8x128xf32>
    %141 = arith.cmpf oge, %139, %140 : vector<8x128xf32>
    %cst_67 = arith.constant 0.00999999977 : f32
    %142 = vector.broadcast %cst_67 : f32 to vector<8x128xf32>
    %143 = arith.mulf %142, %139 : vector<8x128xf32>
    %144 = arith.select %141, %139, %143 : vector<8x128xi1>, vector<8x128xf32>
    %c0_68 = arith.constant 0 : index
    %c0_69 = arith.constant 0 : index
    %145 = vector.load %arg21[%c0_68, %c0_69] : memref<8x128xf32, #tpu.memory_space<vmem>>, vector<8x128xf32>
    tpu.vector_store %arg21[%c0_68, %c0_69], %144 {strides = array<i32>} : memref<8x128xf32, #tpu.memory_space<vmem>>, vector<8x128xf32>,
    return
  }
}

</mosaic_0001>

<bundles_post_ra>
// kernel: tpu_custom_call.1
= control target key start
LH: loop header
LB: loop body
LE: loop exit
PB: predicated region body
PF: predicated region fallthrough
CT: control target
= control target key end

     0   :  { %s7390_s0 = inlined_call_operand.hbm [shape: f32[8,256], index: 0, kind: input, shape index: {}]   ;;  %s7391_s1 = inlined_call_operand.hbm [shape: f32[8,256], index: 1, kind: input, shape index: {}]   ;;  %s7392_s2 = inlined_call_operand.hbm [shape: bf16[256,768], index: 2, kind: input, shape index: {}]   ;;  %s7393_s3 = inlined_call_operand.hbm [shape: f32[1,768], index: 3, kind: input, shape index: {}]   ;;  %s7394_s4 = inlined_call_operand.hbm [shape: bf16[256,768], index: 4, kind: input, shape index: {}]   ;;  %s7395_s5 = inlined_call_operand.hbm [shape: f32[1,768], index: 5, kind: input, shape index: {}]   ;;  %s7396_s6 = inlined_call_operand.hbm [shape: bf16[256,256], index: 6, kind: input, shape index: {}]   ;;  %s7397_s7 = inlined_call_operand.hbm [shape: f32[1,256], index: 7, kind: input, shape index: {}]   ;;  %s7398_s8 = inlined_call_operand.hbm [shape: bf16[256,512], index: 8, kind: input, shape index: {}]   ;;  %s7399_s9 = inlined_call_operand.vmem [shape: f32[1,512], index: 9, kind: input, shape index: {}]   ;;  %s7400_s10 = inlined_call_operand.hbm [shape: bf16[256,256], index: 10, kind: input, shape index: {}]   ;;  %s7401_s11 = inlined_call_operand.vmem [shape: f32[1,256], index: 11, kind: input, shape index: {}]   ;;  %s7402_s12 = inlined_call_operand.hbm [shape: bf16[256,512], index: 12, kind: input, shape index: {}]   ;;  %s7403_s13 = inlined_call_operand.vmem [shape: f32[1,512], index: 13, kind: input, shape index: {}]   ;;  %s7404_s14 = inlined_call_operand.hbm [shape: bf16[256,256], index: 14, kind: input, shape index: {}]   ;;  %s7405_s15 = inlined_call_operand.hbm [shape: bf16[256,256], index: 15, kind: input, shape index: {}]   ;;  %s7406_s16 = inlined_call_operand.vmem [shape: f32[1,256], index: 16, kind: input, shape index: {}]   ;;  %s7407_s17 = inlined_call_operand.hbm [shape: bf16[256,128], index: 17, kind: input, shape index: {}]   ;;  %s7408_s18 = inlined_call_operand.vmem [shape: f32[1,128], index: 18, kind: input, shape index: {}]   ;;  %s7409_s19 = inlined_call_operand.hbm [shape: bf16[128,128], index: 19, kind: input, shape index: {}]   ;;  %s7410_s20 = inlined_call_operand.vmem [shape: f32[1,128], index: 20, kind: input, shape index: {}]   ;;  %s7411_s21 = inlined_call_operand.hbm [shape: f32[8,128], index: 21, kind: output, shape index: {}]  }
   0x1   :  { %7413 = sst [smem:[#allocation36_spill]] %s7390_s0 }
   0x2   :  { %7414 = sst [smem:[#allocation37_spill]] %s7391_s1 }
   0x3   :  { %7415 = sst [smem:[#allocation38_spill]] %s7392_s2 }
   0x4   :  { %7416 = sst [smem:[#allocation39_spill]] %s7393_s3 }
   0x5   :  { %7417 = sst [smem:[#allocation40_spill]] %s7394_s4 }
   0x6   :  { %7418 = sst [smem:[#allocation41_spill]] %s7395_s5 }
   0x7   :  { %7419 = sst [smem:[#allocation42_spill]] %s7410_s20 }
   0x8   :  { %7420 = sst [smem:[#allocation43_spill]] %s7411_s21 }
   0x9   :  { %26 = vsyncpa [#allocation3], 0 }
   0xa   :  { %27 = vsyncpa [#allocation6], 0 }
   0xb   :  { %28 = vsyncpa [#allocation9], 0 }
   0xc   :  { %29 = vsyncpa [#allocation12], 0 }
   0xd   :  { %30 = vsyncpa [#allocation15], 0 }
   0xe   :  { %31 = vsyncpa [#allocation18], 0 }
   0xf   :  { %32 = vsyncpa [#allocation21], 0 }
  0x10   :  { %33 = vsyncpa [#allocation24], 0  ;;  %s7421_s26 = sld [smem:[#allocation37_spill]] }
  0x16   :  { %s51_s27 = sshll.u32 %s7421_s26, 4  ;;  %s52_s27 = int_to_ptr.hbm [resolvable:$true] %s51_s27 }
  0x17   :  { %34 = vsyncpa [#allocation4], 0  ;;  %s6980_s3 = smov [#allocation5]   ;;  %s7422_s4 = sld [smem:[#allocation39_spill]] }
  0x18   :  { %s53_s28 = sshll.u32 %s6980_s3, 4  ;;  %s6981_s5 = smov [#allocation8]   ;;  %s54_s28 = int_to_ptr.vmem [resolvable:$true] %s53_s28 }
  0x19   :  { %56 = dma.hbm_to_vmem [thread:$0]  %s52_s27, 256, %s54_s28, [#allocation6]  }
  0x1a   :  { %s77_s22 = sshll.u32 %s6981_s5, 4  ;;  %s7423_s24 = sld [smem:[#allocation41_spill]]  ;;  %s78_s22 = int_to_ptr.vmem [resolvable:$true] %s77_s22 }
  0x1b   :  { %s123_s26 = sshll.u32 %s7397_s7, 4  ;;  %s6982_s3 = smov [#allocation11]   ;;  %s124_s26 = int_to_ptr.hbm [resolvable:$true] %s123_s26 }
  0x1c   :  { %s101_s20 = sshll.u32 %s6982_s3, 4  ;;  %s6983_s27 = smov [#allocation14]   ;;  %s102_s20 = int_to_ptr.vmem [resolvable:$true] %s101_s20 }
  0x1d   :  { %s75_s30 = sshll.u32 %s7422_s4, 4  ;;  %s125_s28 = sshll.u32 %s6983_s27, 4  ;;  %s76_s30 = int_to_ptr.hbm [resolvable:$true] %s75_s30  ;;  %s126_s28 = int_to_ptr.vmem [resolvable:$true] %s125_s28 }
  0x1e   :  { %80 = dma.hbm_to_vmem [thread:$0]  %s76_s30, 96, %s78_s22, [#allocation9]  }
  0x1f   :  { %128 = dma.hbm_to_vmem [thread:$0]  %s124_s26, 32, %s126_s28, [#allocation15]  }
  0x20   :  { %s99_s21 = sshll.u32 %s7423_s24, 4  ;;  %s148_s4 = sshll.u32 %s7400_s10, 4  ;;  %s100_s21 = int_to_ptr.hbm [resolvable:$true] %s99_s21  ;;  %s149_s4 = int_to_ptr.hbm [resolvable:$true] %s148_s4 }
  0x21   :  { %104 = dma.hbm_to_vmem [thread:$0]  %s100_s21, 96, %s102_s20, [#allocation12]  }
  0x22   :  { %s6984_s5 = smov [#allocation17]   ;;  %s178_s7 = sshll.u32 %s7404_s14, 4  ;;  %s179_s7 = int_to_ptr.hbm [resolvable:$true] %s178_s7 }
  0x23   :  { %s150_s30 = sshll.u32 %s6984_s5, 4  ;;  %s6985_s1 = smov 128   ;;  %s151_s30 = int_to_ptr.vmem [resolvable:$true] %s150_s30 }
  0x24   :  { %s6986_s24 = smov 8   ;;  %s6987_s20 = smov [#allocation20]  }
  0x25   :  { %156 = dma.hbm_to_vmem [thread:$0]  %s149_s4, 4096, %s151_s30, [#allocation18], %s6985_s1, %s6985_s1, %s6986_s24  }
  0x26   :  { %s180_s21 = sshll.u32 %s6987_s20, 4  ;;  %s206_s10 = sshll.u32 %s7407_s17, 4  ;;  %s181_s21 = int_to_ptr.vmem [resolvable:$true] %s180_s21  ;;  %s207_s10 = int_to_ptr.hbm [resolvable:$true] %s206_s10 }
  0x27   :  { %186 = dma.hbm_to_vmem [thread:$0]  %s179_s7, 4096, %s181_s21, [#allocation21], %s6985_s1, %s6985_s1, %s6986_s24  }
  0x28   :  { %s6988_s14 = smov [#allocation23]   ;;  %s7424_s28 = sld [smem:[#allocation36_spill]] }
  0x29   :  { %s208_s26 = sshll.u32 %s6988_s14, 4  ;;  %s7412_s0 = smov 64   ;;  %s209_s26 = int_to_ptr.vmem [resolvable:$true] %s208_s26 }
  0x2a   :  { %s6990_s4 = smov 4   ;;  %s6991_s17 = smov [#allocation2]  }
  0x2b   :  { %214 = dma.hbm_to_vmem [thread:$0]  %s207_s10, 2048, %s209_s26, [#allocation24], %s7412_s0, %s7412_s0, %s6990_s4  }
  0x2c   :  { %s42_s5 = sshll.u32 %s6991_s17, 4  ;;  %s7425_s23 = sld [smem:[#allocation38_spill]]  ;;  %s43_s5 = int_to_ptr.vmem [resolvable:$true] %s42_s5 }
  0x2d   :  { %s6992_s20 = smov [#allocation7]   ;;  %s7426_s14 = sld [smem:[#allocation40_spill]] }
  0x2e   :  { %s40_s29 = sshll.u32 %s7424_s28, 4  ;;  %s63_s21 = sshll.u32 %s6992_s20, 4  ;;  %s41_s29 = int_to_ptr.hbm [resolvable:$true] %s40_s29  ;;  %s64_s21 = int_to_ptr.vmem [resolvable:$true] %s63_s21 }
  0x2f   :  { %45 = dma.hbm_to_vmem [thread:$0]  %s41_s29, 256, %s43_s5, [#allocation3]  }
  0x30   :  { %s6993_s27 = smov 384   ;;  %s6994_s28 = smov 24  }
  0x31   :  { %s6995_s10 = smov [#allocation10]   ;;  %s109_s30 = sshll.u32 %s7396_s6, 4  ;;  %s110_s30 = int_to_ptr.hbm [resolvable:$true] %s109_s30 }
  0x32   :  { %s61_s7 = sshll.u32 %s7425_s23, 4  ;;  %s87_s26 = sshll.u32 %s6995_s10, 4  ;;  %s62_s7 = int_to_ptr.hbm [resolvable:$true] %s61_s7  ;;  %s88_s26 = int_to_ptr.vmem [resolvable:$true] %s87_s26 }
  0x33   :  { %s85_s3 = sshll.u32 %s7426_s14, 4  ;;  %s133_s22 = sshll.u32 %s7398_s8, 4  ;;  %s86_s3 = int_to_ptr.hbm [resolvable:$true] %s85_s3  ;;  %s134_s22 = int_to_ptr.hbm [resolvable:$true] %s133_s22 }
  0x34   :  { %69 = dma.hbm_to_vmem [thread:$0]  %s62_s7, 12288, %s64_s21, [#allocation6], %s6993_s27, %s6993_s27, %s6994_s28  }
  0x35   :  { %93 = dma.hbm_to_vmem [thread:$0]  %s86_s3, 12288, %s88_s26, [#allocation9], %s6993_s27, %s6993_s27, %s6994_s28  }
  0x36   :  { %s6996_s23 = smov [#allocation13]   ;;  %s6997_s7 = smov [#allocation16]  }
  0x37   :  { %s111_s20 = sshll.u32 %s6996_s23, 4  ;;  %s135_s21 = sshll.u32 %s6997_s7, 4  ;;  %s112_s20 = int_to_ptr.vmem [resolvable:$true] %s111_s20  ;;  %s136_s21 = int_to_ptr.vmem [resolvable:$true] %s135_s21 }
  0x38   :  { %117 = dma.hbm_to_vmem [thread:$0]  %s110_s30, 4096, %s112_s20, [#allocation12], %s6985_s1, %s6985_s1, %s6986_s24  }
  0x39   :  { %s6998_s0 = smov 256   ;;  %s6999_s6 = smov 16  }
  0x3a   :  { %141 = dma.hbm_to_vmem [thread:$0]  %s134_s22, 8192, %s136_s21, [#allocation15], %s6998_s0, %s6998_s0, %s6999_s6  }
  0x3b   :  { %s163_s14 = sshll.u32 %s7402_s12, 4  ;;  %s7000_s8 = smov [#allocation19]   ;;  %s164_s14 = int_to_ptr.hbm [resolvable:$true] %s163_s14 }
  0x3c   :  { %s165_s3 = sshll.u32 %s7000_s8, 4  ;;  %s191_s10 = sshll.u32 %s7405_s15, 4  ;;  %s166_s3 = int_to_ptr.vmem [resolvable:$true] %s165_s3  ;;  %s192_s10 = int_to_ptr.hbm [resolvable:$true] %s191_s10 }
  0x3d   :  { %171 = dma.hbm_to_vmem [thread:$0]  %s164_s14, 8192, %s166_s3, [#allocation18], %s6998_s0, %s6998_s0, %s6999_s6  }
  0x3e   :  { %s7001_s26 = smov [#allocation22]   ;;  %s221_s5 = sshll.u32 %s7409_s19, 4  ;;  %s222_s5 = int_to_ptr.hbm [resolvable:$true] %s221_s5 }
  0x3f   :  { %s193_s17 = sshll.u32 %s7001_s26, 4  ;;  %s7002_s12 = smov [#allocation25]   ;;  %s194_s17 = int_to_ptr.vmem [resolvable:$true] %s193_s17 }
  0x40   :  { %199 = dma.hbm_to_vmem [thread:$0]  %s192_s10, 4096, %s194_s17, [#allocation21], %s6985_s1, %s6985_s1, %s6986_s24  }
  0x41   :  { %s223_s22 = sshll.u32 %s7002_s12, 4  ;;  %s7427_s23 = smov 64   ;;  %s224_s22 = int_to_ptr.vmem [resolvable:$true] %s223_s22 }
  0x42   :  { %229 = dma.hbm_to_vmem [thread:$0]  %s222_s5, 1024, %s224_s22, [#allocation24], %s7427_s23, %s7427_s23, %s6990_s4  }
  0x43   :  { %6962 = dma.done.wait [#allocation3], 256  }
  0x44   :  { %6963 = vsyncadd [#allocation3], 4294967040 }
  0x45   :  { %6964 = dma.done.wait [#allocation6], 12544  }
  0x46   :  { %6965 = vsyncadd [#allocation6], 4294954752 }
  0x47   :  { %6966 = dma.done.wait [#allocation9], 12384  }
  0x48   :  { %6967 = vsyncadd [#allocation9], 4294954912 }
  0x49   :  { %6968 = dma.done.wait [#allocation12], 4192  }
  0x4a   :  { %6969 = vsyncadd [#allocation12], 4294963104 }
  0x4b   :  { %6970 = dma.done.wait [#allocation15], 8224  }
  0x4c   :  { %6971 = vsyncadd [#allocation15], 4294959072 }
  0x4d   :  { %6972 = dma.done.wait [#allocation18], 12288  }
  0x4e   :  { %6973 = vsyncadd [#allocation18], 4294955008 }
  0x4f   :  { %6974 = dma.done.wait [#allocation21], 8192  }
  0x50   :  { %6975 = vsyncadd [#allocation21], 4294959104 }
  0x51   :  { %6976 = dma.done.wait [#allocation24], 3072  }
  0x52   :  { %6977 = vsyncadd [#allocation24], 4294964224  ;;  %v4333_v0 = vld [vmem:[#allocation7 + $0x150] sm:$0xf]  ;;  %v6096_v1 = vld [vmem:[#allocation7 + $0x164] sm:$0xf0] }
  0x53   :  { %v4525_v2 = vld [vmem:[#allocation7 + $0x2d0] sm:$0xf]  ;;  %v4334_v3 = vor.u32 %v6096_v1, %v4333_v0  ;;  %v6144_v4 = vld [vmem:[#allocation7 + $0x2e4] sm:$0xf0]  ;;  %v6093_v5 = vld [vmem:[#allocation7 + $0x154] sm:$0xf] }
  0x54   :  { %v4335_v6 = vld [vmem:[#allocation7 + $0x168] sm:$0xf0]  ;;  %v4526_v7 = vor.u32 %v6144_v4, %v4525_v2  ;;  %v6141_v9 = vld [vmem:[#allocation7 + $0x2d4] sm:$0xf]  ;;  %v4309_v11 = vld [vmem:[#allocation7 + $0x120] sm:$0xf] }
  0x55   :  { %v4338_v8 = vor.u32 %v6093_v5, %v4335_v6  ;;  %v4527_v10 = vld [vmem:[#allocation7 + $0x2e8] sm:$0xf0]  ;;  %886 = vmatpush.bf16.msra.mxu0 %v4334_v3  ;;  %v6090_v13 = vld [vmem:[#allocation7 + $0x134] sm:$0xf0]  ;;  %v4501_v14 = vld [vmem:[#allocation7 + $0x2a0] sm:$0xf] }
  0x56   :  { %v4530_v12 = vor.u32 %v6141_v9, %v4527_v10  ;;  %v6138_v15 = vld [vmem:[#allocation7 + $0x2b4] sm:$0xf0]  ;;  %899 = vmatpush.bf16.msra.mxu1 %v4526_v7  ;;  %v4310_v16 = vor.u32 %v6090_v13, %v4309_v11  ;;  %v6087_v18 = vld [vmem:[#allocation7 + $0x124] sm:$0xf]  ;;  %v4311_v19 = vld [vmem:[#allocation7 + $0x138] sm:$0xf0] }
  0x57   :  { %912 = vmatpush.bf16.msra.mxu2 %v4338_v8  ;;  %v4502_v17 = vor.u32 %v6138_v15, %v4501_v14  ;;  %v6135_v20 = vld [vmem:[#allocation7 + $0x2a4] sm:$0xf]  ;;  %v4314_v21 = vor.u32 %v6087_v18, %v4311_v19  ;;  %v4503_v22 = vld [vmem:[#allocation7 + $0x2b8] sm:$0xf0]  ;;  %v4285_v23 = vld [vmem:[#allocation7 + $0xf0] sm:$0xf] }
  0x58   :  { %925 = vmatpush.bf16.msra.mxu3 %v4530_v12  ;;  %v6084_v24 = vld [vmem:[#allocation7 + $0x104] sm:$0xf0]  ;;  %v4506_v25 = vor.u32 %v6135_v20, %v4503_v22  ;;  %v4477_v26 = vld [vmem:[#allocation7 + $0x270] sm:$0xf]  ;;  %v6081_v28 = vld [vmem:[#allocation7 + $0xf4] sm:$0xf] }
  0x59   :  { %v6132_v27 = vld [vmem:[#allocation7 + $0x284] sm:$0xf0]  ;;  %887 = vmatpush.bf16.msra.mxu0 %v4310_v16  ;;  %v4286_v29 = vor.u32 %v6084_v24, %v4285_v23  ;;  %v4287_v30 = vld [vmem:[#allocation7 + $0x108] sm:$0xf0]  ;;  %v6129_v31 = vld [vmem:[#allocation7 + $0x274] sm:$0xf] }
  0x5a   :  { %v4479_v32 = vld [vmem:[#allocation7 + $0x288] sm:$0xf0]  ;;  %900 = vmatpush.bf16.msra.mxu1 %v4502_v17  ;;  %v4478_v33 = vor.u32 %v6132_v27, %v4477_v26  ;;  %v4290_v34 = vor.u32 %v6081_v28, %v4287_v30  ;;  %v4261_v35 = vld [vmem:[#allocation7 + $0xc0] sm:$0xf]  ;;  %v6078_v36 = vld [vmem:[#allocation7 + $0xd4] sm:$0xf0] }
  0x5b   :  { %913 = vmatpush.bf16.msra.mxu2 %v4314_v21  ;;  %v4453_v37 = vld [vmem:[#allocation7 + $0x240] sm:$0xf]  ;;  %v4482_v38 = vor.u32 %v6129_v31, %v4479_v32  ;;  %v6126_v39 = vld [vmem:[#allocation7 + $0x254] sm:$0xf0]  ;;  %v6075_v40 = vld [vmem:[#allocation7 + $0xc4] sm:$0xf]  ;;  %v4262_v44 = vor.u32 %v6078_v36, %v4261_v35 }
  0x5c   :  { %926 = vmatpush.bf16.msra.mxu3 %v4506_v25  ;;  %v4263_v41 = vld [vmem:[#allocation7 + $0xd8] sm:$0xf0]  ;;  %v6123_v42 = vld [vmem:[#allocation7 + $0x244] sm:$0xf]  ;;  %v4454_v45 = vor.u32 %v6126_v39, %v4453_v37  ;;  %v4237_v47 = vld [vmem:[#allocation7 + $0x90] sm:$0xf] }
  0x5d   :  { %v4455_v43 = vld [vmem:[#allocation7 + $0x258] sm:$0xf0]  ;;  %888 = vmatpush.bf16.msra.mxu0 %v4286_v29  ;;  %v4266_v46 = vor.u32 %v6075_v40, %v4263_v41  ;;  %v6072_v48 = vld [vmem:[#allocation7 + $0xa4] sm:$0xf0]  ;;  %v4429_v49 = vld [vmem:[#allocation7 + $0x210] sm:$0xf] }
  0x5e   :  { %901 = vmatpush.bf16.msra.mxu1 %v4478_v33  ;;  %v4458_v50 = vor.u32 %v6123_v42, %v4455_v43  ;;  %v6120_v51 = vld [vmem:[#allocation7 + $0x224] sm:$0xf0]  ;;  %v6069_v52 = vld [vmem:[#allocation7 + $0x94] sm:$0xf]  ;;  %v4239_v53 = vld [vmem:[#allocation7 + $0xa8] sm:$0xf0]  ;;  %v4238_v56 = vor.u32 %v6072_v48, %v4237_v47 }
  0x5f   :  { %914 = vmatpush.bf16.msra.mxu2 %v4290_v34  ;;  %v6117_v54 = vld [vmem:[#allocation7 + $0x214] sm:$0xf]  ;;  %v4431_v55 = vld [vmem:[#allocation7 + $0x228] sm:$0xf0]  ;;  %v4430_v57 = vor.u32 %v6120_v51, %v4429_v49  ;;  %v4242_v58 = vor.u32 %v6069_v52, %v4239_v53  ;;  %v4213_v59 = vld [vmem:[#allocation7 + $0x60] sm:$0xf] }
  0x60   :  { %927 = vmatpush.bf16.msra.mxu3 %v4482_v38  ;;  %v6066_v60 = vld [vmem:[#allocation7 + $0x74] sm:$0xf0]  ;;  %v4405_v61 = vld [vmem:[#allocation7 + $0x1e0] sm:$0xf]  ;;  %v4434_v62 = vor.u32 %v6117_v54, %v4431_v55  ;;  %v6063_v0 = vld [vmem:[#allocation7 + $0x64] sm:$0xf] }
  0x61   :  { %889 = vmatpush.bf16.msra.mxu0 %v4262_v44  ;;  %v6114_v63 = vld [vmem:[#allocation7 + $0x1f4] sm:$0xf0]  ;;  %v4215_v1 = vld [vmem:[#allocation7 + $0x78] sm:$0xf0]  ;;  %v6111_v2 = vld [vmem:[#allocation7 + $0x1e4] sm:$0xf]  ;;  %v4214_v4 = vor.u32 %v6066_v60, %v4213_v59 }
  0x62   :  { %902 = vmatpush.bf16.msra.mxu1 %v4454_v45  ;;  %v4407_v3 = vld [vmem:[#allocation7 + $0x1f8] sm:$0xf0]  ;;  %v4406_v5 = vor.u32 %v6114_v63, %v4405_v61  ;;  %v4218_v6 = vor.u32 %v6063_v0, %v4215_v1  ;;  %v4189_v7 = vld [vmem:[#allocation7 + $0x30] sm:$0xf]  ;;  %v6060_v8 = vld [vmem:[#allocation7 + $0x44] sm:$0xf0] }
  0x63   :  { %915 = vmatpush.bf16.msra.mxu2 %v4266_v46  ;;  %v4381_v9 = vld [vmem:[#allocation7 + $0x1b0] sm:$0xf]  ;;  %v4410_v10 = vor.u32 %v6111_v2, %v4407_v3  ;;  %v6108_v11 = vld [vmem:[#allocation7 + $0x1c4] sm:$0xf0]  ;;  %v6057_v12 = vld [vmem:[#allocation7 + $0x34] sm:$0xf]  ;;  %v4190_v16 = vor.u32 %v6060_v8, %v4189_v7 }
  0x64   :  { %928 = vmatpush.bf16.msra.mxu3 %v4458_v50  ;;  %v4191_v13 = vld [vmem:[#allocation7 + $0x48] sm:$0xf0]  ;;  %v6105_v14 = vld [vmem:[#allocation7 + $0x1b4] sm:$0xf]  ;;  %v4165_v17 = vld [vmem:[#allocation7] sm:$0xf]  ;;  %v4382_v19 = vor.u32 %v6108_v11, %v4381_v9 }
  0x65   :  { %890 = vmatpush.bf16.msra.mxu0 %v4238_v56  ;;  %v4383_v15 = vld [vmem:[#allocation7 + $0x1c8] sm:$0xf0]  ;;  %v6054_v18 = vld [vmem:[#allocation7 + $0x14] sm:$0xf0]  ;;  %v4194_v20 = vor.u32 %v6057_v12, %v4191_v13  ;;  %v4357_v21 = vld [vmem:[#allocation7 + $0x180] sm:$0xf] }
  0x66   :  { %903 = vmatpush.bf16.msra.mxu1 %v4430_v57  ;;  %v6102_v22 = vld [vmem:[#allocation7 + $0x194] sm:$0xf0]  ;;  %v6051_v23 = vld [vmem:[#allocation7 + $0x4] sm:$0xf]  ;;  %v4386_v24 = vor.u32 %v6105_v14, %v4383_v15  ;;  %v4167_v25 = vld [vmem:[#allocation7 + $0x18] sm:$0xf0]  ;;  %v4166_v31 = vor.u32 %v6054_v18, %v4165_v17 }
  0x67   :  { %916 = vmatpush.bf16.msra.mxu2 %v4242_v58  ;;  %v6099_v26 = vld [vmem:[#allocation7 + $0x184] sm:$0xf]  ;;  %v4359_v27 = vld [vmem:[#allocation7 + $0x198] sm:$0xf0]  ;;  %v4341_v28 = vld [vmem:[#allocation7 + $0x158] sm:$0xf]  ;;  %v4358_v35 = vor.u32 %v6102_v22, %v4357_v21  ;;  %v4170_v36 = vor.u32 %v6051_v23, %v4167_v25 }
  0x68   :  { %929 = vmatpush.bf16.msra.mxu3 %v4434_v62  ;;  %v6097_v29 = vld [vmem:[#allocation7 + $0x16c] sm:$0xf0]  ;;  %v4533_v30 = vld [vmem:[#allocation7 + $0x2d8] sm:$0xf]  ;;  %v6094_v33 = vld [vmem:[#allocation7 + $0x15c] sm:$0xf]  ;;  %v4362_v39 = vor.u32 %v6099_v26, %v4359_v27 }
  0x69   :  { %891 = vmatpush.bf16.msra.mxu0 %v4214_v4  ;;  %v6145_v32 = vld [vmem:[#allocation7 + $0x2ec] sm:$0xf0]  ;;  %v4343_v34 = vld [vmem:[#allocation7 + $0x170] sm:$0xf0]  ;;  %v6142_v37 = vld [vmem:[#allocation7 + $0x2dc] sm:$0xf]  ;;  %v4342_v40 = vor.u32 %v6097_v29, %v4341_v28 }
  0x6a   :  { %904 = vmatpush.bf16.msra.mxu1 %v4406_v5  ;;  %v4535_v38 = vld [vmem:[#allocation7 + $0x2f0] sm:$0xf0]  ;;  %v4534_v41 = vor.u32 %v6145_v32, %v4533_v30  ;;  %v4346_v42 = vor.u32 %v6094_v33, %v4343_v34  ;;  %v4317_v43 = vld [vmem:[#allocation7 + $0x128] sm:$0xf]  ;;  %v6091_v44 = vld [vmem:[#allocation7 + $0x13c] sm:$0xf0] }
  0x6b   :  { %917 = vmatpush.bf16.msra.mxu2 %v4218_v6  ;;  %v4509_v45 = vld [vmem:[#allocation7 + $0x2a8] sm:$0xf]  ;;  %v4538_v46 = vor.u32 %v6142_v37, %v4535_v38  ;;  %v6139_v47 = vld [vmem:[#allocation7 + $0x2bc] sm:$0xf0]  ;;  %v6088_v48 = vld [vmem:[#allocation7 + $0x12c] sm:$0xf]  ;;  %v4318_v53 = vor.u32 %v6091_v44, %v4317_v43 }
  0x6c   :  { %930 = vmatpush.bf16.msra.mxu3 %v4410_v10  ;;  %v4319_v49 = vld [vmem:[#allocation7 + $0x140] sm:$0xf0]  ;;  %v6136_v50 = vld [vmem:[#allocation7 + $0x2ac] sm:$0xf]  ;;  %v4293_v54 = vld [vmem:[#allocation7 + $0xf8] sm:$0xf]  ;;  %v4510_v56 = vor.u32 %v6139_v47, %v4509_v45 }
  0x6d   :  { %892 = vmatpush.bf16.msra.mxu0 %v4190_v16  ;;  %v4511_v51 = vld [vmem:[#allocation7 + $0x2c0] sm:$0xf0]  ;;  %v4322_v57 = vor.u32 %v6088_v48, %v4319_v49  ;;  %v6085_v58 = vld [vmem:[#allocation7 + $0x10c] sm:$0xf0]  ;;  %v4485_v59 = vld [vmem:[#allocation7 + $0x278] sm:$0xf] }
  0x6e   :  { %905 = vmatpush.bf16.msra.mxu1 %v4382_v19  ;;  %v292_v52 = vld [vmem:[#allocation2] sm:$0xff]  ;;  %v6133_v60 = vld [vmem:[#allocation7 + $0x28c] sm:$0xf0]  ;;  %v4514_v61 = vor.u32 %v6136_v50, %v4511_v51  ;;  %v6082_v62 = vld [vmem:[#allocation7 + $0xfc] sm:$0xf]  ;;  %v4294_v4 = vor.u32 %v6085_v58, %v4293_v54  ;;  %s7428_s0 = sld [smem:[#allocation42_spill]] }
  0x6f   :  { %918 = vmatpush.bf16.msra.mxu2 %v4194_v20  ;;  %v7177_v55 = vpack.c.bf16 %v292_v52, %v292_v52  ;;  %v4295_v63 = vld [vmem:[#allocation7 + $0x110] sm:$0xf0]  ;;  %v293_v0 = vld [vmem:[#allocation2 + $0x8] sm:$0xff]  ;;  %v6130_v1 = vld [vmem:[#allocation7 + $0x27c] sm:$0xf]  ;;  %v4486_v5 = vor.u32 %v6133_v60, %v4485_v59  ;;  %s7003_s6 = smov [#allocation26]  }
  0x70   :  { %931 = vmatpush.bf16.msra.mxu3 %v4386_v24  ;;  %v4487_v2 = vld [vmem:[#allocation7 + $0x290] sm:$0xf0]  ;;  %v7180_v3 = vpack.c.bf16 %v293_v0, %v293_v0  ;;  %v4298_v6 = vor.u32 %v6082_v62, %v4295_v63  ;;  %v4269_v7 = vld [vmem:[#allocation7 + $0xc8] sm:$0xf]  ;;  %v6079_v8 = vld [vmem:[#allocation7 + $0xdc] sm:$0xf0] }
  0x71   :  { %893 = vmatpush.bf16.msra.mxu0 %v4166_v31  ;;  %v4461_v9 = vld [vmem:[#allocation7 + $0x248] sm:$0xf]  ;;  %v4490_v10 = vor.u32 %v6130_v1, %v4487_v2  ;;  %v6127_v11 = vld [vmem:[#allocation7 + $0x25c] sm:$0xf0]  ;;  %v6076_v12 = vld [vmem:[#allocation7 + $0xcc] sm:$0xf]  ;;  %v4270_v16 = vor.u32 %v6079_v8, %v4269_v7 }
  0x72   :  { %906 = vmatpush.bf16.msra.mxu1 %v4358_v35  ;;  %v4271_v13 = vld [vmem:[#allocation7 + $0xe0] sm:$0xf0]  ;;  %v6124_v14 = vld [vmem:[#allocation7 + $0x24c] sm:$0xf]  ;;  %v4462_v17 = vor.u32 %v6127_v11, %v4461_v9  ;;  %v4245_v19 = vld [vmem:[#allocation7 + $0x98] sm:$0xf] }
  0x73   :  { %919 = vmatpush.bf16.msra.mxu2 %v4170_v36  ;;  %v4463_v15 = vld [vmem:[#allocation7 + $0x260] sm:$0xf0]  ;;  %v4274_v18 = vor.u32 %v6076_v12, %v4271_v13  ;;  %v6073_v20 = vld [vmem:[#allocation7 + $0xac] sm:$0xf0]  ;;  %v4437_v21 = vld [vmem:[#allocation7 + $0x218] sm:$0xf] }
  0x74   :  { %932 = vmatpush.bf16.msra.mxu3 %v4362_v39  ;;  %894 = vmatmul.bf16.vlgmr.msra.gmra.mxu0 %v7177_v55  ;;  %v4466_v22 = vor.u32 %v6124_v14, %v4463_v15  ;;  %v6121_v23 = vld [vmem:[#allocation7 + $0x22c] sm:$0xf0]  ;;  %v6070_v24 = vld [vmem:[#allocation7 + $0x9c] sm:$0xf]  ;;  %v4247_v25 = vld [vmem:[#allocation7 + $0xb0] sm:$0xf0]  ;;  %v4246_v28 = vor.u32 %v6073_v20, %v4245_v19 }
  0x75   :  { %938 = vmatpush.bf16.msrb.mxu0 %v4342_v40  ;;  %907 = vmatmul.bf16.vlgmr.msra.gmra.mxu1 %v7180_v3  ;;  %v6118_v26 = vld [vmem:[#allocation7 + $0x21c] sm:$0xf]  ;;  %v4439_v27 = vld [vmem:[#allocation7 + $0x230] sm:$0xf0]  ;;  %v4438_v29 = vor.u32 %v6121_v23, %v4437_v21  ;;  %v4250_v30 = vor.u32 %v6070_v24, %v4247_v25  ;;  %v4221_v31 = vld [vmem:[#allocation7 + $0x68] sm:$0xf] }
  0x76   :  { %951 = vmatpush.bf16.msrb.mxu1 %v4534_v41  ;;  %920 = vmatmul.bf16.vlgmr.msra.gmra.mxu2 %v7177_v55  ;;  %v6067_v32 = vld [vmem:[#allocation7 + $0x7c] sm:$0xf0]  ;;  %v4413_v33 = vld [vmem:[#allocation7 + $0x1e8] sm:$0xf]  ;;  %v4442_v34 = vor.u32 %v6118_v26, %v4439_v27  ;;  %v6064_v36 = vld [vmem:[#allocation7 + $0x6c] sm:$0xf] }
  0x77   :  { %964 = vmatpush.bf16.msrb.mxu2 %v4346_v42  ;;  %933 = vmatmul.bf16.vlgmr.msra.gmra.mxu3 %v7180_v3  ;;  %v6115_v35 = vld [vmem:[#allocation7 + $0x1fc] sm:$0xf0]  ;;  %v4223_v37 = vld [vmem:[#allocation7 + $0x80] sm:$0xf0]  ;;  %v6112_v38 = vld [vmem:[#allocation7 + $0x1ec] sm:$0xf]  ;;  %v4222_v40 = vor.u32 %v6067_v32, %v4221_v31 }
  0x78   :  { %977 = vmatpush.bf16.msrb.mxu3 %v4538_v46  ;;  %v4415_v39 = vld [vmem:[#allocation7 + $0x200] sm:$0xf0]  ;;  %v4414_v41 = vor.u32 %v6115_v35, %v4413_v33  ;;  %v4226_v42 = vor.u32 %v6064_v36, %v4223_v37  ;;  %v4197_v43 = vld [vmem:[#allocation7 + $0x38] sm:$0xf]  ;;  %v6061_v44 = vld [vmem:[#allocation7 + $0x4c] sm:$0xf0] }
  0x79   :  { %939 = vmatpush.bf16.msrb.mxu0 %v4318_v53  ;;  %v4389_v45 = vld [vmem:[#allocation7 + $0x1b8] sm:$0xf]  ;;  %v4418_v46 = vor.u32 %v6112_v38, %v4415_v39  ;;  %v6109_v47 = vld [vmem:[#allocation7 + $0x1cc] sm:$0xf0]  ;;  %v6058_v48 = vld [vmem:[#allocation7 + $0x3c] sm:$0xf]  ;;  %v4198_v52 = vor.u32 %v6061_v44, %v4197_v43 }
  0x7a   :  { %952 = vmatpush.bf16.msrb.mxu1 %v4510_v56  ;;  %v4199_v49 = vld [vmem:[#allocation7 + $0x50] sm:$0xf0]  ;;  %v6106_v50 = vld [vmem:[#allocation7 + $0x1bc] sm:$0xf]  ;;  %v4173_v53 = vld [vmem:[#allocation7 + $0x8] sm:$0xf]  ;;  %v4390_v56 = vor.u32 %v6109_v47, %v4389_v45 }
  0x7b   :  { %965 = vmatpush.bf16.msrb.mxu2 %v4322_v57  ;;  %v4391_v51 = vld [vmem:[#allocation7 + $0x1d0] sm:$0xf0]  ;;  %v6055_v54 = vld [vmem:[#allocation7 + $0x1c] sm:$0xf0]  ;;  %v4202_v57 = vor.u32 %v6058_v48, %v4199_v49  ;;  %v4365_v58 = vld [vmem:[#allocation7 + $0x188] sm:$0xf] }
  0x7c   :  { %978 = vmatpush.bf16.msrb.mxu3 %v4514_v61  ;;  %v6103_v59 = vld [vmem:[#allocation7 + $0x19c] sm:$0xf0]  ;;  %v6052_v60 = vld [vmem:[#allocation7 + $0xc] sm:$0xf]  ;;  %v4394_v61 = vor.u32 %v6106_v50, %v4391_v51  ;;  %v4175_v62 = vld [vmem:[#allocation7 + $0x20] sm:$0xf0] }
  0x7d   :  { %940 = vmatpush.bf16.msrb.mxu0 %v4294_v4  ;;  %v6100_v63 = vld [vmem:[#allocation7 + $0x18c] sm:$0xf]  ;;  %v4367_v0 = vld [vmem:[#allocation7 + $0x1a0] sm:$0xf0]  ;;  %v4349_v1 = vld [vmem:[#allocation7 + $0x160] sm:$0xf]  ;;  %v4366_v9 = vor.u32 %v6103_v59, %v4365_v58 }
  0x7e   :  { %953 = vmatpush.bf16.msrb.mxu1 %v4486_v5  ;;  %v6098_v2 = vld [vmem:[#allocation7 + $0x174] sm:$0xf0]  ;;  %v4541_v4 = vld [vmem:[#allocation7 + $0x2e0] sm:$0xf]  ;;  %v4174_v5 = vor.u32 %v6055_v54, %v4173_v53  ;;  %v6095_v7 = vld [vmem:[#allocation7 + $0x164] sm:$0xf]  ;;  %v4370_v13 = vor.u32 %v6100_v63, %v4367_v0 }
  0x7f   :  { %966 = vmatpush.bf16.msrb.mxu2 %v4298_v6  ;;  %v6146_v6 = vld [vmem:[#allocation7 + $0x2f4] sm:$0xf0]  ;;  %v4351_v8 = vld [vmem:[#allocation7 + $0x178] sm:$0xf0]  ;;  %v6143_v11 = vld [vmem:[#allocation7 + $0x2e4] sm:$0xf]  ;;  %v4350_v14 = vor.u32 %v6098_v2, %v4349_v1 }
  0x80   :  { %979 = vmatpush.bf16.msrb.mxu3 %v4490_v10  ;;  %v4178_v10 = vor.u32 %v6052_v60, %v4175_v62  ;;  %v4543_v12 = vld [vmem:[#allocation7 + $0x2f8] sm:$0xf0]  ;;  %v4542_v15 = vor.u32 %v6146_v6, %v4541_v4  ;;  %v4517_v19 = vld [vmem:[#allocation7 + $0x2b0] sm:$0xf]  ;;  %v6140_v21 = vld [vmem:[#allocation7 + $0x2c4] sm:$0xf0] }
  0x81   :  { %941 = vmatpush.bf16.msrb.mxu0 %v4270_v16  ;;  %v4354_v16 = vor.u32 %v6095_v7, %v4351_v8  ;;  %v4546_v20 = vor.u32 %v6143_v11, %v4543_v12  ;;  %v4327_v23 = vld [vmem:[#allocation7 + $0x148] sm:$0xf0]  ;;  %v6137_v24 = vld [vmem:[#allocation7 + $0x2b4] sm:$0xf]  ;;  %v4518_v27 = vor.u32 %v6140_v21, %v4517_v19  ;;  %v4493_v31 = vld [vmem:[#allocation7 + $0x280] sm:$0xf] }
  0x82   :  { %954 = vmatpush.bf16.msrb.mxu1 %v4462_v17  ;;  %v4325_v17 = vld [vmem:[#allocation7 + $0x130] sm:$0xf]  ;;  %v4519_v25 = vld [vmem:[#allocation7 + $0x2c8] sm:$0xf0]  ;;  %v6134_v33 = vld [vmem:[#allocation7 + $0x294] sm:$0xf0] }
  0x83   :  { %967 = vmatpush.bf16.msrb.mxu2 %v4274_v18  ;;  %v6092_v18 = vld [vmem:[#allocation7 + $0x144] sm:$0xf0]  ;;  %v4522_v32 = vor.u32 %v6137_v24, %v4519_v25  ;;  %v4303_v35 = vld [vmem:[#allocation7 + $0x118] sm:$0xf0]  ;;  %v6131_v36 = vld [vmem:[#allocation7 + $0x284] sm:$0xf]  ;;  %v4494_v39 = vor.u32 %v6134_v33, %v4493_v31 }
  0x84   :  { %980 = vmatpush.bf16.msrb.mxu3 %v4466_v22  ;;  %v6089_v22 = vld [vmem:[#allocation7 + $0x134] sm:$0xf]  ;;  %v4326_v26 = vor.u32 %v6092_v18, %v4325_v17  ;;  %v4495_v37 = vld [vmem:[#allocation7 + $0x298] sm:$0xf0]  ;;  %v4469_v43 = vld [vmem:[#allocation7 + $0x250] sm:$0xf] }
  0x85   :  { %942 = vmatpush.bf16.msrb.mxu0 %v4246_v28  ;;  %v4330_v28 = vor.u32 %v6089_v22, %v4327_v23  ;;  %v4498_v44 = vor.u32 %v6131_v36, %v4495_v37  ;;  %v6128_v45 = vld [vmem:[#allocation7 + $0x264] sm:$0xf0]  ;;  %v4279_v47 = vld [vmem:[#allocation7 + $0xe8] sm:$0xf0]  ;;  %v6125_v48 = vld [vmem:[#allocation7 + $0x254] sm:$0xf] }
  0x86   :  { %955 = vmatpush.bf16.msrb.mxu1 %v4438_v29  ;;  %v4301_v29 = vld [vmem:[#allocation7 + $0x100] sm:$0xf]  ;;  %v4471_v49 = vld [vmem:[#allocation7 + $0x268] sm:$0xf0]  ;;  %v4470_v51 = vor.u32 %v6128_v45, %v4469_v43  ;;  %v6074_v54 = vld [vmem:[#allocation7 + $0xb4] sm:$0xf0] }
  0x87   :  { %968 = vmatpush.bf16.msrb.mxu2 %v4250_v30  ;;  %v6086_v30 = vld [vmem:[#allocation7 + $0x114] sm:$0xf0]  ;;  %v4253_v53 = vld [vmem:[#allocation7 + $0xa0] sm:$0xf]  ;;  %v6071_v59 = vld [vmem:[#allocation7 + $0xa4] sm:$0xf] }
  0x88   :  { %981 = vmatpush.bf16.msrb.mxu3 %v4442_v34  ;;  %v6083_v34 = vld [vmem:[#allocation7 + $0x104] sm:$0xf]  ;;  %v4302_v38 = vor.u32 %v6086_v30, %v4301_v29  ;;  %v6122_v58 = vld [vmem:[#allocation7 + $0x234] sm:$0xf0]  ;;  %v4255_v60 = vld [vmem:[#allocation7 + $0xb8] sm:$0xf0]  ;;  %v4254_v63 = vor.u32 %v6074_v54, %v4253_v53 }
  0x89   :  { %943 = vmatpush.bf16.msrb.mxu0 %v4222_v40  ;;  %v4306_v40 = vor.u32 %v6083_v34, %v4303_v35  ;;  %v4447_v62 = vld [vmem:[#allocation7 + $0x238] sm:$0xf0]  ;;  %v4229_v0 = vld [vmem:[#allocation7 + $0x70] sm:$0xf]  ;;  %v4258_v2 = vor.u32 %v6071_v59, %v4255_v60  ;;  %v6068_v4 = vld [vmem:[#allocation7 + $0x84] sm:$0xf0] }
  0x8a   :  { %956 = vmatpush.bf16.msrb.mxu1 %v4414_v41  ;;  %v4277_v41 = vld [vmem:[#allocation7 + $0xd0] sm:$0xf]  ;;  %v6116_v6 = vld [vmem:[#allocation7 + $0x204] sm:$0xf0]  ;;  %v6065_v8 = vld [vmem:[#allocation7 + $0x74] sm:$0xf]  ;;  %v4230_v12 = vor.u32 %v6068_v4, %v4229_v0 }
  0x8b   :  { %969 = vmatpush.bf16.msrb.mxu2 %v4226_v42  ;;  %v6080_v42 = vld [vmem:[#allocation7 + $0xe4] sm:$0xf0]  ;;  %v4423_v11 = vld [vmem:[#allocation7 + $0x208] sm:$0xf0]  ;;  %v4397_v17 = vld [vmem:[#allocation7 + $0x1c0] sm:$0xf] }
  0x8c   :  { %982 = vmatpush.bf16.msrb.mxu3 %v4418_v46  ;;  %v6077_v46 = vld [vmem:[#allocation7 + $0xd4] sm:$0xf]  ;;  %v4278_v50 = vor.u32 %v6080_v42, %v4277_v41  ;;  %v6110_v19 = vld [vmem:[#allocation7 + $0x1d4] sm:$0xf0]  ;;  %v4207_v21 = vld [vmem:[#allocation7 + $0x58] sm:$0xf0] }
  0x8d   :  { %944 = vmatpush.bf16.msrb.mxu0 %v4198_v52  ;;  %v4282_v52 = vor.u32 %v6077_v46, %v4279_v47  ;;  %v6107_v22 = vld [vmem:[#allocation7 + $0x1c4] sm:$0xf]  ;;  %v4399_v23 = vld [vmem:[#allocation7 + $0x1d8] sm:$0xf0]  ;;  %v4181_v25 = vld [vmem:[#allocation7 + $0x10] sm:$0xf] }
  0x8e   :  { %957 = vmatpush.bf16.msrb.mxu1 %v4390_v56  ;;  %v4445_v56 = vld [vmem:[#allocation7 + $0x220] sm:$0xf]  ;;  %v4373_v29 = vld [vmem:[#allocation7 + $0x190] sm:$0xf]  ;;  %v6104_v30 = vld [vmem:[#allocation7 + $0x1a4] sm:$0xf0] }
  0x8f   :  { %970 = vmatpush.bf16.msrb.mxu2 %v4202_v57  ;;  %v4474_v57 = vor.u32 %v6125_v48, %v4471_v49  ;;  %v4446_v1 = vor.u32 %v6122_v58, %v4445_v56  ;;  %v6053_v31 = vld [vmem:[#allocation7 + $0x14] sm:$0xf]  ;;  %v4183_v33 = vld [vmem:[#allocation7 + $0x28] sm:$0xf0]  ;;  %v6189_v41 = vld [vmem:[#allocation10 + $0x154] sm:$0xf]  ;;  %v4374_v43 = vor.u32 %v6104_v30, %v4373_v29 }
  0x90   :  { %983 = vmatpush.bf16.msrb.mxu3 %v4394_v61  ;;  %v6119_v61 = vld [vmem:[#allocation7 + $0x224] sm:$0xf]  ;;  %v6101_v34 = vld [vmem:[#allocation7 + $0x194] sm:$0xf]  ;;  %v4375_v35 = vld [vmem:[#allocation7 + $0x1a8] sm:$0xf0] }
  0x91   :  { %945 = vmatpush.bf16.msrb.mxu0 %v4174_v5  ;;  %v4421_v5 = vld [vmem:[#allocation7 + $0x1f0] sm:$0xf]  ;;  %v4450_v7 = vor.u32 %v6119_v61, %v4447_v62  ;;  %v4717_v36 = vld [vmem:[#allocation10 + $0x150] sm:$0xf]  ;;  %v6237_v45 = vld [vmem:[#allocation10 + $0x2d4] sm:$0xf]  ;;  %v4378_v47 = vor.u32 %v6101_v34, %v4375_v35 }
  0x92   :  { %958 = vmatpush.bf16.msrb.mxu1 %v4366_v9  ;;  %v4231_v9 = vld [vmem:[#allocation7 + $0x88] sm:$0xf0]  ;;  %v4719_v42 = vld [vmem:[#allocation10 + $0x168] sm:$0xf0]  ;;  %v4885_v53 = vld [vmem:[#allocation10 + $0x2a0] sm:$0xf] }
  0x93   :  { %971 = vmatpush.bf16.msrb.mxu2 %v4178_v10  ;;  %v6113_v10 = vld [vmem:[#allocation7 + $0x1f4] sm:$0xf]  ;;  %v6192_v37 = vld [vmem:[#allocation10 + $0x164] sm:$0xf0]  ;;  %v6234_v56 = vld [vmem:[#allocation10 + $0x2b4] sm:$0xf0] }
  0x94   :  { %984 = vmatpush.bf16.msrb.mxu3 %v4370_v13  ;;  %946 = vmatmul.bf16.vlgmr.msrb.gmra.mxu0 %v7177_v55  ;;  %v4422_v13 = vor.u32 %v6116_v6, %v4421_v5  ;;  %v4426_v18 = vor.u32 %v6113_v10, %v4423_v11  ;;  %v4911_v46 = vld [vmem:[#allocation10 + $0x2e8] sm:$0xf0]  ;;  %v4718_v48 = vor.u32 %v6192_v37, %v4717_v36  ;;  %v4695_v58 = vld [vmem:[#allocation10 + $0x138] sm:$0xf0]  ;;  %v6231_v59 = vld [vmem:[#allocation10 + $0x2a4] sm:$0xf] }
  0x95   :  { %990 = vmatpush.bf16.msra.mxu0 %v4350_v14  ;;  %959 = vmatmul.bf16.vlgmr.msrb.gmra.mxu1 %v7180_v3  ;;  %v4234_v14 = vor.u32 %v6065_v8, %v4231_v9  ;;  %v4914_v54 = vor.u32 %v6237_v45, %v4911_v46  ;;  %v4887_v60 = vld [vmem:[#allocation10 + $0x2b8] sm:$0xf0]  ;;  %v4886_v62 = vor.u32 %v6234_v56, %v4885_v53  ;;  %v4669_v0 = vld [vmem:[#allocation10 + $0xf0] sm:$0xf]  ;;  %v6228_v5 = vld [vmem:[#allocation10 + $0x284] sm:$0xf0] }
  0x96   :  { %1003 = vmatpush.bf16.msra.mxu1 %v4542_v15  ;;  %972 = vmatmul.bf16.vlgmr.msrb.gmra.mxu2 %v7177_v55  ;;  %v4205_v15 = vld [vmem:[#allocation7 + $0x40] sm:$0xf]  ;;  %v4890_v4 = vor.u32 %v6231_v59, %v4887_v60  ;;  %v6177_v6 = vld [vmem:[#allocation10 + $0xf4] sm:$0xf]  ;;  %v4863_v9 = vld [vmem:[#allocation10 + $0x288] sm:$0xf0] }
  0x97   :  { %1016 = vmatpush.bf16.msra.mxu2 %v4354_v16  ;;  %985 = vmatmul.bf16.vlgmr.msrb.gmra.mxu3 %v7180_v3  ;;  %v6062_v16 = vld [vmem:[#allocation7 + $0x54] sm:$0xf0]  ;;  %v4623_v29 = vld [vmem:[#allocation10 + $0xa8] sm:$0xf0]  ;;  %v4597_v35 = vld [vmem:[#allocation10 + $0x60] sm:$0xf] }
  0x98   :  { %1029 = vmatpush.bf16.msra.mxu3 %v4546_v20  ;;  %v6059_v20 = vld [vmem:[#allocation7 + $0x44] sm:$0xf]  ;;  %v4206_v24 = vor.u32 %v6062_v16, %v4205_v15  ;;  %v6225_v8 = vld [vmem:[#allocation10 + $0x274] sm:$0xf]  ;;  %v6162_v36 = vld [vmem:[#allocation10 + $0x74] sm:$0xf0] }
  0x99   :  { %991 = vmatpush.bf16.msra.mxu0 %v4326_v26  ;;  %v6056_v26 = vld [vmem:[#allocation7 + $0x24] sm:$0xf0]  ;;  %v4866_v16 = vor.u32 %v6225_v8, %v4863_v9  ;;  %v6213_v30 = vld [vmem:[#allocation10 + $0x214] sm:$0xf]  ;;  %v4575_v53 = vld [vmem:[#allocation10 + $0x48] sm:$0xf0] }
  0x9a   :  { %1004 = vmatpush.bf16.msra.mxu1 %v4518_v27  ;;  %v4398_v27 = vor.u32 %v6110_v19, %v4397_v17  ;;  %v4837_v15 = vld [vmem:[#allocation10 + $0x240] sm:$0xf]  ;;  %v6222_v17 = vld [vmem:[#allocation10 + $0x254] sm:$0xf0]  ;;  %v4647_v19 = vld [vmem:[#allocation10 + $0xd8] sm:$0xf0] }
  0x9b   :  { %1017 = vmatpush.bf16.msra.mxu2 %v4330_v28  ;;  %v4210_v28 = vor.u32 %v6059_v20, %v4207_v21  ;;  %v6219_v20 = vld [vmem:[#allocation10 + $0x244] sm:$0xf]  ;;  %v4839_v21 = vld [vmem:[#allocation10 + $0x258] sm:$0xf0]  ;;  %v4789_v37 = vld [vmem:[#allocation10 + $0x1e0] sm:$0xf] }
  0x9c   :  { %1030 = vmatpush.bf16.msra.mxu3 %v4522_v32  ;;  %v4402_v32 = vor.u32 %v6107_v22, %v4399_v23  ;;  %v4838_v22 = vor.u32 %v6222_v17, %v4837_v15  ;;  %v4621_v23 = vld [vmem:[#allocation10 + $0x90] sm:$0xf]  ;;  %v4767_v56 = vld [vmem:[#allocation10 + $0x1c8] sm:$0xf0]  ;;  %v6150_v59 = vld [vmem:[#allocation10 + $0x14] sm:$0xf0] }
  0x9d   :  { %992 = vmatpush.bf16.msra.mxu0 %v4302_v38  ;;  %v4909_v38 = vld [vmem:[#allocation10 + $0x2d0] sm:$0xf]  ;;  %v4917_v8 = vld [vmem:[#allocation10 + $0x2d8] sm:$0xf]  ;;  %v6238_v15 = vld [vmem:[#allocation10 + $0x2dc] sm:$0xf] }
  0x9e   :  { %1005 = vmatpush.bf16.msra.mxu1 %v4494_v39  ;;  %v4182_v39 = vor.u32 %v6056_v26, %v4181_v25  ;;  %v4813_v25 = vld [vmem:[#allocation10 + $0x210] sm:$0xf]  ;;  %v4842_v26 = vor.u32 %v6219_v20, %v4839_v21  ;;  %s4144_s2 = sshll.u32 %s7003_s6, 4  ;;  %s7429_s14 = sld [smem:[#allocation43_spill]]  ;;  %s4145_s2 = int_to_ptr.vmem [resolvable:$true] %s4144_s2 }
  0x9f   :  { %1018 = vmatpush.bf16.msra.mxu2 %v4306_v40  ;;  %v6240_v40 = vld [vmem:[#allocation10 + $0x2e4] sm:$0xf0]  ;;  %v1066_v20 = vld [vmem:[#allocation5 + $0x8] sm:$0xff] }
  0xa0   :  { %1031 = vmatpush.bf16.msra.mxu3 %v4498_v44  ;;  %v4186_v44 = vor.u32 %v6053_v31, %v4183_v33  ;;  %v4910_v49 = vor.u32 %v6240_v40, %v4909_v38  ;;  %v4815_v31 = vld [vmem:[#allocation10 + $0x228] sm:$0xf0]  ;;  %v6159_v40 = vld [vmem:[#allocation10 + $0x64] sm:$0xf] }
  0xa1   :  { %993 = vmatpush.bf16.msra.mxu0 %v4278_v50  ;;  %v4722_v50 = vor.u32 %v6189_v41, %v4719_v42  ;;  %v4818_v38 = vor.u32 %v6213_v30, %v4815_v31  ;;  %v4599_v41 = vld [vmem:[#allocation10 + $0x78] sm:$0xf0]  ;;  %v6207_v42 = vld [vmem:[#allocation10 + $0x1e4] sm:$0xf]  ;;  %v1065_v17 = vld [vmem:[#allocation5] sm:$0xff]  ;;  %v7195_v31 = vpack.c.bf16 %v1066_v20, %v1066_v20 }
  0xa2   :  { %1006 = vmatpush.bf16.msra.mxu1 %v4470_v51  ;;  %v4693_v51 = vld [vmem:[#allocation10 + $0x120] sm:$0xf]  ;;  %v4602_v46 = vor.u32 %v6159_v40, %v4599_v41  ;;  %v4895_v30 = vld [vmem:[#allocation10 + $0x2c0] sm:$0xf0]  ;;  %v6178_v40 = vld [vmem:[#allocation10 + $0xfc] sm:$0xf] }
  0xa3   :  { %1019 = vmatpush.bf16.msra.mxu2 %v4282_v52  ;;  %v6186_v52 = vld [vmem:[#allocation10 + $0x134] sm:$0xf0]  ;;  %v4679_v41 = vld [vmem:[#allocation10 + $0x110] sm:$0xf0] }
  0xa4   :  { %1032 = vmatpush.bf16.msra.mxu3 %v4474_v57  ;;  %v6183_v57 = vld [vmem:[#allocation10 + $0x124] sm:$0xf]  ;;  %v4694_v61 = vor.u32 %v6186_v52, %v4693_v51  ;;  %v6204_v51 = vld [vmem:[#allocation10 + $0x1c4] sm:$0xf0]  ;;  %v6153_v52 = vld [vmem:[#allocation10 + $0x34] sm:$0xf] }
  0xa5   :  { %994 = vmatpush.bf16.msra.mxu0 %v4254_v63  ;;  %v4698_v63 = vor.u32 %v6183_v57, %v4695_v58  ;;  %v4549_v58 = vld [vmem:[#allocation10] sm:$0xf]  ;;  %s4146_s8 = sshll.u32 %s7429_s14, 4  ;;  %s4147_s8 = int_to_ptr.hbm [resolvable:$true] %s4146_s8 }
  0xa6   :  { %1007 = vmatpush.bf16.msra.mxu1 %v4446_v1  ;;  %v6180_v1 = vld [vmem:[#allocation10 + $0x104] sm:$0xf0]  ;;  %v4550_v9 = vor.u32 %v6150_v59, %v4549_v58 }
  0xa7   :  { %1020 = vmatpush.bf16.msra.mxu2 %v4258_v2  ;;  %v4861_v2 = vld [vmem:[#allocation10 + $0x270] sm:$0xf]  ;;  %v4670_v10 = vor.u32 %v6180_v1, %v4669_v0  ;;  %v6147_v0 = vld [vmem:[#allocation10 + $0x4] sm:$0xf] }
  0xa8   :  { %1033 = vmatpush.bf16.msra.mxu3 %v4450_v7  ;;  %v4671_v7 = vld [vmem:[#allocation10 + $0x108] sm:$0xf0]  ;;  %v4862_v11 = vor.u32 %v6228_v5, %v4861_v2  ;;  %v4551_v2 = vld [vmem:[#allocation10 + $0x18] sm:$0xf0] }
  0xa9   :  { %995 = vmatpush.bf16.msra.mxu0 %v4230_v12  ;;  %v4674_v12 = vor.u32 %v6177_v6, %v4671_v7  ;;  %v4743_v5 = vld [vmem:[#allocation10 + $0x198] sm:$0xf0]  ;;  %v4725_v6 = vld [vmem:[#allocation10 + $0x158] sm:$0xf]  ;;  %v6193_v7 = vld [vmem:[#allocation10 + $0x16c] sm:$0xf0] }
  0xaa   :  { %1008 = vmatpush.bf16.msra.mxu1 %v4422_v13  ;;  %v4645_v13 = vld [vmem:[#allocation10 + $0xc0] sm:$0xf] }
  0xab   :  { %1021 = vmatpush.bf16.msra.mxu2 %v4234_v14  ;;  %v6174_v14 = vld [vmem:[#allocation10 + $0xd4] sm:$0xf0] }
  0xac   :  { %1034 = vmatpush.bf16.msra.mxu3 %v4426_v18  ;;  %v6171_v18 = vld [vmem:[#allocation10 + $0xc4] sm:$0xf] }
  0xad   :  { %996 = vmatpush.bf16.msra.mxu0 %v4206_v24  ;;  %v6168_v24 = vld [vmem:[#allocation10 + $0xa4] sm:$0xf0] }
  0xae   :  { %1009 = vmatpush.bf16.msra.mxu1 %v4398_v27  ;;  %v6216_v27 = vld [vmem:[#allocation10 + $0x224] sm:$0xf0] }
  0xaf   :  { %1022 = vmatpush.bf16.msra.mxu2 %v4210_v28  ;;  %v6165_v28 = vld [vmem:[#allocation10 + $0x94] sm:$0xf]  ;;  %v4814_v33 = vor.u32 %v6216_v27, %v4813_v25  ;;  %v6235_v25 = vld [vmem:[#allocation10 + $0x2bc] sm:$0xf0]  ;;  %v4703_v27 = vld [vmem:[#allocation10 + $0x140] sm:$0xf0] }
  0xb0   :  { %1035 = vmatpush.bf16.msra.mxu3 %v4402_v32  ;;  %v4622_v32 = vor.u32 %v6168_v24, %v4621_v23  ;;  %v4626_v34 = vor.u32 %v6165_v28, %v4623_v29  ;;  %v4893_v23 = vld [vmem:[#allocation10 + $0x2a8] sm:$0xf]  ;;  %v7193_v28 = vpack.c.bf16 %v1065_v17, %v1065_v17  ;;  %v6232_v29 = vld [vmem:[#allocation10 + $0x2ac] sm:$0xf]  ;;  %v4799_v17 = vld [vmem:[#allocation10 + $0x200] sm:$0xf0] }
  0xb1   :  { %997 = vmatpush.bf16.msra.mxu0 %v4182_v39  ;;  %v6210_v39 = vld [vmem:[#allocation10 + $0x1f4] sm:$0xf0] }
  0xb2   :  { %1010 = vmatpush.bf16.msra.mxu1 %v4374_v43  ;;  %v4791_v43 = vld [vmem:[#allocation10 + $0x1f8] sm:$0xf0]  ;;  %v4790_v45 = vor.u32 %v6210_v39, %v4789_v37  ;;  %v4869_v37 = vld [vmem:[#allocation10 + $0x278] sm:$0xf]  ;;  %v6229_v39 = vld [vmem:[#allocation10 + $0x28c] sm:$0xf0] }
  0xb3   :  { %1023 = vmatpush.bf16.msra.mxu2 %v4186_v44  ;;  %v4598_v44 = vor.u32 %v6162_v36, %v4597_v35  ;;  %v4677_v35 = vld [vmem:[#allocation10 + $0xf8] sm:$0xf]  ;;  %v6181_v36 = vld [vmem:[#allocation10 + $0x10c] sm:$0xf0] }
  0xb4   :  { %1036 = vmatpush.bf16.msra.mxu3 %v4378_v47  ;;  %998 = vmatmul.bf16.vlgmr.msra.gmra.mxu0 %v7177_v55  ;;  %v4573_v47 = vld [vmem:[#allocation10 + $0x30] sm:$0xf] }
  0xb5   :  { %1659 = vmatpush.bf16.msrb.mxu0 %v4718_v48  ;;  %1011 = vmatmul.bf16.vlgmr.msra.gmra.mxu1 %v7180_v3  ;;  %v6156_v48 = vld [vmem:[#allocation10 + $0x44] sm:$0xf0] }
  0xb6   :  { %1672 = vmatpush.bf16.msrb.mxu1 %v4910_v49  ;;  %1024 = vmatmul.bf16.vlgmr.msra.gmra.mxu2 %v7177_v55  ;;  %v4646_v55 = vor.u32 %v6174_v14, %v4645_v13  ;;  %v4765_v49 = vld [vmem:[#allocation10 + $0x1b0] sm:$0xf]  ;;  %v4574_v57 = vor.u32 %v6156_v48, %v4573_v47  ;;  %v4554_v14 = vor.u32 %v6147_v0, %v4551_v2  ;;  %v4653_v47 = vld [vmem:[#allocation10 + $0xc8] sm:$0xf]  ;;  %v6175_v48 = vld [vmem:[#allocation10 + $0xdc] sm:$0xf0] }
  0xb7   :  { %1685 = vmatpush.bf16.msrb.mxu2 %v4722_v50  ;;  %1037 = vmatmul.bf16.vlgmr.msra.gmra.mxu3 %v7180_v3  ;;  %v4650_v3 = vor.u32 %v6171_v18, %v4647_v19  ;;  %v4794_v50 = vor.u32 %v6207_v42, %v4791_v43  ;;  %v4766_v60 = vor.u32 %v6204_v51, %v4765_v49  ;;  %v6226_v42 = vld [vmem:[#allocation10 + $0x27c] sm:$0xf]  ;;  %v4871_v43 = vld [vmem:[#allocation10 + $0x290] sm:$0xf0]  ;;  %v4845_v49 = vld [vmem:[#allocation10 + $0x248] sm:$0xf] }
  0xb8   :  { %1698 = vmatpush.bf16.msrb.mxu3 %v4914_v54  ;;  %v6201_v54 = vld [vmem:[#allocation10 + $0x1b4] sm:$0xf]  ;;  %v4726_v19 = vor.u32 %v6193_v7, %v4725_v6  ;;  %v6223_v51 = vld [vmem:[#allocation10 + $0x25c] sm:$0xf0]  ;;  %v6217_v0 = vld [vmem:[#allocation10 + $0x22c] sm:$0xf0] }
  0xb9   :  { %1660 = vmatpush.bf16.msrb.mxu0 %v4694_v61  ;;  %v4578_v61 = vor.u32 %v6153_v52, %v4575_v53  ;;  %v4770_v1 = vor.u32 %v6201_v54, %v4767_v56  ;;  %v6172_v52 = vld [vmem:[#allocation10 + $0xcc] sm:$0xf]  ;;  %v4655_v53 = vld [vmem:[#allocation10 + $0xe0] sm:$0xf0]  ;;  %v4846_v58 = vor.u32 %v6223_v51, %v4845_v49  ;;  %v4631_v2 = vld [vmem:[#allocation10 + $0xb0] sm:$0xf0] }
  0xba   :  { %1673 = vmatpush.bf16.msrb.mxu1 %v4886_v62  ;;  %v4741_v62 = vld [vmem:[#allocation10 + $0x180] sm:$0xf]  ;;  %v6220_v54 = vld [vmem:[#allocation10 + $0x24c] sm:$0xf]  ;;  %v4847_v56 = vld [vmem:[#allocation10 + $0x260] sm:$0xf0]  ;;  %v4658_v59 = vor.u32 %v6172_v52, %v4655_v53 }
  0xbb   :  { %1686 = vmatpush.bf16.msrb.mxu2 %v4698_v63  ;;  %v6198_v63 = vld [vmem:[#allocation10 + $0x194] sm:$0xf0] }
  0xbc   :  { %1699 = vmatpush.bf16.msrb.mxu3 %v4890_v4  ;;  %v6195_v4 = vld [vmem:[#allocation10 + $0x184] sm:$0xf]  ;;  %v4742_v13 = vor.u32 %v6198_v63, %v4741_v62  ;;  %v4821_v62 = vld [vmem:[#allocation10 + $0x218] sm:$0xf]  ;;  %v4850_v63 = vor.u32 %v6220_v54, %v4847_v56 }
  0xbd   :  { %1661 = vmatpush.bf16.msrb.mxu0 %v4670_v10  ;;  %v6241_v10 = vld [vmem:[#allocation10 + $0x2ec] sm:$0xf0]  ;;  %v4746_v18 = vor.u32 %v6195_v4, %v4743_v5  ;;  %v6214_v4 = vld [vmem:[#allocation10 + $0x21c] sm:$0xf]  ;;  %v4823_v5 = vld [vmem:[#allocation10 + $0x230] sm:$0xf0]  ;;  %v4822_v7 = vor.u32 %v6217_v0, %v4821_v62 }
  0xbe   :  { %1674 = vmatpush.bf16.msrb.mxu1 %v4862_v11  ;;  %v6190_v11 = vld [vmem:[#allocation10 + $0x15c] sm:$0xf]  ;;  %v4918_v21 = vor.u32 %v6241_v10, %v4917_v8  ;;  %v6163_v10 = vld [vmem:[#allocation10 + $0x7c] sm:$0xf0] }
  0xbf   :  { %1687 = vmatpush.bf16.msrb.mxu2 %v4674_v12  ;;  %v4727_v12 = vld [vmem:[#allocation10 + $0x170] sm:$0xf0]  ;;  %v392_v54 = vld [vmem:[#allocation8] sm:$0x3f] }
  0xc0   :  { %1700 = vmatpush.bf16.msrb.mxu3 %v4866_v16  ;;  %v4919_v16 = vld [vmem:[#allocation10 + $0x2f0] sm:$0xf0]  ;;  %v394_v56 = vperm.slane %v392_v54, 0 }
  0xc1   :  { %1662 = vmatpush.bf16.msrb.mxu0 %v4646_v55  ;;  %v4730_v55 = vor.u32 %v6190_v11, %v4727_v12  ;;  %v4922_v24 = vor.u32 %v6238_v15, %v4919_v16  ;;  %v4797_v11 = vld [vmem:[#allocation10 + $0x1e8] sm:$0xf]  ;;  %v4826_v12 = vor.u32 %v6214_v4, %v4823_v5  ;;  %v4607_v15 = vld [vmem:[#allocation10 + $0x80] sm:$0xf0]  ;;  %v6208_v16 = vld [vmem:[#allocation10 + $0x1ec] sm:$0xf] }
  0xc2   :  { %1675 = vmatpush.bf16.msrb.mxu1 %v4838_v22  ;;  %v4701_v22 = vld [vmem:[#allocation10 + $0x128] sm:$0xf] }
  0xc3   :  { %1688 = vmatpush.bf16.msrb.mxu2 %v4650_v3  ;;  %v6187_v3 = vld [vmem:[#allocation10 + $0x13c] sm:$0xf0] }
  0xc4   :  { %1701 = vmatpush.bf16.msrb.mxu3 %v4842_v26  ;;  %v6184_v26 = vld [vmem:[#allocation10 + $0x12c] sm:$0xf] }
  0xc5   :  { %1663 = vmatpush.bf16.msrb.mxu0 %v4622_v32  ;;  %v4702_v32 = vor.u32 %v6187_v3, %v4701_v22  ;;  %v4773_v22 = vld [vmem:[#allocation10 + $0x1b8] sm:$0xf]  ;;  %v4802_v3 = vor.u32 %v6208_v16, %v4799_v17 }
  0xc6   :  { %1676 = vmatpush.bf16.msrb.mxu1 %v4814_v33  ;;  %v4894_v33 = vor.u32 %v6235_v25, %v4893_v23  ;;  %v6205_v23 = vld [vmem:[#allocation10 + $0x1cc] sm:$0xf0]  ;;  %v4583_v25 = vld [vmem:[#allocation10 + $0x50] sm:$0xf0] }
  0xc7   :  { %1689 = vmatpush.bf16.msrb.mxu2 %v4626_v34  ;;  %v4706_v34 = vor.u32 %v6184_v26, %v4703_v27  ;;  %v6202_v26 = vld [vmem:[#allocation10 + $0x1bc] sm:$0xf]  ;;  %v4775_v27 = vld [vmem:[#allocation10 + $0x1d0] sm:$0xf0] }
  0xc8   :  { %1702 = vmatpush.bf16.msrb.mxu3 %v4818_v38  ;;  %v4898_v38 = vor.u32 %v6232_v29, %v4895_v30  ;;  %v4774_v30 = vor.u32 %v6205_v23, %v4773_v22 }
  0xc9   :  { %1664 = vmatpush.bf16.msrb.mxu0 %v4598_v44  ;;  %v4678_v44 = vor.u32 %v6181_v36, %v4677_v35  ;;  %v4749_v35 = vld [vmem:[#allocation10 + $0x188] sm:$0xf]  ;;  %v4778_v36 = vor.u32 %v6202_v26, %v4775_v27 }
  0xca   :  { %1677 = vmatpush.bf16.msrb.mxu1 %v4790_v45  ;;  %v4870_v45 = vor.u32 %v6229_v39, %v4869_v37  ;;  %v6199_v37 = vld [vmem:[#allocation10 + $0x19c] sm:$0xf0]  ;;  %v4559_v39 = vld [vmem:[#allocation10 + $0x20] sm:$0xf0] }
  0xcb   :  { %1690 = vmatpush.bf16.msrb.mxu2 %v4602_v46  ;;  %v4682_v46 = vor.u32 %v6178_v40, %v4679_v41  ;;  %v6196_v40 = vld [vmem:[#allocation10 + $0x18c] sm:$0xf]  ;;  %v4751_v41 = vld [vmem:[#allocation10 + $0x1a0] sm:$0xf0] }
  0xcc   :  { %1703 = vmatpush.bf16.msrb.mxu3 %v4794_v50  ;;  %v4874_v50 = vor.u32 %v6226_v42, %v4871_v43  ;;  %v4750_v43 = vor.u32 %v6199_v37, %v4749_v35 }
  0xcd   :  { %1665 = vmatpush.bf16.msrb.mxu0 %v4574_v57  ;;  %v4654_v57 = vor.u32 %v6175_v48, %v4653_v47 }
  0xce   :  { %1678 = vmatpush.bf16.msrb.mxu1 %v4766_v60  ;;  %v4629_v60 = vld [vmem:[#allocation10 + $0x98] sm:$0xf] }
  0xcf   :  { %1691 = vmatpush.bf16.msrb.mxu2 %v4578_v61  ;;  %v6169_v61 = vld [vmem:[#allocation10 + $0xac] sm:$0xf0] }
  0xd0   :  { %1704 = vmatpush.bf16.msrb.mxu3 %v4770_v1  ;;  %v6166_v1 = vld [vmem:[#allocation10 + $0x9c] sm:$0xf]  ;;  %v4630_v6 = vor.u32 %v6169_v61, %v4629_v60 }
  0xd1   :  { %1666 = vmatpush.bf16.msrb.mxu0 %v4550_v9  ;;  %v4634_v8 = vor.u32 %v6166_v1, %v4631_v2  ;;  %v4605_v9 = vld [vmem:[#allocation10 + $0x68] sm:$0xf] }
  0xd2   :  { %1679 = vmatpush.bf16.msrb.mxu1 %v4742_v13  ;;  %v6211_v13 = vld [vmem:[#allocation10 + $0x1fc] sm:$0xf0] }
  0xd3   :  { %1692 = vmatpush.bf16.msrb.mxu2 %v4554_v14  ;;  %v6160_v14 = vld [vmem:[#allocation10 + $0x6c] sm:$0xf] }
  0xd4   :  { %1705 = vmatpush.bf16.msrb.mxu3 %v4746_v18  ;;  %1667 = vmatmul.bf16.vlgmr.msrb.gmra.mxu0 %v7193_v28  ;;  %v4606_v18 = vor.u32 %v6163_v10, %v4605_v9  ;;  %v4610_v20 = vor.u32 %v6160_v14, %v4607_v15 }
  0xd5   :  { %1711 = vmatpush.bf16.msra.mxu0 %v4726_v19  ;;  %1680 = vmatmul.bf16.vlgmr.msrb.gmra.mxu1 %v7195_v31  ;;  %v4798_v19 = vor.u32 %v6211_v13, %v4797_v11 }
  0xd6   :  { %1724 = vmatpush.bf16.msra.mxu1 %v4918_v21  ;;  %1693 = vmatmul.bf16.vlgmr.msrb.gmra.mxu2 %v7193_v28  ;;  %v4581_v21 = vld [vmem:[#allocation10 + $0x38] sm:$0xf] }
  0xd7   :  { %1737 = vmatpush.bf16.msra.mxu2 %v4730_v55  ;;  %1706 = vmatmul.bf16.vlgmr.msrb.gmra.mxu3 %v7195_v31  ;;  %v6157_v55 = vld [vmem:[#allocation10 + $0x4c] sm:$0xf0] }
  0xd8   :  { %1750 = vmatpush.bf16.msra.mxu3 %v4922_v24  ;;  %v6154_v24 = vld [vmem:[#allocation10 + $0x3c] sm:$0xf]  ;;  %v4582_v29 = vor.u32 %v6157_v55, %v4581_v21  ;;  %v399_v55 = vperm.slane %v392_v54, 5 }
  0xd9   :  { %1712 = vmatpush.bf16.msra.mxu0 %v4702_v32  ;;  %v4586_v32 = vor.u32 %v6154_v24, %v4583_v25 }
  0xda   :  { %1725 = vmatpush.bf16.msra.mxu1 %v4894_v33  ;;  %v4557_v33 = vld [vmem:[#allocation10 + $0x8] sm:$0xf] }
  0xdb   :  { %1738 = vmatpush.bf16.msra.mxu2 %v4706_v34  ;;  %v6151_v34 = vld [vmem:[#allocation10 + $0x1c] sm:$0xf0] }
  0xdc   :  { %1751 = vmatpush.bf16.msra.mxu3 %v4898_v38  ;;  %v6148_v38 = vld [vmem:[#allocation10 + $0xc] sm:$0xf]  ;;  %v4558_v42 = vor.u32 %v6151_v34, %v4557_v33 }
  0xdd   :  { %1713 = vmatpush.bf16.msra.mxu0 %v4678_v44  ;;  %v4562_v44 = vor.u32 %v6148_v38, %v4559_v39 }
  0xde   :  { %1726 = vmatpush.bf16.msra.mxu1 %v4870_v45  ;;  %v4754_v45 = vor.u32 %v6196_v40, %v4751_v41  ;;  %v7215_v40 = vld [vmem:[#allocation11] sm:$0x3f] }
  0xdf   :  { %1739 = vmatpush.bf16.msra.mxu2 %v4682_v46  ;;  %v1169_v41 = vperm.slane %v7215_v40, 2 }
  0xe0   :  { %1752 = vmatpush.bf16.msra.mxu3 %v4874_v50 }
  0xe1   :  { %1714 = vmatpush.bf16.msra.mxu0 %v4654_v57  ;;  %v396_v57 = vperm.slane %v392_v54, 2 }
  0xe2   :  { %1727 = vmatpush.bf16.msra.mxu1 %v4846_v58 }
  0xe3   :  { %1740 = vmatpush.bf16.msra.mxu2 %v4658_v59  ;;  %v395_v59 = vperm.slane %v392_v54, 1 }
  0xe4   :  { %1753 = vmatpush.bf16.msra.mxu3 %v4850_v63  ;;  %v397_v63 = vperm.slane %v392_v54, 3 }
  0xe5   :  { %1715 = vmatpush.bf16.msra.mxu0 %v4630_v6 }
  0xe6   :  { %1728 = vmatpush.bf16.msra.mxu1 %v4822_v7 }
  0xe7   :  { %1741 = vmatpush.bf16.msra.mxu2 %v4634_v8 }
  0xe8   :  { %1754 = vmatpush.bf16.msra.mxu3 %v4826_v12 }
  0xe9   :  { %1716 = vmatpush.bf16.msra.mxu0 %v4606_v18  ;;  %v398_v18 = vperm.slane %v392_v54, 4 }
  0xea   :  { %1729 = vmatpush.bf16.msra.mxu1 %v4798_v19 }
  0xeb   :  { %1742 = vmatpush.bf16.msra.mxu2 %v4610_v20 }
  0xec   :  { %1755 = vmatpush.bf16.msra.mxu3 %v4802_v3 }
  0xed   :  { %1717 = vmatpush.bf16.msra.mxu0 %v4582_v29 }
  0xee   :  { %1730 = vmatpush.bf16.msra.mxu1 %v4774_v30 }
  0xef   :  { %1743 = vmatpush.bf16.msra.mxu2 %v4586_v32 }
  0xf0   :  { %1756 = vmatpush.bf16.msra.mxu3 %v4778_v36 }
  0xf1   :  { %1718 = vmatpush.bf16.msra.mxu0 %v4558_v42  ;;  %v895_v46 = vpop.f32.mrf.mxu0  ;;  %v1167_v42 = vperm.slane %v7215_v40, 0 }
  0xf2   :  { %1731 = vmatpush.bf16.msra.mxu1 %v4750_v43  ;;  %v908_v47 = vpop.f32.mrf.mxu1  ;;  %v896_v58 = vadd.f32 %v895_v46, %v394_v56 }
  0xf3   :  { %1744 = vmatpush.bf16.msra.mxu2 %v4562_v44 }
  0xf4   :  { %1757 = vmatpush.bf16.msra.mxu3 %v4754_v45  ;;  %1719 = vmatmul.bf16.vlgmr.msra.gmra.mxu0 %v7193_v28  ;;  %v909_v0 = vadd.f32 %v908_v47, %v896_v58  ;;  %v1168_v45 = vperm.slane %v7215_v40, 1 }
  0xf5   :  { %1732 = vmatmul.bf16.vlgmr.msra.gmra.mxu1 %v7195_v31 }
  0xf6   :  { %1745 = vmatmul.bf16.vlgmr.msra.gmra.mxu2 %v7193_v28 }
  0xf7   :  { %1758 = vmatmul.bf16.vlgmr.msra.gmra.mxu3 %v7195_v31 }
  0xf9   :  { %v921_v48 = vpop.f32.mrf.mxu2  ;;  %v897_v49 = vpop.f32.mrf.mxu0 }
  0xfa   :  { %v934_v50 = vpop.f32.mrf.mxu3  ;;  %v910_v51 = vpop.f32.mrf.mxu1  ;;  %v922_v1 = vadd.f32 %v921_v48, %v395_v59  ;;  %v1170_v48 = vperm.slane %v7215_v40, 3 }
  0xfc   :  { %v935_v7 = vadd.f32 %v934_v50, %v922_v1 }
 0x101   :  { %v923_v52 = vpop.f32.mrf.mxu2 }
 0x102   :  { %v936_v53 = vpop.f32.mrf.mxu3 }
 0x111   :  { %v947_v60 = vpop.f32.mrf.mxu0 }
 0x112   :  { %v948_v61 = vadd.f32 %v947_v60, %v396_v57  ;;  %v960_v62 = vpop.f32.mrf.mxu1 }
 0x114   :  { %v961_v2 = vadd.f32 %v960_v62, %v948_v61 }
 0x116   :  { %v1042_v9 = vmul.f32 %v961_v2, %v909_v0 }
 0x118   :  { %v7205_v13 = vmul.f32 0.0625, %v1042_v9  ;;  %v4733_v9 = vld [vmem:[#allocation10 + $0x160] sm:$0xf] }
 0x119   :  { %v973_v4 = vpop.f32.mrf.mxu2  ;;  %v949_v10 = vpop.f32.mrf.mxu0 }
 0x11a   :  { %v974_v5 = vadd.f32 %v973_v4, %v397_v63  ;;  %v986_v6 = vpop.f32.mrf.mxu3  ;;  %v962_v11 = vpop.f32.mrf.mxu1  ;;  %v6191_v4 = vld [vmem:[#allocation10 + $0x164] sm:$0xf]  ;;  %v6194_v10 = vld [vmem:[#allocation10 + $0x174] sm:$0xf0] }
 0x11c   :  { %v987_v8 = vadd.f32 %v986_v6, %v974_v5  ;;  %v4735_v5 = vld [vmem:[#allocation10 + $0x178] sm:$0xf0]  ;;  %v6239_v6 = vld [vmem:[#allocation10 + $0x2e4] sm:$0xf] }
 0x11e   :  { %v1043_v12 = vmul.f32 %v987_v8, %v935_v7  ;;  %v4738_v7 = vor.u32 %v6191_v4, %v4735_v5  ;;  %v4927_v8 = vld [vmem:[#allocation10 + $0x2f8] sm:$0xf0]  ;;  %v4829_v4 = vld [vmem:[#allocation10 + $0x220] sm:$0xf]  ;;  %v6218_v5 = vld [vmem:[#allocation10 + $0x234] sm:$0xf0] }
 0x11f   :  { %v4930_v11 = vor.u32 %v6239_v6, %v4927_v8  ;;  %v6161_v8 = vld [vmem:[#allocation10 + $0x74] sm:$0xf] }
 0x120   :  { %v7207_v14 = vmul.f32 0.0625, %v1043_v12  ;;  %v4734_v12 = vor.u32 %v6194_v10, %v4733_v9  ;;  %1789 = vmatpush.bf16.msrb.mxu2 %v4738_v7  ;;  %v4615_v9 = vld [vmem:[#allocation10 + $0x88] sm:$0xf0]  ;;  %v6209_v10 = vld [vmem:[#allocation10 + $0x1f4] sm:$0xf] }
 0x121   :  { %v975_v15 = vpop.f32.mrf.mxu2  ;;  %1802 = vmatpush.bf16.msrb.mxu3 %v4930_v11 }
 0x122   :  { %v1046_v16 = vmax.f32 %v7205_v13, %v7207_v14  ;;  %v988_v17 = vpop.f32.mrf.mxu3  ;;  %v6185_v15 = vld [vmem:[#allocation10 + $0x134] sm:$0xf]  ;;  %1763 = vmatpush.bf16.msrb.mxu0 %v4734_v12  ;;  %v4807_v12 = vld [vmem:[#allocation10 + $0x208] sm:$0xf0] }
 0x123   :  { %v4925_v17 = vld [vmem:[#allocation10 + $0x2e0] sm:$0xf] }
 0x124   :  { %1047 = vmax.xlane.f32.xlu0 %v1046_v16  ;;  %v4711_v16 = vld [vmem:[#allocation10 + $0x148] sm:$0xf0] }
 0x131   :  { %v999_v19 = vpop.f32.mrf.mxu0 }
 0x132   :  { %v1000_v20 = vadd.f32 %v999_v19, %v398_v18  ;;  %v1012_v21 = vpop.f32.mrf.mxu1  ;;  %v4714_v18 = vor.u32 %v6185_v15, %v4711_v16  ;;  %v6242_v19 = vld [vmem:[#allocation10 + $0x2f4] sm:$0xf0]  ;;  %v4613_v15 = vld [vmem:[#allocation10 + $0x70] sm:$0xf]  ;;  %v6164_v16 = vld [vmem:[#allocation10 + $0x84] sm:$0xf0] }
 0x134   :  { %v7211_v22 = vadd.f32 %v1012_v21, %v1000_v20  ;;  %v6233_v20 = vld [vmem:[#allocation10 + $0x2b4] sm:$0xf]  ;;  %v4903_v21 = vld [vmem:[#allocation10 + $0x2c8] sm:$0xf0]  ;;  %1790 = vmatpush.bf16.msrb.mxu2 %v4714_v18 }
 0x139   :  { %v1025_v3 = vpop.f32.mrf.mxu2  ;;  %v1001_v26 = vpop.f32.mrf.mxu0 }
 0x13a   :  { %v1026_v23 = vadd.f32 %v1025_v3, %v399_v55  ;;  %v1038_v24 = vpop.f32.mrf.mxu3  ;;  %v1014_v27 = vpop.f32.mrf.mxu1  ;;  %v4926_v55 = vor.u32 %v6242_v19, %v4925_v17  ;;  %v4906_v3 = vor.u32 %v6233_v20, %v4903_v21  ;;  %v6179_v26 = vld [vmem:[#allocation10 + $0x104] sm:$0xf]  ;;  %v4830_v19 = vor.u32 %v6218_v5, %v4829_v4  ;;  %v6273_v5 = vld [vmem:[#allocation13 + $0xf4] sm:$0xf] }
 0x13b   :  { %v6155_v20 = vld [vmem:[#allocation10 + $0x44] sm:$0xf]  ;;  %v4618_v21 = vor.u32 %v6161_v8, %v4615_v9  ;;  %v6256_v9 = vld [vmem:[#allocation13 + $0x64] sm:$0xf0] }
 0x13c   :  { %v7213_v25 = vadd.f32 %v1038_v24, %v1026_v23  ;;  %v4709_v23 = vld [vmem:[#allocation10 + $0x130] sm:$0xf]  ;;  %v6188_v24 = vld [vmem:[#allocation10 + $0x144] sm:$0xf0]  ;;  %1776 = vmatpush.bf16.msrb.mxu1 %v4926_v55  ;;  %1803 = vmatpush.bf16.msrb.mxu3 %v4906_v3  ;;  %v4591_v55 = vld [vmem:[#allocation10 + $0x58] sm:$0xf0] }
 0x13d   :  { %v4710_v27 = vor.u32 %v6188_v24, %v4709_v23  ;;  %v4805_v3 = vld [vmem:[#allocation10 + $0x1f0] sm:$0xf]  ;;  %v6212_v23 = vld [vmem:[#allocation10 + $0x204] sm:$0xf0] }
 0x13f   :  { %1764 = vmatpush.bf16.msrb.mxu0 %v4710_v27  ;;  %v4810_v27 = vor.u32 %v6209_v10, %v4807_v12  ;;  %v5045_v10 = vld [vmem:[#allocation13 + $0xe0] sm:$0xf]  ;;  %v6255_v12 = vld [vmem:[#allocation13 + $0x64] sm:$0xf] }
 0x141   :  { %v1027_v29 = vpop.f32.mrf.mxu2 }
 0x142   :  { %v1040_v30 = vpop.f32.mrf.mxu3  ;;  %v4687_v29 = vld [vmem:[#allocation10 + $0x118] sm:$0xf0] }
 0x143   :  { %v4901_v30 = vld [vmem:[#allocation10 + $0x2b0] sm:$0xf] }
 0x151   :  { %v1668_v32 = vpop.f32.mrf.mxu0 }
 0x152   :  { %v1681_v33 = vpop.f32.mrf.mxu1  ;;  %v1669_v47 = vadd.f32 %v1668_v32, %v1167_v42  ;;  %v6236_v32 = vld [vmem:[#allocation10 + $0x2c4] sm:$0xf0] }
 0x154   :  { %v1682_v52 = vadd.f32 %v1681_v33, %v1669_v47  ;;  %v4902_v33 = vor.u32 %v6236_v32, %v4901_v30  ;;  %v4855_v47 = vld [vmem:[#allocation10 + $0x268] sm:$0xf0]  ;;  %v6203_v30 = vld [vmem:[#allocation10 + $0x1c4] sm:$0xf]  ;;  %v4783_v32 = vld [vmem:[#allocation10 + $0x1d8] sm:$0xf0] }
 0x156   :  { %1777 = vmatpush.bf16.msrb.mxu1 %v4902_v33  ;;  %v4589_v33 = vld [vmem:[#allocation10 + $0x40] sm:$0xf] }
 0x159   :  { %v1694_v34 = vpop.f32.mrf.mxu2  ;;  %v1670_v36 = vpop.f32.mrf.mxu0 }
 0x15a   :  { %v1707_v35 = vpop.f32.mrf.mxu3  ;;  %v1683_v37 = vpop.f32.mrf.mxu1  ;;  %v1695_v49 = vadd.f32 %v1694_v34, %v1168_v45  ;;  %v6227_v34 = vld [vmem:[#allocation10 + $0x284] sm:$0xf]  ;;  %v4685_v36 = vld [vmem:[#allocation10 + $0x100] sm:$0xf]  ;;  %v6230_v45 = vld [vmem:[#allocation10 + $0x294] sm:$0xf0] }
 0x15b   :  { %v4690_v37 = vor.u32 %v6179_v26, %v4687_v29  ;;  %v4614_v29 = vor.u32 %v6164_v16, %v4613_v15  ;;  %v4983_v15 = vld [vmem:[#allocation13 + $0x68] sm:$0xf0]  ;;  %v6271_v16 = vld [vmem:[#allocation13 + $0xe4] sm:$0xf] }
 0x15c   :  { %v1708_v58 = vadd.f32 %v1707_v35, %v1695_v49  ;;  %v4879_v35 = vld [vmem:[#allocation10 + $0x298] sm:$0xf0]  ;;  %v6176_v49 = vld [vmem:[#allocation10 + $0xe4] sm:$0xf0] }
 0x15d   :  { %v4882_v42 = vor.u32 %v6227_v34, %v4879_v35  ;;  %1791 = vmatpush.bf16.msrb.mxu2 %v4690_v37  ;;  %v4594_v34 = vor.u32 %v6155_v20, %v4591_v55  ;;  %v4781_v35 = vld [vmem:[#allocation10 + $0x1c0] sm:$0xf]  ;;  %v4786_v37 = vor.u32 %v6203_v30, %v4783_v32  ;;  %v5037_v55 = vld [vmem:[#allocation13 + $0xd0] sm:$0xf] }
 0x15e   :  { %v6254_v20 = vld [vmem:[#allocation13 + $0x54] sm:$0xf0] }
 0x15f   :  { %1804 = vmatpush.bf16.msrb.mxu3 %v4882_v42  ;;  %v6197_v42 = vld [vmem:[#allocation10 + $0x194] sm:$0xf] }
 0x161   :  { %v1696_v38 = vpop.f32.mrf.mxu2 }
 0x162   :  { %v1709_v39 = vpop.f32.mrf.mxu3  ;;  %v6182_v38 = vld [vmem:[#allocation10 + $0x114] sm:$0xf0] }
 0x163   :  { %v6173_v39 = vld [vmem:[#allocation10 + $0xd4] sm:$0xf] }
 0x171   :  { %v1720_v43 = vpop.f32.mrf.mxu0 }
 0x172   :  { %v1733_v44 = vpop.f32.mrf.mxu1  ;;  %v1721_v46 = vadd.f32 %v1720_v43, %v1169_v41  ;;  %v4663_v41 = vld [vmem:[#allocation10 + $0xe8] sm:$0xf0]  ;;  %v4686_v43 = vor.u32 %v6182_v38, %v4685_v36  ;;  %v6206_v36 = vld [vmem:[#allocation10 + $0x1d4] sm:$0xf0] }
 0x174   :  { %v1734_v50 = vadd.f32 %v1733_v44, %v1721_v46  ;;  %v4877_v44 = vld [vmem:[#allocation10 + $0x280] sm:$0xf]  ;;  %v6221_v46 = vld [vmem:[#allocation10 + $0x254] sm:$0xf]  ;;  %1765 = vmatpush.bf16.msrb.mxu0 %v4686_v43  ;;  %v4759_v43 = vld [vmem:[#allocation10 + $0x1a8] sm:$0xf0] }
 0x176   :  { %v1815_v59 = vmul.f32 %v1734_v50, %v1682_v52  ;;  %v4878_v50 = vor.u32 %v6230_v45, %v4877_v44  ;;  %v4853_v52 = vld [vmem:[#allocation10 + $0x250] sm:$0xf]  ;;  %v4782_v44 = vor.u32 %v6206_v36, %v4781_v35  ;;  %v6251_v36 = vld [vmem:[#allocation13 + $0x44] sm:$0xf] }
 0x177   :  { %v4565_v45 = vld [vmem:[#allocation10 + $0x10] sm:$0xf] }
 0x178   :  { %v7221_v62 = vmul.f32 0.0625, %v1815_v59  ;;  %v6215_v59 = vld [vmem:[#allocation10 + $0x224] sm:$0xf]  ;;  %1778 = vmatpush.bf16.msrb.mxu1 %v4878_v50  ;;  %v6268_v35 = vld [vmem:[#allocation13 + $0xc4] sm:$0xf0] }
 0x179   :  { %v1746_v51 = vpop.f32.mrf.mxu2  ;;  %v1722_v56 = vpop.f32.mrf.mxu0 }
 0x17a   :  { %v1747_v53 = vadd.f32 %v1746_v51, %v1170_v48  ;;  %v1759_v54 = vpop.f32.mrf.mxu3  ;;  %v1735_v57 = vpop.f32.mrf.mxu1  ;;  %v4661_v48 = vld [vmem:[#allocation10 + $0xd0] sm:$0xf]  ;;  %v4666_v51 = vor.u32 %v6173_v39, %v4663_v41  ;;  %v6149_v39 = vld [vmem:[#allocation10 + $0x14] sm:$0xf]  ;;  %v4567_v41 = vld [vmem:[#allocation10 + $0x28] sm:$0xf0] }
 0x17b   :  { %v4662_v56 = vor.u32 %v6176_v49, %v4661_v48  ;;  %v6167_v57 = vld [vmem:[#allocation10 + $0xa4] sm:$0xf]  ;;  %v4757_v48 = vld [vmem:[#allocation10 + $0x190] sm:$0xf]  ;;  %v6200_v49 = vld [vmem:[#allocation10 + $0x1a4] sm:$0xf0] }
 0x17c   :  { %v1760_v60 = vadd.f32 %v1759_v54, %v1747_v53  ;;  %v6224_v53 = vld [vmem:[#allocation10 + $0x264] sm:$0xf0]  ;;  %v4858_v54 = vor.u32 %v6221_v46, %v4855_v47  ;;  %1792 = vmatpush.bf16.msrb.mxu2 %v4666_v51  ;;  %v4570_v47 = vor.u32 %v6149_v39, %v4567_v41  ;;  %v4762_v51 = vor.u32 %v6197_v42, %v4759_v43  ;;  %v5031_v39 = vld [vmem:[#allocation13 + $0xc8] sm:$0xf0] }
 0x17d   :  { %1766 = vmatpush.bf16.msrb.mxu0 %v4662_v56  ;;  %v6152_v46 = vld [vmem:[#allocation10 + $0x24] sm:$0xf0]  ;;  %v4758_v56 = vor.u32 %v6200_v49, %v4757_v48 }
 0x17e   :  { %v1816_v61 = vmul.f32 %v1760_v60, %v1708_v58  ;;  %v4639_v58 = vld [vmem:[#allocation10 + $0xb8] sm:$0xf0]  ;;  %1805 = vmatpush.bf16.msrb.mxu3 %v4858_v54 }
 0x17f   :  { %v4831_v60 = vld [vmem:[#allocation10 + $0x238] sm:$0xf0] }
 0x180   :  { %v7223_v63 = vmul.f32 0.0625, %v1816_v61  ;;  %v4637_v61 = vld [vmem:[#allocation10 + $0xa0] sm:$0xf]  ;;  %v4834_v6 = vor.u32 %v6215_v59, %v4831_v60  ;;  %v5053_v59 = vld [vmem:[#allocation13 + $0xf0] sm:$0xf] }
 0x181   :  { %v1748_v0 = vpop.f32.mrf.mxu2 }
 0x182   :  { %v1761_v1 = vpop.f32.mrf.mxu3  ;;  %v1819_v2 = vmax.f32 %v7221_v62, %v7223_v63  ;;  %v6170_v0 = vld [vmem:[#allocation10 + $0xb4] sm:$0xf0]  ;;  %1806 = vmatpush.bf16.msrb.mxu3 %v4834_v6  ;;  %v5055_v6 = vld [vmem:[#allocation13 + $0xf8] sm:$0xf0] }
 0x183   :  { %v4854_v1 = vor.u32 %v6224_v53, %v4853_v52  ;;  %v4638_v7 = vor.u32 %v6170_v0, %v4637_v61  ;;  %v4566_v53 = vor.u32 %v6152_v46, %v4565_v45  ;;  %v6274_v61 = vld [vmem:[#allocation13 + $0xf4] sm:$0xf0]  ;;  %v6257_v0 = vld [vmem:[#allocation13 + $0x74] sm:$0xf]  ;;  %v5058_v8 = vor.u32 %v6273_v5, %v5055_v6  ;;  %v4949_v5 = vld [vmem:[#allocation13 + $0x20] sm:$0xf] }
 0x184   :  { %1820 = vmax.xlane.f32.xlu0 %v1819_v2  ;;  %v4642_v2 = vor.u32 %v6167_v57, %v4639_v58  ;;  %v4989_v57 = vld [vmem:[#allocation13 + $0x70] sm:$0xf]  ;;  %v6258_v58 = vld [vmem:[#allocation13 + $0x74] sm:$0xf0]  ;;  %v6248_v6 = vld [vmem:[#allocation13 + $0x24] sm:$0xf0] }
 0x185   :  { %1779 = vmatpush.bf16.msrb.mxu1 %v4854_v1  ;;  %1767 = vmatpush.bf16.msrb.mxu0 %v4638_v7  ;;  %v4990_v60 = vor.u32 %v6258_v58, %v4989_v57  ;;  %v4991_v1 = vld [vmem:[#allocation13 + $0x78] sm:$0xf0]  ;;  %v4981_v7 = vld [vmem:[#allocation13 + $0x60] sm:$0xf]  ;;  %v6266_v57 = vld [vmem:[#allocation13 + $0xb4] sm:$0xf0] }
 0x186   :  { %1793 = vmatpush.bf16.msrb.mxu2 %v4642_v2  ;;  %1807 = vmatpush.bf16.msrb.mxu3 %v4810_v27  ;;  %v5054_v2 = vor.u32 %v6274_v61, %v5053_v59  ;;  %v4994_v4 = vor.u32 %v6257_v0, %v4991_v1  ;;  %v6269_v27 = vld [vmem:[#allocation13 + $0xd4] sm:$0xf]  ;;  %v4959_v59 = vld [vmem:[#allocation13 + $0x38] sm:$0xf0] }
 0x187   :  { %v6249_v58 = vld [vmem:[#allocation13 + $0x34] sm:$0xf] }
 0x188   :  { %v4962_v0 = vor.u32 %v6249_v58, %v4959_v59  ;;  %v6265_v1 = vld [vmem:[#allocation13 + $0xb4] sm:$0xf]  ;;  %v5285_v59 = vld [vmem:[#allocation16 + $0x1c0] sm:$0xf] }
 0x189   :  { %1780 = vmatpush.bf16.msrb.mxu1 %v4830_v19  ;;  %1768 = vmatpush.bf16.msrb.mxu0 %v4614_v29  ;;  %v4973_v19 = vld [vmem:[#allocation13 + $0x50] sm:$0xf]  ;;  %v5039_v29 = vld [vmem:[#allocation13 + $0xd8] sm:$0xf0] }
 0x18a   :  { %1794 = vmatpush.bf16.msrb.mxu2 %v4618_v21  ;;  %1808 = vmatpush.bf16.msrb.mxu3 %v4786_v37  ;;  %v4967_v37 = vld [vmem:[#allocation13 + $0x48] sm:$0xf0]  ;;  %v6301_v58 = vld [vmem:[#allocation16 + $0xcc] sm:$0xf0] }
 0x18b   :  { %v4970_v43 = vor.u32 %v6251_v36, %v4967_v37 }
 0x18e   :  { %1795 = vmatpush.bf16.msrb.mxu2 %v4594_v34  ;;  %1809 = vmatpush.bf16.msrb.mxu3 %v4762_v51  ;;  %v5042_v34 = vor.u32 %v6269_v27, %v5039_v29  ;;  %v4957_v51 = vld [vmem:[#allocation13 + $0x30] sm:$0xf]  ;;  %v5007_v27 = vld [vmem:[#allocation13 + $0x98] sm:$0xf0] }
 0x191   :  { %1810 = vmatmul.bf16.vlgmr.msrb.gmra.mxu3 %v7195_v31 }
 0x192   :  { %1796 = vmatpush.bf16.msrb.mxu2 %v4570_v47  ;;  %2077 = vmatpush.bf16.msra.mxu3 %v5058_v8  ;;  %v4950_v8 = vor.u32 %v6248_v6, %v4949_v5  ;;  %v5287_v6 = vld [vmem:[#allocation16 + $0x1d0] sm:$0xf0] }
 0x195   :  { %1797 = vmatmul.bf16.vlgmr.msrb.gmra.mxu2 %v7193_v28 }
 0x196   :  { %2064 = vmatpush.bf16.msra.mxu2 %v4994_v4 }
 0x197   :  { %v1048_v11 = vpop.xlane.xlu0 %1047 }
 0x198   :  { %v1049_v17 = vsub.f32 %v7205_v13, %v1048_v11  ;;  %v1050_v18 = vsub.f32 %v7207_v14, %v1048_v11  ;;  %v6158_v13 = vld [vmem:[#allocation10 + $0x54] sm:$0xf0]  ;;  %v4806_v14 = vor.u32 %v6212_v23, %v4805_v3  ;;  %v6272_v11 = vld [vmem:[#allocation13 + $0xe4] sm:$0xf0]  ;;  %v6270_v3 = vld [vmem:[#allocation13 + $0xd4] sm:$0xf0] }
 0x199   :  { %v4590_v38 = vor.u32 %v6158_v13, %v4589_v33  ;;  %v6253_v23 = vld [vmem:[#allocation13 + $0x54] sm:$0xf]  ;;  %v5038_v30 = vor.u32 %v6270_v3, %v5037_v55  ;;  %v4965_v33 = vld [vmem:[#allocation13 + $0x40] sm:$0xf]  ;;  %v6252_v13 = vld [vmem:[#allocation13 + $0x44] sm:$0xf0] }
 0x19a   :  { %v1051_v24 = vmul.f32 1.442695, %v1049_v17  ;;  %v1053_v26 = vmul.f32 1.442695, %v1050_v18  ;;  %1781 = vmatpush.bf16.msrb.mxu1 %v4806_v14  ;;  %v4986_v17 = vor.u32 %v6255_v12, %v4983_v15  ;;  %v5047_v18 = vld [vmem:[#allocation13 + $0xe8] sm:$0xf0]  ;;  %v4966_v41 = vor.u32 %v6252_v13, %v4965_v33 }
 0x19b   :  { %1769 = vmatpush.bf16.msrb.mxu0 %v4590_v38  ;;  %v5050_v21 = vor.u32 %v6271_v16, %v5047_v18  ;;  %v5029_v14 = vld [vmem:[#allocation13 + $0xc0] sm:$0xf]  ;;  %v6267_v38 = vld [vmem:[#allocation13 + $0xc4] sm:$0xf]  ;;  %v5015_v15 = vld [vmem:[#allocation13 + $0xa8] sm:$0xf0] }
 0x19c   :  { %6549 = vpow2.f32 %v1051_v24  ;;  %v4974_v24 = vor.u32 %v6254_v20, %v4973_v19  ;;  %2065 = vmatpush.bf16.msra.mxu2 %v4986_v17  ;;  %v5030_v42 = vor.u32 %v6268_v35, %v5029_v14  ;;  %v6263_v12 = vld [vmem:[#allocation13 + $0xa4] sm:$0xf]  ;;  %v4941_v17 = vld [vmem:[#allocation13 + $0x10] sm:$0xf]  ;;  %v6246_v18 = vld [vmem:[#allocation13 + $0x14] sm:$0xf0] }
 0x19d   :  { %6551 = vpow2.f32 %v1053_v26  ;;  %v4975_v26 = vld [vmem:[#allocation13 + $0x58] sm:$0xf0]  ;;  %2078 = vmatpush.bf16.msra.mxu3 %v5050_v21  ;;  %v5018_v16 = vor.u32 %v6263_v12, %v5015_v15  ;;  %v5005_v19 = vld [vmem:[#allocation13 + $0x90] sm:$0xf]  ;;  %v4942_v20 = vor.u32 %v6246_v18, %v4941_v17  ;;  %v6262_v21 = vld [vmem:[#allocation13 + $0x94] sm:$0xf0] }
 0x19e   :  { %1782 = vmatpush.bf16.msrb.mxu1 %v4782_v44  ;;  %v4978_v32 = vor.u32 %v6253_v23, %v4975_v26  ;;  %v5034_v44 = vor.u32 %v6267_v38, %v5031_v39  ;;  %v6245_v55 = vld [vmem:[#allocation13 + $0x14] sm:$0xf]  ;;  %v4943_v3 = vld [vmem:[#allocation13 + $0x18] sm:$0xf0]  ;;  %v5006_v23 = vor.u32 %v6262_v21, %v5005_v19  ;;  %v4997_v33 = vld [vmem:[#allocation13 + $0x80] sm:$0xf] }
 0x19f   :  { %1770 = vmatpush.bf16.msrb.mxu0 %v4566_v53  ;;  %v6250_v53 = vld [vmem:[#allocation13 + $0x34] sm:$0xf0]  ;;  %v6261_v26 = vld [vmem:[#allocation13 + $0x94] sm:$0xf]  ;;  %v6260_v14 = vld [vmem:[#allocation13 + $0x84] sm:$0xf0] }
 0x1a0   :  { %2066 = vmatpush.bf16.msra.mxu2 %v4978_v32  ;;  %v5010_v29 = vor.u32 %v6261_v26, %v5007_v27  ;;  %v6244_v32 = vld [vmem:[#allocation13 + $0x4] sm:$0xf0]  ;;  %v4935_v35 = vld [vmem:[#allocation13 + $0x8] sm:$0xf0]  ;;  %v4998_v36 = vor.u32 %v6260_v14, %v4997_v33  ;;  %v6259_v38 = vld [vmem:[#allocation13 + $0x84] sm:$0xf] }
 0x1a1   :  { %2079 = vmatpush.bf16.msra.mxu3 %v5042_v34  ;;  %v6243_v34 = vld [vmem:[#allocation13 + $0x4] sm:$0xf]  ;;  %v4999_v39 = vld [vmem:[#allocation13 + $0x88] sm:$0xf0]  ;;  %v5143_v12 = vld [vmem:[#allocation16 + $0xb0] sm:$0xf0] }
 0x1a2   :  { %v7229_v50 = vpop.eup %6549  ;;  %1783 = vmatpush.bf16.msrb.mxu1 %v4758_v56  ;;  %1771 = vmatmul.bf16.vlgmr.msrb.gmra.mxu0 %v7193_v28  ;;  %v4982_v28 = vor.u32 %v6256_v9, %v4981_v7  ;;  %v4958_v56 = vor.u32 %v6250_v53, %v4957_v51  ;;  %v5013_v7 = vld [vmem:[#allocation13 + $0xa0] sm:$0xf]  ;;  %v6264_v9 = vld [vmem:[#allocation13 + $0xa4] sm:$0xf0]  ;;  %v4938_v37 = vor.u32 %v6243_v34, %v4935_v35  ;;  %v5255_v27 = vld [vmem:[#allocation16 + $0x190] sm:$0xf0] }
 0x1a3   :  { %v7231_v52 = vpop.eup %6551  ;;  %2038 = vmatpush.bf16.msra.mxu0 %v4990_v60  ;;  %v6335_v53 = vld [vmem:[#allocation16 + $0x1e4] sm:$0xf]  ;;  %v5125_v19 = vld [vmem:[#allocation16 + $0x80] sm:$0xf]  ;;  %v6321_v35 = vld [vmem:[#allocation16 + $0x16c] sm:$0xf0] }
 0x1a4   :  { %v1055_v54 = vadd.f32 %v7231_v52, %v7229_v50  ;;  %2067 = vmatpush.bf16.msra.mxu2 %v4970_v43  ;;  %v6305_v43 = vld [vmem:[#allocation16 + $0xec] sm:$0xf0]  ;;  %v6327_v15 = vld [vmem:[#allocation16 + $0x1a4] sm:$0xf]  ;;  %v5253_v21 = vld [vmem:[#allocation16 + $0x180] sm:$0xf] }
 0x1a5   :  { %1784 = vmatmul.bf16.vlgmr.msrb.gmra.mxu1 %v7195_v31  ;;  %v5046_v31 = vor.u32 %v6272_v11, %v5045_v10  ;;  %2080 = vmatpush.bf16.msra.mxu3 %v5034_v44  ;;  %v6247_v10 = vld [vmem:[#allocation13 + $0x24] sm:$0xf]  ;;  %v4951_v11 = vld [vmem:[#allocation13 + $0x28] sm:$0xf0] }
 0x1a6   :  { %1056 = vadd.xlane.f32.xlu1 %v1055_v54  ;;  %2051 = vmatpush.bf16.msra.mxu1 %v5054_v2  ;;  %v5021_v54 = vld [vmem:[#allocation13 + $0xb0] sm:$0xf]  ;;  %v5023_v2 = vld [vmem:[#allocation13 + $0xb8] sm:$0xf0]  ;;  %v5301_v44 = vld [vmem:[#allocation16 + $0x1e0] sm:$0xf] }
 0x1a7   :  { %2039 = vmatpush.bf16.msra.mxu0 %v4982_v28  ;;  %v5022_v61 = vor.u32 %v6266_v57, %v5021_v54  ;;  %v5014_v28 = vor.u32 %v6264_v9, %v5013_v7  ;;  %v5303_v54 = vld [vmem:[#allocation16 + $0x1f0] sm:$0xf0]  ;;  %v5141_v7 = vld [vmem:[#allocation16 + $0xa0] sm:$0xf]  ;;  %v6323_v26 = vld [vmem:[#allocation16 + $0x184] sm:$0xf] }
 0x1a8   :  { %2068 = vmatpush.bf16.msra.mxu2 %v4962_v0  ;;  %v5306_v57 = vor.u32 %v6335_v53, %v5303_v54  ;;  %v5109_v33 = vld [vmem:[#allocation16 + $0x60] sm:$0xf]  ;;  %v5258_v34 = vor.u32 %v6323_v26, %v5255_v27  ;;  %v5095_v53 = vld [vmem:[#allocation16 + $0x50] sm:$0xf0]  ;;  %v6315_v54 = vld [vmem:[#allocation16 + $0x144] sm:$0xf] }
 0x1a9   :  { %v5237_v14 = vld [vmem:[#allocation16 + $0x160] sm:$0xf]  ;;  %v5181_v27 = vld [vmem:[#allocation16 + $0xe8] sm:$0xf] }
 0x1aa   :  { %2052 = vmatpush.bf16.msra.mxu1 %v5046_v31  ;;  %v4954_v31 = vor.u32 %v6247_v10, %v4951_v11  ;;  %v5269_v10 = vld [vmem:[#allocation16 + $0x1a0] sm:$0xf]  ;;  %v6329_v11 = vld [vmem:[#allocation16 + $0x1ac] sm:$0xf0] }
 0x1ab   :  { %2040 = vmatpush.bf16.msra.mxu0 %v4974_v24  ;;  %v4946_v24 = vor.u32 %v6245_v55, %v4943_v3  ;;  %v5270_v17 = vor.u32 %v6329_v11, %v5269_v10  ;;  %v6325_v3 = vld [vmem:[#allocation16 + $0x18c] sm:$0xf0] }
 0x1ac   :  { %2069 = vmatpush.bf16.msra.mxu2 %v4954_v31 }
 0x1ae   :  { %2053 = vmatpush.bf16.msra.mxu1 %v5038_v30  ;;  %v4933_v30 = vld [vmem:[#allocation13] sm:$0xf] }
 0x1af   :  { %2041 = vmatpush.bf16.msra.mxu0 %v4966_v41  ;;  %v4934_v13 = vor.u32 %v6244_v32, %v4933_v30  ;;  %v5002_v41 = vor.u32 %v6259_v38, %v4999_v39  ;;  %v5254_v30 = vor.u32 %v6325_v3, %v5253_v21  ;;  %v6319_v38 = vld [vmem:[#allocation16 + $0x164] sm:$0xf]  ;;  %v5239_v39 = vld [vmem:[#allocation16 + $0x170] sm:$0xf0] }
 0x1b0   :  { %2070 = vmatpush.bf16.msra.mxu2 %v4946_v24  ;;  %v5127_v24 = vld [vmem:[#allocation16 + $0x90] sm:$0xf0]  ;;  %v6275_v21 = vld [vmem:[#allocation16 + $0x4] sm:$0xf] }
 0x1b1   :  { %v6573_v3 = vld [vmem:[#allocation2] sm:$0xff] }
 0x1b2   :  { %2054 = vmatpush.bf16.msra.mxu1 %v5030_v42  ;;  %v5173_v42 = vld [vmem:[#allocation16 + $0xe0] sm:$0xf] }
 0x1b3   :  { %2042 = vmatpush.bf16.msra.mxu0 %v4958_v56  ;;  %v5157_v56 = vld [vmem:[#allocation16 + $0xc0] sm:$0xf] }
 0x1b4   :  { %2071 = vmatpush.bf16.msra.mxu2 %v4938_v37  ;;  %v5158_v0 = vor.u32 %v6301_v58, %v5157_v56  ;;  %v5111_v37 = vld [vmem:[#allocation16 + $0x70] sm:$0xf0] }
 0x1b5   :  { %v5223_v56 = vld [vmem:[#allocation16 + $0x150] sm:$0xf0] }
 0x1b6   :  { %2055 = vmatpush.bf16.msra.mxu1 %v5022_v61  ;;  %v6333_v61 = vld [vmem:[#allocation16 + $0x1cc] sm:$0xf0] }
 0x1b7   :  { %2043 = vmatpush.bf16.msra.mxu0 %v4950_v8  ;;  %v6297_v8 = vld [vmem:[#allocation16 + $0xac] sm:$0xf0] }
 0x1b8   :  { %v5142_v31 = vor.u32 %v6297_v8, %v5141_v7  ;;  %v6311_v7 = vld [vmem:[#allocation16 + $0x124] sm:$0xf]  ;;  %v5207_v8 = vld [vmem:[#allocation16 + $0x130] sm:$0xf0] }
 0x1ba   :  { %2056 = vmatpush.bf16.msra.mxu1 %v5014_v28  ;;  %v6295_v28 = vld [vmem:[#allocation16 + $0xa4] sm:$0xf] }
 0x1bb   :  { %2044 = vmatpush.bf16.msra.mxu0 %v4942_v20  ;;  %v5146_v18 = vor.u32 %v6295_v28, %v5143_v12  ;;  %v6293_v20 = vld [vmem:[#allocation16 + $0x8c] sm:$0xf0]  ;;  %v5061_v12 = vld [vmem:[#allocation16] sm:$0xf] }
 0x1be   :  { %2057 = vmatpush.bf16.msra.mxu1 %v5006_v23  ;;  %v6291_v23 = vld [vmem:[#allocation16 + $0x84] sm:$0xf] }
 0x1bf   :  { %2045 = vmatpush.bf16.msra.mxu0 %v4934_v13  ;;  %v5130_v32 = vor.u32 %v6291_v23, %v5127_v24  ;;  %v6289_v13 = vld [vmem:[#allocation16 + $0x6c] sm:$0xf0]  ;;  %v6574_v24 = vld [vmem:[#allocation2 + $0x8] sm:$0xff] }
 0x1c2   :  { %2058 = vmatpush.bf16.msra.mxu1 %v4998_v36  ;;  %v6287_v36 = vld [vmem:[#allocation16 + $0x64] sm:$0xf] }
 0x1f7   :  { %v1821_v45 = vpop.xlane.xlu0 %1820 }
 0x1f8   :  { %v1822_v46 = vsub.f32 %v7221_v62, %v1821_v45  ;;  %v1823_v47 = vsub.f32 %v7223_v63, %v1821_v45  ;;  %v5026_v63 = vor.u32 %v6265_v1, %v5023_v2  ;;  %v5174_v45 = vor.u32 %v6305_v43, %v5173_v42  ;;  %v6299_v2 = vld [vmem:[#allocation16 + $0xc4] sm:$0xf] }
 0x1f9   :  { %v5286_v1 = vor.u32 %v6333_v61, %v5285_v59  ;;  %v5110_v42 = vor.u32 %v6289_v13, %v5109_v33  ;;  %v5238_v43 = vor.u32 %v6321_v35, %v5237_v14  ;;  %v5077_v61 = vld [vmem:[#allocation16 + $0x20] sm:$0xf]  ;;  %v5183_v33 = vld [vmem:[#allocation16 + $0xf8] sm:$0xf0]  ;;  %v6336_v35 = vld [vmem:[#allocation16 + $0x1ec] sm:$0xf] }
 0x1fa   :  { %v1824_v48 = vmul.f32 1.442695, %v1822_v46  ;;  %v1826_v49 = vmul.f32 1.442695, %v1823_v47  ;;  %2081 = vmatpush.bf16.msra.mxu3 %v5026_v63  ;;  %v6337_v46 = vld [vmem:[#allocation16 + $0x1ec] sm:$0xf0]  ;;  %2486 = vmatpush.bf16.msrb.mxu0 %v5174_v45 }
 0x1fb   :  { %v6303_v47 = vld [vmem:[#allocation16 + $0xe4] sm:$0xf]  ;;  %v5159_v63 = vld [vmem:[#allocation16 + $0xd0] sm:$0xf0]  ;;  %v5093_v45 = vld [vmem:[#allocation16 + $0x40] sm:$0xf] }
 0x1fc   :  { %6553 = vpow2.f32 %v1824_v48  ;;  %v5175_v48 = vld [vmem:[#allocation16 + $0xf0] sm:$0xf0]  ;;  %v5162_v5 = vor.u32 %v6299_v2, %v5159_v63  ;;  %v5226_v2 = vor.u32 %v6315_v54, %v5223_v56  ;;  %v6313_v63 = vld [vmem:[#allocation16 + $0x12c] sm:$0xf0]  ;;  %v5167_v54 = vld [vmem:[#allocation16 + $0xd8] sm:$0xf0] }
 0x1fd   :  { %6555 = vpow2.f32 %v1826_v49  ;;  %v5302_v49 = vor.u32 %v6337_v46, %v5301_v44  ;;  %v5178_v51 = vor.u32 %v6303_v47, %v5175_v48  ;;  %v5114_v44 = vor.u32 %v6287_v36, %v5111_v37  ;;  %v6285_v46 = vld [vmem:[#allocation16 + $0x4c] sm:$0xf0]  ;;  %v5221_v47 = vld [vmem:[#allocation16 + $0x140] sm:$0xf]  ;;  %v5311_v36 = vld [vmem:[#allocation16 + $0x1f8] sm:$0xf0] }
 0x1fe   :  { %2082 = vmatpush.bf16.msra.mxu3 %v5018_v16  ;;  %2487 = vmatpush.bf16.msrb.mxu0 %v5158_v0  ;;  %v5271_v16 = vld [vmem:[#allocation16 + $0x1b0] sm:$0xf0]  ;;  %v5242_v48 = vor.u32 %v6319_v38, %v5239_v39  ;;  %v6281_v0 = vld [vmem:[#allocation16 + $0x2c] sm:$0xf0]  ;;  %v1171_v37 = vperm.slane %v7215_v40, 4 }
 0x1ff   :  { %2499 = vmatpush.bf16.msrb.mxu1 %v5302_v49  ;;  %2512 = vmatpush.bf16.msrb.mxu2 %v5178_v51  ;;  %v5274_v55 = vor.u32 %v6327_v15, %v5271_v16  ;;  %v6317_v49 = vld [vmem:[#allocation16 + $0x14c] sm:$0xf0]  ;;  %v6283_v51 = vld [vmem:[#allocation16 + $0x44] sm:$0xf]  ;;  %v5078_v11 = vor.u32 %v6281_v0, %v5077_v61  ;;  %v5293_v40 = vld [vmem:[#allocation16 + $0x1c8] sm:$0xf] }
 0x200   :  { %v5222_v58 = vor.u32 %v6317_v49, %v5221_v47  ;;  %v5098_v59 = vor.u32 %v6283_v51, %v5095_v53  ;;  %v6277_v15 = vld [vmem:[#allocation16 + $0xc] sm:$0xf0]  ;;  %v5314_v49 = vor.u32 %v6336_v35, %v5311_v36  ;;  %v6334_v51 = vld [vmem:[#allocation16 + $0x1d4] sm:$0xf0]  ;;  %v6300_v53 = vld [vmem:[#allocation16 + $0xcc] sm:$0xf] }
 0x201   :  { %v6332_v56 = vld [vmem:[#allocation16 + $0x1cc] sm:$0xf]  ;;  %v5294_v0 = vor.u32 %v6334_v51, %v5293_v40  ;;  %v6322_v35 = vld [vmem:[#allocation16 + $0x174] sm:$0xf0]  ;;  %v5103_v40 = vld [vmem:[#allocation16 + $0x58] sm:$0xf0] }
 0x202   :  { %v7241_v60 = vpop.eup %6553  ;;  %2083 = vmatpush.bf16.msra.mxu3 %v5010_v29  ;;  %2488 = vmatpush.bf16.msrb.mxu0 %v5142_v31  ;;  %v5126_v29 = vor.u32 %v6293_v20, %v5125_v19  ;;  %v5189_v19 = vld [vmem:[#allocation16 + $0x100] sm:$0xf]  ;;  %v6309_v20 = vld [vmem:[#allocation16 + $0x10c] sm:$0xf0]  ;;  %v6288_v36 = vld [vmem:[#allocation16 + $0x6c] sm:$0xf] }
 0x203   :  { %v7243_v62 = vpop.eup %6555  ;;  %2500 = vmatpush.bf16.msrb.mxu1 %v5286_v1  ;;  %2513 = vmatpush.bf16.msrb.mxu2 %v5162_v5  ;;  %v5205_v1 = vld [vmem:[#allocation16 + $0x120] sm:$0xf]  ;;  %v5079_v5 = vld [vmem:[#allocation16 + $0x30] sm:$0xf0] }
 0x204   :  { %v1828_v4 = vadd.f32 %v7243_v62, %v7241_v60  ;;  %v5206_v28 = vor.u32 %v6313_v63, %v5205_v1  ;;  %v5149_v1 = vld [vmem:[#allocation16 + $0xa8] sm:$0xf]  ;;  %v5170_v63 = vor.u32 %v6300_v53, %v5167_v54  ;;  %v6316_v54 = vld [vmem:[#allocation16 + $0x14c] sm:$0xf] }
 0x206   :  { %1829 = vadd.xlane.f32.xlu1 %v1828_v4  ;;  %2084 = vmatpush.bf16.msra.mxu3 %v5002_v41  ;;  %v6331_v4 = vld [vmem:[#allocation16 + $0x1c4] sm:$0xf] }
 0x207   :  { %v5290_v9 = vor.u32 %v6331_v4, %v5287_v6  ;;  %2501 = vmatpush.bf16.msrb.mxu1 %v5270_v17  ;;  %2514 = vmatpush.bf16.msrb.mxu2 %v5146_v18  ;;  %v6279_v4 = vld [vmem:[#allocation16 + $0x24] sm:$0xf]  ;;  %v5210_v18 = vor.u32 %v6311_v7, %v5207_v8  ;;  %v6296_v7 = vld [vmem:[#allocation16 + $0xac] sm:$0xf]  ;;  %v5151_v8 = vld [vmem:[#allocation16 + $0xb8] sm:$0xf0] }
 0x208   :  { %2489 = vmatpush.bf16.msrb.mxu0 %v5126_v29  ;;  %v5082_v31 = vor.u32 %v6279_v4, %v5079_v5  ;;  %v6306_v29 = vld [vmem:[#allocation16 + $0xf4] sm:$0xf0]  ;;  %v5277_v5 = vld [vmem:[#allocation16 + $0x1a8] sm:$0xf] }
 0x20a   :  { %2525 = vmatpush.bf16.msrb.mxu3 %v5306_v57  ;;  %v5094_v57 = vor.u32 %v6285_v46, %v5093_v45  ;;  %v5165_v45 = vld [vmem:[#allocation16 + $0xc8] sm:$0xf]  ;;  %v6302_v46 = vld [vmem:[#allocation16 + $0xd4] sm:$0xf0] }
 0x20b   :  { %2502 = vmatpush.bf16.msrb.mxu1 %v5254_v30  ;;  %2515 = vmatpush.bf16.msrb.mxu2 %v5130_v32  ;;  %v6338_v30 = vld [vmem:[#allocation16 + $0x1f4] sm:$0xf0]  ;;  %v6304_v32 = vld [vmem:[#allocation16 + $0xec] sm:$0xf]  ;;  %v5166_v61 = vor.u32 %v6302_v46, %v5165_v45  ;;  %v5229_v46 = vld [vmem:[#allocation16 + $0x148] sm:$0xf] }
 0x20c   :  { %2490 = vmatpush.bf16.msrb.mxu0 %v5110_v42  ;;  %v6286_v45 = vld [vmem:[#allocation16 + $0x54] sm:$0xf0] }
 0x20e   :  { %2526 = vmatpush.bf16.msrb.mxu3 %v5290_v9 }
 0x20f   :  { %2503 = vmatpush.bf16.msrb.mxu1 %v5238_v43  ;;  %2516 = vmatpush.bf16.msrb.mxu2 %v5114_v44  ;;  %v5182_v43 = vor.u32 %v6306_v29, %v5181_v27 }
 0x210   :  { %2491 = vmatpush.bf16.msrb.mxu0 %v5094_v57  ;;  %v5295_v57 = vld [vmem:[#allocation16 + $0x1d8] sm:$0xf0] }
 0x211   :  { %v5298_v4 = vor.u32 %v6332_v56, %v5295_v57  ;;  %v5231_v56 = vld [vmem:[#allocation16 + $0x158] sm:$0xf0] }
 0x212   :  { %2527 = vmatpush.bf16.msrb.mxu3 %v5274_v55  ;;  %v6307_v55 = vld [vmem:[#allocation16 + $0x104] sm:$0xf]  ;;  %v5234_v57 = vor.u32 %v6316_v54, %v5231_v56  ;;  %v5367_v56 = vld [vmem:[#allocation17 + $0x68] sm:$0xf0] }
 0x213   :  { %2504 = vmatpush.bf16.msrb.mxu1 %v5222_v58  ;;  %2517 = vmatpush.bf16.msrb.mxu2 %v5098_v59  ;;  %v6351_v54 = vld [vmem:[#allocation17 + $0x64] sm:$0xf] }
 0x214   :  { %2492 = vmatpush.bf16.msrb.mxu0 %v5078_v11 }
 0x216   :  { %2528 = vmatpush.bf16.msrb.mxu3 %v5258_v34  ;;  %v5190_v34 = vor.u32 %v6309_v20, %v5189_v19  ;;  %v5261_v19 = vld [vmem:[#allocation16 + $0x188] sm:$0xf]  ;;  %v6326_v20 = vld [vmem:[#allocation16 + $0x194] sm:$0xf0] }
 0x217   :  { %2505 = vmatpush.bf16.msrb.mxu1 %v5206_v28  ;;  %2518 = vmatpush.bf16.msrb.mxu2 %v5082_v31  ;;  %v5262_v27 = vor.u32 %v6326_v20, %v5261_v19 }
 0x218   :  { %v7270_v59 = vpop.f32.mrf.mxu2 }
 0x219   :  { %v1057_v41 = vpop.xlane.xlu1 %1056 }
 0x21a   :  { %6557 = vrcp.f32 %v1057_v41  ;;  %2529 = vmatpush.bf16.msrb.mxu3 %v5242_v48  ;;  %v5186_v48 = vor.u32 %v6304_v32, %v5183_v33  ;;  %v5245_v32 = vld [vmem:[#allocation16 + $0x168] sm:$0xf]  ;;  %v7272_v33 = vpop.f32.mrf.mxu3 }
 0x21b   :  { %2506 = vmatpush.bf16.msrb.mxu1 %v5190_v34 }
 0x21e   :  { %2530 = vmatpush.bf16.msrb.mxu3 %v5226_v2  ;;  %v6298_v2 = vld [vmem:[#allocation16 + $0xb4] sm:$0xf0] }
 0x21f   :  { %v1772_v38 = vpop.f32.mrf.mxu0  ;;  %v5150_v31 = vor.u32 %v6298_v2, %v5149_v1  ;;  %v5213_v1 = vld [vmem:[#allocation16 + $0x128] sm:$0xf] }
 0x220   :  { %v6558_v6 = vpop.eup %6557  ;;  %v1773_v47 = vadd.f32 %v1772_v38, %v1171_v37  ;;  %v5119_v37 = vld [vmem:[#allocation16 + $0x78] sm:$0xf0]  ;;  %v5246_v38 = vor.u32 %v6322_v35, %v5245_v32  ;;  %v5373_v35 = vld [vmem:[#allocation17 + $0x70] sm:$0xf] }
 0x221   :  { %v1059_v9 = vmul.f32 %v6558_v6, %v7229_v50  ;;  %v1060_v10 = vmul.f32 %v6558_v6, %v7231_v52  ;;  %v5063_v50 = vld [vmem:[#allocation16 + $0x10] sm:$0xf0]  ;;  %v6330_v6 = vld [vmem:[#allocation16 + $0x1b4] sm:$0xf0] }
 0x222   :  { %v5191_v52 = vld [vmem:[#allocation16 + $0x110] sm:$0xf0]  ;;  %2531 = vmatpush.bf16.msrb.mxu3 %v5210_v18  ;;  %v5066_v39 = vor.u32 %v6275_v21, %v5063_v50  ;;  %v1785_v42 = vpop.f32.mrf.mxu1  ;;  %v6292_v21 = vld [vmem:[#allocation16 + $0x8c] sm:$0xf]  ;;  %v5135_v50 = vld [vmem:[#allocation16 + $0x98] sm:$0xf0]  ;;  %v1813_v2 = vpop.f32.mrf.mxu3 }
 0x223   :  { %v1061_v16 = vmul.f32 %v1059_v9, %v7211_v22  ;;  %v1062_v17 = vmul.f32 %v1060_v10, %v7213_v25  ;;  %v5309_v22 = vld [vmem:[#allocation16 + $0x1e8] sm:$0xf]  ;;  %v5062_v25 = vor.u32 %v6277_v15, %v5061_v12  ;;  %v5194_v41 = vor.u32 %v6307_v55, %v5191_v52  ;;  %v6328_v9 = vld [vmem:[#allocation16 + $0x1ac] sm:$0xf]  ;;  %v5279_v10 = vld [vmem:[#allocation16 + $0x1b8] sm:$0xf0] }
 0x224   :  { %v5310_v44 = vor.u32 %v6338_v30, %v5309_v22  ;;  %v7268_v58 = vadd.f32 %v1785_v42, %v1773_v47  ;;  %2519 = vmatpush.bf16.msrb.mxu2 %v5066_v39  ;;  %v5278_v12 = vor.u32 %v6330_v6, %v5277_v5  ;;  %v5133_v15 = vld [vmem:[#allocation16 + $0x88] sm:$0xf]  ;;  %v5282_v18 = vor.u32 %v6328_v9, %v5279_v10  ;;  %v6324_v55 = vld [vmem:[#allocation16 + $0x18c] sm:$0xf]  ;;  %v5263_v52 = vld [vmem:[#allocation16 + $0x198] sm:$0xf0] }
 0x225   :  { %v7251_v23 = vadd.f32 %v6573_v3, %v1061_v16  ;;  %v7253_v26 = vadd.f32 %v6574_v24, %v1062_v17  ;;  %2493 = vmatpush.bf16.msrb.mxu0 %v5062_v25  ;;  %v6294_v16 = vld [vmem:[#allocation16 + $0x94] sm:$0xf0]  ;;  %v5154_v17 = vor.u32 %v6296_v7, %v5151_v8  ;;  %v1800_v3 = vpop.f32.mrf.mxu2  ;;  %v5138_v29 = vor.u32 %v6292_v21, %v5135_v50  ;;  %v5117_v25 = vld [vmem:[#allocation16 + $0x68] sm:$0xf]  ;;  %v5247_v42 = vld [vmem:[#allocation16 + $0x178] sm:$0xf0] }
 0x226   :  { %2532 = vmatpush.bf16.msrb.mxu3 %v5194_v41  ;;  %v5134_v24 = vor.u32 %v6294_v16, %v5133_v15  ;;  %v5266_v22 = vor.u32 %v6324_v55, %v5263_v52  ;;  %v6290_v30 = vld [vmem:[#allocation16 + $0x74] sm:$0xf0]  ;;  %v5122_v39 = vor.u32 %v6288_v36, %v5119_v37  ;;  %v6320_v41 = vld [vmem:[#allocation16 + $0x16c] sm:$0xf]  ;;  %v5087_v6 = vld [vmem:[#allocation16 + $0x38] sm:$0xf0] }
 0x227   :  { %v7257_v13 = vpack.c.bf16 %v7251_v23, %v7251_v23  ;;  %v7261_v14 = vpack.c.bf16 %v7253_v26, %v7253_v26  ;;  %v1774_v11 = vpop.f32.mrf.mxu0  ;;  %v5118_v34 = vor.u32 %v6290_v30, %v5117_v25  ;;  %v6280_v5 = vld [vmem:[#allocation16 + $0x2c] sm:$0xf]  ;;  %v5215_v10 = vld [vmem:[#allocation16 + $0x138] sm:$0xf0]  ;;  %v6310_v16 = vld [vmem:[#allocation16 + $0x114] sm:$0xf0] }
 0x228   :  { %v5090_v8 = vor.u32 %v6280_v5, %v5087_v6  ;;  %v6312_v9 = vld [vmem:[#allocation16 + $0x12c] sm:$0xf]  ;;  %v5199_v50 = vld [vmem:[#allocation16 + $0x118] sm:$0xf0]  ;;  %v6354_v36 = vld [vmem:[#allocation17 + $0x74] sm:$0xf0] }
 0x229   :  { %2046 = vmatmul.bf16.vlgmr.msra.gmra.mxu0 %v7257_v13  ;;  %2059 = vmatmul.bf16.vlgmr.msra.gmra.mxu1 %v7261_v14  ;;  %v5218_v11 = vor.u32 %v6312_v9, %v5215_v10  ;;  %v6308_v21 = vld [vmem:[#allocation16 + $0x10c] sm:$0xf]  ;;  %v6575_v52 = vld [vmem:[#allocation11] sm:$0x3f]  ;;  %v5437_v37 = vld [vmem:[#allocation17 + $0xf0] sm:$0xf] }
 0x22a   :  { %2072 = vmatmul.bf16.vlgmr.msra.gmra.mxu2 %v7257_v13  ;;  %2085 = vmatmul.bf16.vlgmr.msra.gmra.mxu3 %v7261_v14  ;;  %v1787_v28 = vpop.f32.mrf.mxu1  ;;  %v5202_v55 = vor.u32 %v6308_v21, %v5199_v50  ;;  %v1172_v3 = vperm.slane %v6575_v52, 5  ;;  %v5357_v2 = vld [vmem:[#allocation17 + $0x50] sm:$0xf]  ;;  %v5359_v9 = vld [vmem:[#allocation17 + $0x58] sm:$0xf0] }
 0x22b   :  { %2538 = vmatpush.bf16.msra.mxu0 %v5182_v43  ;;  %2551 = vmatpush.bf16.msra.mxu1 %v5310_v44  ;;  %v5250_v43 = vor.u32 %v6320_v41, %v5247_v42  ;;  %v5101_v44 = vld [vmem:[#allocation16 + $0x48] sm:$0xf]  ;;  %v5421_v6 = vld [vmem:[#allocation17 + $0xd0] sm:$0xf]  ;;  %v6365_v10 = vld [vmem:[#allocation17 + $0xd4] sm:$0xf] }
 0x22c   :  { %2564 = vmatpush.bf16.msra.mxu2 %v5186_v48  ;;  %2577 = vmatpush.bf16.msra.mxu3 %v5314_v49  ;;  %v5102_v47 = vor.u32 %v6286_v45, %v5101_v44  ;;  %v6318_v48 = vld [vmem:[#allocation16 + $0x154] sm:$0xf0]  ;;  %v6284_v49 = vld [vmem:[#allocation16 + $0x4c] sm:$0xf]  ;;  %v5069_v28 = vld [vmem:[#allocation16 + $0x8] sm:$0xf] }
 0x22d   :  { %v5230_v51 = vor.u32 %v6318_v48, %v5229_v46  ;;  %v5106_v53 = vor.u32 %v6284_v49, %v5103_v40  ;;  %v6576_v41 = vld [vmem:[#allocation5] sm:$0xff]  ;;  %v6369_v44 = vld [vmem:[#allocation17 + $0xf4] sm:$0xf]  ;;  %v5439_v45 = vld [vmem:[#allocation17 + $0xf8] sm:$0xf0] }
 0x22e   :  { %v6352_v48 = vld [vmem:[#allocation17 + $0x64] sm:$0xf0]  ;;  %v5442_v40 = vor.u32 %v6369_v44, %v5439_v45  ;;  %v5351_v21 = vld [vmem:[#allocation17 + $0x48] sm:$0xf0]  ;;  %v6363_v50 = vld [vmem:[#allocation17 + $0xc4] sm:$0xf] }
 0x22f   :  { %2539 = vmatpush.bf16.msra.mxu0 %v5166_v61  ;;  %2552 = vmatpush.bf16.msra.mxu1 %v5294_v0  ;;  %v5085_v61 = vld [vmem:[#allocation16 + $0x28] sm:$0xf]  ;;  %v6282_v0 = vld [vmem:[#allocation16 + $0x34] sm:$0xf0]  ;;  %v5397_v44 = vld [vmem:[#allocation17 + $0xa0] sm:$0xf] }
 0x230   :  { %2565 = vmatpush.bf16.msra.mxu2 %v5170_v63  ;;  %2578 = vmatpush.bf16.msra.mxu3 %v5298_v4  ;;  %v5086_v63 = vor.u32 %v6282_v0, %v5085_v61  ;;  %v6314_v4 = vld [vmem:[#allocation16 + $0x134] sm:$0xf0]  ;;  %v5431_v61 = vld [vmem:[#allocation17 + $0xe8] sm:$0xf0]  ;;  %v6360_v45 = vld [vmem:[#allocation17 + $0xa4] sm:$0xf0] }
 0x231   :  { %v5214_v7 = vor.u32 %v6314_v4, %v5213_v1  ;;  %v5370_v4 = vor.u32 %v6351_v54, %v5367_v56 }
 0x233   :  { %2540 = vmatpush.bf16.msra.mxu0 %v5150_v31  ;;  %2553 = vmatpush.bf16.msra.mxu1 %v5278_v12  ;;  %v6278_v31 = vld [vmem:[#allocation16 + $0x14] sm:$0xf0]  ;;  %v5197_v12 = vld [vmem:[#allocation16 + $0x108] sm:$0xf] }
 0x234   :  { %2566 = vmatpush.bf16.msra.mxu2 %v5154_v17  ;;  %2579 = vmatpush.bf16.msra.mxu3 %v5282_v18  ;;  %v5070_v15 = vor.u32 %v6278_v31, %v5069_v28  ;;  %v6276_v17 = vld [vmem:[#allocation16 + $0xc] sm:$0xf]  ;;  %v5071_v18 = vld [vmem:[#allocation16 + $0x18] sm:$0xf0]  ;;  %v5198_v19 = vor.u32 %v6310_v16, %v5197_v12  ;;  %v5349_v12 = vld [vmem:[#allocation17 + $0x40] sm:$0xf] }
 0x235   :  { %v5074_v20 = vor.u32 %v6276_v17, %v5071_v18  ;;  %v5413_v18 = vld [vmem:[#allocation17 + $0xc0] sm:$0xf] }
 0x237   :  { %2541 = vmatpush.bf16.msra.mxu0 %v5134_v24  ;;  %2554 = vmatpush.bf16.msra.mxu1 %v5262_v27  ;;  %v1799_v27 = vadd.f32 %v7270_v59, %v1172_v3 }
 0x238   :  { %2567 = vmatpush.bf16.msra.mxu2 %v5138_v29  ;;  %2580 = vmatpush.bf16.msra.mxu3 %v5266_v22 }
 0x239   :  { %v1812_v29 = vadd.f32 %v7272_v33, %v1799_v27  ;;  %v5375_v33 = vld [vmem:[#allocation17 + $0x78] sm:$0xf0]  ;;  %v6346_v27 = vld [vmem:[#allocation17 + $0x34] sm:$0xf0] }
 0x23b   :  { %2542 = vmatpush.bf16.msra.mxu0 %v5118_v34  ;;  %2555 = vmatpush.bf16.msra.mxu1 %v5246_v38  ;;  %v6370_v38 = vld [vmem:[#allocation17 + $0xf4] sm:$0xf0] }
 0x23c   :  { %2568 = vmatpush.bf16.msra.mxu2 %v5122_v39  ;;  %2581 = vmatpush.bf16.msra.mxu3 %v5250_v43  ;;  %v6353_v39 = vld [vmem:[#allocation17 + $0x74] sm:$0xf]  ;;  %v6577_v43 = vld [vmem:[#allocation5 + $0x8] sm:$0xff]  ;;  %v5438_v46 = vor.u32 %v6370_v38, %v5437_v37 }
 0x23d   :  { %v5378_v49 = vor.u32 %v6353_v39, %v5375_v33  ;;  %v5333_v39 = vld [vmem:[#allocation17 + $0x20] sm:$0xf] }
 0x23f   :  { %2543 = vmatpush.bf16.msra.mxu0 %v5102_v47  ;;  %2556 = vmatpush.bf16.msra.mxu1 %v5230_v51  ;;  %v5365_v47 = vld [vmem:[#allocation17 + $0x60] sm:$0xf] }
 0x240   :  { %2569 = vmatpush.bf16.msra.mxu2 %v5106_v53  ;;  %2582 = vmatpush.bf16.msra.mxu3 %v5234_v57  ;;  %v5429_v51 = vld [vmem:[#allocation17 + $0xe0] sm:$0xf]  ;;  %v6368_v53 = vld [vmem:[#allocation17 + $0xe4] sm:$0xf0]  ;;  %v6367_v57 = vld [vmem:[#allocation17 + $0xe4] sm:$0xf]  ;;  %v5366_v0 = vor.u32 %v6352_v48, %v5365_v47 }
 0x241   :  { %v5430_v1 = vor.u32 %v6368_v53, %v5429_v51  ;;  %v5434_v5 = vor.u32 %v6367_v57, %v5431_v61  ;;  %v6359_v47 = vld [vmem:[#allocation17 + $0xa4] sm:$0xf]  ;;  %v5399_v48 = vld [vmem:[#allocation17 + $0xa8] sm:$0xf0]  ;;  %v5325_v51 = vld [vmem:[#allocation17 + $0x10] sm:$0xf] }
 0x242   :  { %v6342_v53 = vld [vmem:[#allocation17 + $0x14] sm:$0xf0]  ;;  %v5402_v56 = vor.u32 %v6359_v47, %v5399_v48  ;;  %v5389_v57 = vld [vmem:[#allocation17 + $0x90] sm:$0xf] }
 0x243   :  { %2544 = vmatpush.bf16.msra.mxu0 %v5086_v63  ;;  %2557 = vmatpush.bf16.msra.mxu1 %v5214_v7  ;;  %v6350_v63 = vld [vmem:[#allocation17 + $0x54] sm:$0xf0] }
 0x244   :  { %2570 = vmatpush.bf16.msra.mxu2 %v5090_v8  ;;  %2583 = vmatpush.bf16.msra.mxu3 %v5218_v11  ;;  %v6366_v7 = vld [vmem:[#allocation17 + $0xd4] sm:$0xf0]  ;;  %v6349_v8 = vld [vmem:[#allocation17 + $0x54] sm:$0xf]  ;;  %v5423_v11 = vld [vmem:[#allocation17 + $0xd8] sm:$0xf0]  ;;  %v5358_v28 = vor.u32 %v6350_v63, %v5357_v2 }
 0x245   :  { %v5422_v31 = vor.u32 %v6366_v7, %v5421_v6  ;;  %v5362_v16 = vor.u32 %v6349_v8, %v5359_v9  ;;  %v5426_v17 = vor.u32 %v6365_v10, %v5423_v11  ;;  %v6358_v61 = vld [vmem:[#allocation17 + $0x94] sm:$0xf0]  ;;  %v6357_v2 = vld [vmem:[#allocation17 + $0x94] sm:$0xf]  ;;  %v5391_v63 = vld [vmem:[#allocation17 + $0x98] sm:$0xf0] }
 0x246   :  { %v5390_v6 = vor.u32 %v6358_v61, %v5389_v57  ;;  %v6340_v7 = vld [vmem:[#allocation17 + $0x4] sm:$0xf0]  ;;  %v5381_v8 = vld [vmem:[#allocation17 + $0x80] sm:$0xf]  ;;  %v5394_v11 = vor.u32 %v6357_v2, %v5391_v63 }
 0x247   :  { %2545 = vmatpush.bf16.msra.mxu0 %v5070_v15  ;;  %2558 = vmatpush.bf16.msra.mxu1 %v5198_v19  ;;  %v6348_v15 = vld [vmem:[#allocation17 + $0x44] sm:$0xf0]  ;;  %v5509_v63 = vld [vmem:[#allocation19 + $0x80] sm:$0xf] }
 0x248   :  { %2571 = vmatpush.bf16.msra.mxu2 %v5074_v20  ;;  %2584 = vmatpush.bf16.msra.mxu3 %v5202_v55  ;;  %v6364_v19 = vld [vmem:[#allocation17 + $0xc4] sm:$0xf0]  ;;  %v6347_v20 = vld [vmem:[#allocation17 + $0x44] sm:$0xf]  ;;  %v5415_v55 = vld [vmem:[#allocation17 + $0xc8] sm:$0xf0]  ;;  %v5350_v52 = vor.u32 %v6348_v15, %v5349_v12 }
 0x249   :  { %v5414_v3 = vor.u32 %v6364_v19, %v5413_v18  ;;  %v6356_v9 = vld [vmem:[#allocation17 + $0x84] sm:$0xf0]  ;;  %v6355_v12 = vld [vmem:[#allocation17 + $0x84] sm:$0xf]  ;;  %v5383_v15 = vld [vmem:[#allocation17 + $0x88] sm:$0xf0] }
 0x24a   :  { %v5685_v18 = vld [vmem:[#allocation19 + $0x1e0] sm:$0xf]  ;;  %v6433_v19 = vld [vmem:[#allocation19 + $0x1ec] sm:$0xf0] }
 0x279   :  { %v1830_v24 = vpop.xlane.xlu1 %1829 }
 0x27a   :  { %6559 = vrcp.f32 %v1830_v24  ;;  %v5341_v24 = vld [vmem:[#allocation17 + $0x30] sm:$0xf] }
 0x27b   :  { %v5342_v37 = vor.u32 %v6346_v27, %v5341_v24  ;;  %v5386_v27 = vor.u32 %v6355_v12, %v5383_v15  ;;  %v5493_v15 = vld [vmem:[#allocation19 + $0x60] sm:$0xf] }
 0x280   :  { %v6560_v22 = vpop.eup %6559 }
 0x281   :  { %v1832_v25 = vmul.f32 %v6560_v22, %v7241_v60  ;;  %v1833_v30 = vmul.f32 %v6560_v22, %v7243_v62  ;;  %v5418_v22 = vor.u32 %v6363_v50, %v5415_v55  ;;  %v5382_v50 = vor.u32 %v6356_v9, %v5381_v8  ;;  %v5559_v55 = vld [vmem:[#allocation19 + $0xf0] sm:$0xf0]  ;;  %v6421_v8 = vld [vmem:[#allocation19 + $0x18c] sm:$0xf0]  ;;  %v6387_v9 = vld [vmem:[#allocation19 + $0x84] sm:$0xf] }
 0x283   :  { %v1834_v32 = vmul.f32 %v1832_v25, %v7268_v58  ;;  %v1835_v34 = vmul.f32 %v1833_v30, %v1812_v29  ;;  %v5374_v58 = vor.u32 %v6354_v36, %v5373_v35  ;;  %v5354_v29 = vor.u32 %v6347_v20, %v5351_v21  ;;  %v5405_v25 = vld [vmem:[#allocation17 + $0xb0] sm:$0xf]  ;;  %v6362_v30 = vld [vmem:[#allocation17 + $0xb4] sm:$0xf0]  ;;  %v6361_v35 = vld [vmem:[#allocation17 + $0xb4] sm:$0xf] }
 0x284   :  { %v5407_v36 = vld [vmem:[#allocation17 + $0xb8] sm:$0xf0]  ;;  %v5406_v38 = vor.u32 %v6362_v30, %v5405_v25  ;;  %v6399_v20 = vld [vmem:[#allocation19 + $0xe4] sm:$0xf]  ;;  %v5541_v25 = vld [vmem:[#allocation19 + $0xc0] sm:$0xf] }
 0x285   :  { %v7279_v42 = vadd.f32 %v6576_v41, %v1834_v32  ;;  %v7281_v59 = vadd.f32 %v6577_v43, %v1835_v34  ;;  %v6345_v32 = vld [vmem:[#allocation17 + $0x34] sm:$0xf]  ;;  %v5343_v34 = vld [vmem:[#allocation17 + $0x38] sm:$0xf0]  ;;  %v6344_v41 = vld [vmem:[#allocation17 + $0x24] sm:$0xf0]  ;;  %v5410_v33 = vor.u32 %v6361_v35, %v5407_v36 }
 0x286   :  { %v5346_v43 = vor.u32 %v6345_v32, %v5343_v34  ;;  %v6397_v30 = vld [vmem:[#allocation19 + $0xcc] sm:$0xf0]  ;;  %v5669_v32 = vld [vmem:[#allocation19 + $0x1c0] sm:$0xf]  ;;  %v5562_v34 = vor.u32 %v6399_v20, %v5559_v55 }
 0x287   :  { %v7285_v60 = vpack.c.bf16 %v7279_v42, %v7279_v42  ;;  %v7289_v62 = vpack.c.bf16 %v7281_v59, %v7281_v59  ;;  %v6429_v36 = vld [vmem:[#allocation19 + $0x1cc] sm:$0xf0] }
 0x288   :  { %v6417_v20 = vld [vmem:[#allocation19 + $0x16c] sm:$0xf0] }
 0x289   :  { %2494 = vmatmul.bf16.vlgmr.msrb.gmra.mxu0 %v7285_v60  ;;  %2507 = vmatmul.bf16.vlgmr.msrb.gmra.mxu1 %v7289_v62 }
 0x28a   :  { %2520 = vmatmul.bf16.vlgmr.msrb.gmra.mxu2 %v7285_v60  ;;  %2533 = vmatmul.bf16.vlgmr.msrb.gmra.mxu3 %v7289_v62 }
 0x28b   :  { %2811 = vmatpush.bf16.msrb.mxu0 %v5374_v58  ;;  %2824 = vmatpush.bf16.msrb.mxu1 %v5438_v46  ;;  %v6343_v58 = vld [vmem:[#allocation17 + $0x24] sm:$0xf]  ;;  %v5335_v46 = vld [vmem:[#allocation17 + $0x28] sm:$0xf0] }
 0x28c   :  { %2837 = vmatpush.bf16.msrb.mxu2 %v5378_v49  ;;  %2850 = vmatpush.bf16.msrb.mxu3 %v5442_v40  ;;  %v5334_v49 = vor.u32 %v6344_v41, %v5333_v39  ;;  %v5398_v40 = vor.u32 %v6360_v45, %v5397_v44  ;;  %v5338_v54 = vor.u32 %v6343_v58, %v5335_v46  ;;  %v5543_v39 = vld [vmem:[#allocation19 + $0xd0] sm:$0xf0]  ;;  %v6427_v41 = vld [vmem:[#allocation19 + $0x1c4] sm:$0xf]  ;;  %v5525_v45 = vld [vmem:[#allocation19 + $0xa0] sm:$0xf] }
 0x28d   :  { %v5670_v44 = vor.u32 %v6429_v36, %v5669_v32  ;;  %v6393_v58 = vld [vmem:[#allocation19 + $0xac] sm:$0xf0]  ;;  %v5477_v32 = vld [vmem:[#allocation19 + $0x40] sm:$0xf] }
 0x28f   :  { %2812 = vmatpush.bf16.msrb.mxu0 %v5366_v0  ;;  %2825 = vmatpush.bf16.msrb.mxu1 %v5430_v1  ;;  %v6341_v0 = vld [vmem:[#allocation17 + $0x14] sm:$0xf]  ;;  %v5327_v1 = vld [vmem:[#allocation17 + $0x18] sm:$0xf0] }
 0x290   :  { %2838 = vmatpush.bf16.msrb.mxu2 %v5370_v4  ;;  %2851 = vmatpush.bf16.msrb.mxu3 %v5434_v5  ;;  %v5317_v4 = vld [vmem:[#allocation17] sm:$0xf]  ;;  %v5326_v5 = vor.u32 %v6342_v53, %v5325_v51  ;;  %v5330_v10 = vor.u32 %v6341_v0, %v5327_v1  ;;  %v6391_v51 = vld [vmem:[#allocation19 + $0xa4] sm:$0xf]  ;;  %v5527_v53 = vld [vmem:[#allocation19 + $0xb0] sm:$0xf0]  ;;  %v5526_v0 = vor.u32 %v6393_v58, %v5525_v45 }
 0x291   :  { %v5318_v21 = vor.u32 %v6340_v7, %v5317_v4  ;;  %v6389_v4 = vld [vmem:[#allocation19 + $0x8c] sm:$0xf0]  ;;  %v5637_v7 = vld [vmem:[#allocation19 + $0x180] sm:$0xf] }
 0x292   :  { %v5638_v12 = vor.u32 %v6421_v8, %v5637_v7 }
 0x293   :  { %2813 = vmatpush.bf16.msrb.mxu0 %v5358_v28  ;;  %2826 = vmatpush.bf16.msrb.mxu1 %v5422_v31  ;;  %v6339_v28 = vld [vmem:[#allocation17 + $0x4] sm:$0xf]  ;;  %v5319_v31 = vld [vmem:[#allocation17 + $0x8] sm:$0xf0] }
 0x294   :  { %2839 = vmatpush.bf16.msrb.mxu2 %v5362_v16  ;;  %2852 = vmatpush.bf16.msrb.mxu3 %v5426_v17  ;;  %v5557_v16 = vld [vmem:[#allocation19 + $0xe0] sm:$0xf]  ;;  %v6401_v17 = vld [vmem:[#allocation19 + $0xec] sm:$0xf0]  ;;  %v5322_v24 = vor.u32 %v6339_v28, %v5319_v31  ;;  %v5510_v31 = vor.u32 %v6389_v4, %v5509_v63 }
 0x295   :  { %v6373_v4 = vld [vmem:[#allocation19 + $0xc] sm:$0xf0] }
 0x297   :  { %2814 = vmatpush.bf16.msrb.mxu0 %v5350_v52  ;;  %2827 = vmatpush.bf16.msrb.mxu1 %v5414_v3  ;;  %v6431_v52 = vld [vmem:[#allocation19 + $0x1e4] sm:$0xf]  ;;  %v5687_v3 = vld [vmem:[#allocation19 + $0x1f0] sm:$0xf0] }
 0x298   :  { %2840 = vmatpush.bf16.msrb.mxu2 %v5354_v29  ;;  %2853 = vmatpush.bf16.msrb.mxu3 %v5418_v22  ;;  %v5558_v29 = vor.u32 %v6401_v17, %v5557_v16  ;;  %v5686_v22 = vor.u32 %v6433_v19, %v5685_v18  ;;  %v5690_v35 = vor.u32 %v6431_v52, %v5687_v3  ;;  %v6385_v16 = vld [vmem:[#allocation19 + $0x6c] sm:$0xf0]  ;;  %v5621_v19 = vld [vmem:[#allocation19 + $0x160] sm:$0xf]  ;;  %v5495_v52 = vld [vmem:[#allocation19 + $0x70] sm:$0xf0] }
 0x299   :  { %2546 = vmatmul.bf16.vlgmr.msra.gmra.mxu0 %v7285_v60  ;;  %2559 = vmatmul.bf16.vlgmr.msra.gmra.mxu1 %v7289_v62  ;;  %v6415_v3 = vld [vmem:[#allocation19 + $0x164] sm:$0xf] }
 0x29a   :  { %2572 = vmatmul.bf16.vlgmr.msra.gmra.mxu2 %v7285_v60  ;;  %2585 = vmatmul.bf16.vlgmr.msra.gmra.mxu3 %v7289_v62 }
 0x29b   :  { %2815 = vmatpush.bf16.msrb.mxu0 %v5342_v37  ;;  %2828 = vmatpush.bf16.msrb.mxu1 %v5406_v38  ;;  %v6395_v37 = vld [vmem:[#allocation19 + $0xc4] sm:$0xf]  ;;  %v7299_v38 = vld [vmem:[#allocation14] sm:$0x3] }
 0x29c   :  { %2841 = vmatpush.bf16.msrb.mxu2 %v5346_v43  ;;  %2854 = vmatpush.bf16.msrb.mxu3 %v5410_v33  ;;  %v5671_v43 = vld [vmem:[#allocation19 + $0x1d0] sm:$0xf0]  ;;  %v5542_v33 = vor.u32 %v6397_v30, %v5541_v25  ;;  %v1874_v46 = vperm.slane %v7299_v38, 0  ;;  %v5546_v47 = vor.u32 %v6395_v37, %v5543_v39  ;;  %v1875_v28 = vperm.slane %v7299_v38, 1  ;;  %v5605_v38 = vld [vmem:[#allocation19 + $0x140] sm:$0xf] }
 0x29d   :  { %v5674_v48 = vor.u32 %v6427_v41, %v5671_v43  ;;  %v5494_v25 = vor.u32 %v6385_v16, %v5493_v15  ;;  %v5622_v30 = vor.u32 %v6417_v20, %v5621_v19  ;;  %v6413_v39 = vld [vmem:[#allocation19 + $0x14c] sm:$0xf0]  ;;  %v6379_v41 = vld [vmem:[#allocation19 + $0x44] sm:$0xf]  ;;  %v5479_v43 = vld [vmem:[#allocation19 + $0x50] sm:$0xf0] }
 0x29e   :  { %v5606_v58 = vor.u32 %v6413_v39, %v5605_v38  ;;  %v6434_v15 = vld [vmem:[#allocation19 + $0x1f4] sm:$0xf0]  ;;  %v6400_v16 = vld [vmem:[#allocation19 + $0xec] sm:$0xf]  ;;  %v5567_v19 = vld [vmem:[#allocation19 + $0xf8] sm:$0xf0] }
 0x29f   :  { %2816 = vmatpush.bf16.msrb.mxu0 %v5334_v49  ;;  %2829 = vmatpush.bf16.msrb.mxu1 %v5398_v40  ;;  %v5653_v49 = vld [vmem:[#allocation19 + $0x1a0] sm:$0xf]  ;;  %v6425_v40 = vld [vmem:[#allocation19 + $0x1ac] sm:$0xf0]  ;;  %v6432_v20 = vld [vmem:[#allocation19 + $0x1ec] sm:$0xf] }
 0x2a0   :  { %2842 = vmatpush.bf16.msrb.mxu2 %v5338_v54  ;;  %2855 = vmatpush.bf16.msrb.mxu3 %v5402_v56  ;;  %v6423_v54 = vld [vmem:[#allocation19 + $0x1a4] sm:$0xf]  ;;  %v5655_v56 = vld [vmem:[#allocation19 + $0x1b0] sm:$0xf0]  ;;  %v5654_v1 = vor.u32 %v6425_v40, %v5653_v49  ;;  %v5589_v40 = vld [vmem:[#allocation19 + $0x120] sm:$0xf] }
 0x2a3   :  { %2817 = vmatpush.bf16.msrb.mxu0 %v5326_v5  ;;  %2830 = vmatpush.bf16.msrb.mxu1 %v5390_v6  ;;  %v5530_v5 = vor.u32 %v6391_v51, %v5527_v53  ;;  %v5658_v6 = vor.u32 %v6423_v54, %v5655_v56  ;;  %v6409_v51 = vld [vmem:[#allocation19 + $0x12c] sm:$0xf0]  ;;  %v6375_v53 = vld [vmem:[#allocation19 + $0x24] sm:$0xf] }
 0x2a4   :  { %2843 = vmatpush.bf16.msrb.mxu2 %v5330_v10  ;;  %2856 = vmatpush.bf16.msrb.mxu3 %v5394_v11  ;;  %v5639_v11 = vld [vmem:[#allocation19 + $0x190] sm:$0xf0]  ;;  %v5590_v63 = vor.u32 %v6409_v51, %v5589_v40 }
 0x2a6   :  { %v2047_v57 = vpop.f32.mrf.mxu0  ;;  %v2060_v61 = vpop.f32.mrf.mxu1 }
 0x2a7   :  { %2818 = vmatpush.bf16.msrb.mxu0 %v5318_v21  ;;  %2831 = vmatpush.bf16.msrb.mxu1 %v5382_v50  ;;  %v2048_v2 = vadd.f32 %v2047_v57, %v1874_v46  ;;  %v6383_v21 = vld [vmem:[#allocation19 + $0x64] sm:$0xf]  ;;  %v5461_v46 = vld [vmem:[#allocation19 + $0x20] sm:$0xf]  ;;  %v5463_v57 = vld [vmem:[#allocation19 + $0x30] sm:$0xf0] }
 0x2a8   :  { %2844 = vmatpush.bf16.msrb.mxu2 %v5322_v24  ;;  %2857 = vmatpush.bf16.msrb.mxu3 %v5386_v27  ;;  %v5623_v24 = vld [vmem:[#allocation19 + $0x170] sm:$0xf0]  ;;  %v5498_v36 = vor.u32 %v6383_v21, %v5495_v52  ;;  %v5466_v7 = vor.u32 %v6375_v53, %v5463_v57  ;;  %v5695_v21 = vld [vmem:[#allocation19 + $0x1f8] sm:$0xf0]  ;;  %v5517_v53 = vld [vmem:[#allocation19 + $0x88] sm:$0xf] }
 0x2a9   :  { %v7306_v10 = vadd.f32 %v2060_v61, %v2048_v2  ;;  %v5626_v37 = vor.u32 %v6415_v3, %v5623_v24  ;;  %v6407_v61 = vld [vmem:[#allocation19 + $0x124] sm:$0xf]  ;;  %v5549_v24 = vld [vmem:[#allocation19 + $0xc8] sm:$0xf] }
 0x2aa   :  { %2819 = vmatmul.bf16.vlgmr.msrb.gmra.mxu0 %v7285_v60  ;;  %2832 = vmatmul.bf16.vlgmr.msrb.gmra.mxu1 %v7289_v62 }
 0x2ab   :  { %3257 = vmatpush.bf16.msra.mxu0 %v5558_v29  ;;  %3270 = vmatpush.bf16.msra.mxu1 %v5686_v22 }
 0x2ac   :  { %3283 = vmatpush.bf16.msra.mxu2 %v5562_v34  ;;  %3296 = vmatpush.bf16.msra.mxu3 %v5690_v35  ;;  %v6381_v34 = vld [vmem:[#allocation19 + $0x4c] sm:$0xf0] }
 0x2ad   :  { %2845 = vmatmul.bf16.vlgmr.msrb.gmra.mxu2 %v7285_v60  ;;  %2858 = vmatmul.bf16.vlgmr.msrb.gmra.mxu3 %v7289_v62  ;;  %v5511_v60 = vld [vmem:[#allocation19 + $0x90] sm:$0xf0]  ;;  %v6419_v62 = vld [vmem:[#allocation19 + $0x184] sm:$0xf]  ;;  %v2073_v50 = vpop.f32.mrf.mxu2  ;;  %v2086_v55 = vpop.f32.mrf.mxu3  ;;  %v5478_v45 = vor.u32 %v6381_v34, %v5477_v32  ;;  %v6396_v32 = vld [vmem:[#allocation19 + $0xcc] sm:$0xf] }
 0x2ae   :  { %v5514_v17 = vor.u32 %v6387_v9, %v5511_v60  ;;  %v5642_v18 = vor.u32 %v6419_v62, %v5639_v11  ;;  %v2074_v27 = vadd.f32 %v2073_v50, %v1875_v28  ;;  %v2049_v29 = vpop.f32.mrf.mxu0  ;;  %v2062_v22 = vpop.f32.mrf.mxu1  ;;  %v6371_v9 = vld [vmem:[#allocation19 + $0x4] sm:$0xf]  ;;  %v5447_v60 = vld [vmem:[#allocation19 + $0x10] sm:$0xf0]  ;;  %v5565_v28 = vld [vmem:[#allocation19 + $0xe8] sm:$0xf] }
 0x2af   :  { %3258 = vmatpush.bf16.msra.mxu0 %v5542_v33  ;;  %3271 = vmatpush.bf16.msra.mxu1 %v5670_v44  ;;  %v6411_v33 = vld [vmem:[#allocation19 + $0x144] sm:$0xf]  ;;  %v5607_v44 = vld [vmem:[#allocation19 + $0x150] sm:$0xf0]  ;;  %v5450_v50 = vor.u32 %v6371_v9, %v5447_v60  ;;  %v5570_v29 = vor.u32 %v6400_v16, %v5567_v19  ;;  %v5698_v22 = vor.u32 %v6432_v20, %v5695_v21  ;;  %v5551_v34 = vld [vmem:[#allocation19 + $0xd8] sm:$0xf0] }
 0x2b0   :  { %3284 = vmatpush.bf16.msra.mxu2 %v5546_v47  ;;  %3297 = vmatpush.bf16.msra.mxu3 %v5674_v48  ;;  %v7309_v35 = vadd.f32 %v2086_v55, %v2074_v27  ;;  %v6377_v47 = vld [vmem:[#allocation19 + $0x2c] sm:$0xf0]  ;;  %v5482_v48 = vor.u32 %v6379_v41, %v5479_v43  ;;  %v5610_v49 = vor.u32 %v6411_v33, %v5607_v44  ;;  %v6403_v62 = vld [vmem:[#allocation19 + $0x104] sm:$0xf]  ;;  %v5575_v11 = vld [vmem:[#allocation19 + $0x110] sm:$0xf0] }
 0x2b1   :  { %v5462_v2 = vor.u32 %v6377_v47, %v5461_v46  ;;  %v5578_v55 = vor.u32 %v6403_v62, %v5575_v11  ;;  %v6398_v27 = vld [vmem:[#allocation19 + $0xd4] sm:$0xf0]  ;;  %v5533_v41 = vld [vmem:[#allocation19 + $0xa8] sm:$0xf]  ;;  %v5554_v33 = vor.u32 %v6396_v32, %v5551_v34  ;;  %v6392_v46 = vld [vmem:[#allocation19 + $0xac] sm:$0xf] }
 0x2b2   :  { %v5550_v38 = vor.u32 %v6398_v27, %v5549_v24  ;;  %v6394_v43 = vld [vmem:[#allocation19 + $0xb4] sm:$0xf0]  ;;  %v5535_v47 = vld [vmem:[#allocation19 + $0xb8] sm:$0xf0]  ;;  %v5629_v62 = vld [vmem:[#allocation19 + $0x168] sm:$0xf] }
 0x2b3   :  { %3259 = vmatpush.bf16.msra.mxu0 %v5526_v0  ;;  %3272 = vmatpush.bf16.msra.mxu1 %v5654_v1  ;;  %v5591_v0 = vld [vmem:[#allocation19 + $0x130] sm:$0xf0]  ;;  %v5445_v1 = vld [vmem:[#allocation19] sm:$0xf]  ;;  %v5534_v40 = vor.u32 %v6394_v43, %v5533_v41  ;;  %v6418_v11 = vld [vmem:[#allocation19 + $0x174] sm:$0xf0] }
 0x2b4   :  { %3285 = vmatpush.bf16.msra.mxu2 %v5530_v5  ;;  %3298 = vmatpush.bf16.msra.mxu3 %v5658_v6  ;;  %v5573_v5 = vld [vmem:[#allocation19 + $0x100] sm:$0xf]  ;;  %v6405_v6 = vld [vmem:[#allocation19 + $0x10c] sm:$0xf0]  ;;  %v5594_v8 = vor.u32 %v6407_v61, %v5591_v0  ;;  %v5645_v61 = vld [vmem:[#allocation19 + $0x188] sm:$0xf] }
 0x2b5   :  { %v2075_v54 = vpop.f32.mrf.mxu2  ;;  %v2088_v56 = vpop.f32.mrf.mxu3  ;;  %v6422_v0 = vld [vmem:[#allocation19 + $0x194] sm:$0xf0]  ;;  %v6412_v24 = vld [vmem:[#allocation19 + $0x14c] sm:$0xf]  ;;  %v5615_v27 = vld [vmem:[#allocation19 + $0x158] sm:$0xf0] }
 0x2b6   :  { %v6390_v54 = vld [vmem:[#allocation19 + $0x94] sm:$0xf0]  ;;  %v5538_v56 = vor.u32 %v6392_v46, %v5535_v47  ;;  %v5618_v34 = vor.u32 %v6412_v24, %v5615_v27  ;;  %v6408_v41 = vld [vmem:[#allocation19 + $0x12c] sm:$0xf]  ;;  %v5599_v43 = vld [vmem:[#allocation19 + $0x138] sm:$0xf0] }
 0x2b7   :  { %3260 = vmatpush.bf16.msra.mxu0 %v5510_v31  ;;  %3273 = vmatpush.bf16.msra.mxu1 %v5638_v12  ;;  %v6402_v31 = vld [vmem:[#allocation19 + $0xf4] sm:$0xf0]  ;;  %v5693_v12 = vld [vmem:[#allocation19 + $0x1e8] sm:$0xf]  ;;  %v5602_v47 = vor.u32 %v6408_v41, %v5599_v43 }
 0x2b8   :  { %3286 = vmatpush.bf16.msra.mxu2 %v5514_v17  ;;  %3299 = vmatpush.bf16.msra.mxu3 %v5642_v18  ;;  %v5446_v17 = vor.u32 %v6373_v4, %v5445_v1  ;;  %v5574_v18 = vor.u32 %v6405_v6, %v5573_v5  ;;  %v5566_v52 = vor.u32 %v6402_v31, %v5565_v28  ;;  %v6388_v1 = vld [vmem:[#allocation19 + $0x8c] sm:$0xf]  ;;  %v5647_v4 = vld [vmem:[#allocation19 + $0x198] sm:$0xf0]  ;;  %v6382_v19 = vld [vmem:[#allocation19 + $0x54] sm:$0xf0] }
 0x2b9   :  { %v5694_v3 = vor.u32 %v6434_v15, %v5693_v12  ;;  %v5518_v5 = vor.u32 %v6390_v54, %v5517_v53  ;;  %v5646_v6 = vor.u32 %v6422_v0, %v5645_v61  ;;  %v6384_v28 = vld [vmem:[#allocation19 + $0x6c] sm:$0xf]  ;;  %v5503_v31 = vld [vmem:[#allocation19 + $0x78] sm:$0xf0] }
 0x2ba   :  { %v6416_v12 = vld [vmem:[#allocation19 + $0x16c] sm:$0xf]  ;;  %v5631_v15 = vld [vmem:[#allocation19 + $0x178] sm:$0xf0]  ;;  %v5506_v20 = vor.u32 %v6384_v28, %v5503_v31 }
 0x2bb   :  { %3261 = vmatpush.bf16.msra.mxu0 %v5494_v25  ;;  %3274 = vmatpush.bf16.msra.mxu1 %v5622_v30  ;;  %v5677_v25 = vld [vmem:[#allocation19 + $0x1c8] sm:$0xf]  ;;  %v6430_v30 = vld [vmem:[#allocation19 + $0x1d4] sm:$0xf0]  ;;  %v5634_v21 = vor.u32 %v6416_v12, %v5631_v15  ;;  %v6404_v53 = vld [vmem:[#allocation19 + $0x10c] sm:$0xf] }
 0x2bc   :  { %3287 = vmatpush.bf16.msra.mxu2 %v5498_v36  ;;  %3300 = vmatpush.bf16.msra.mxu3 %v5626_v37  ;;  %v6428_v36 = vld [vmem:[#allocation19 + $0x1cc] sm:$0xf]  ;;  %v5679_v37 = vld [vmem:[#allocation19 + $0x1d8] sm:$0xf0]  ;;  %v5678_v39 = vor.u32 %v6430_v30, %v5677_v25  ;;  %v5469_v25 = vld [vmem:[#allocation19 + $0x28] sm:$0xf] }
 0x2bd   :  { %v5682_v44 = vor.u32 %v6428_v36, %v5679_v37  ;;  %v6378_v30 = vld [vmem:[#allocation19 + $0x34] sm:$0xf0]  ;;  %v5597_v36 = vld [vmem:[#allocation19 + $0x128] sm:$0xf]  ;;  %v5583_v54 = vld [vmem:[#allocation19 + $0x118] sm:$0xf0] }
 0x2be   :  { %v6410_v37 = vld [vmem:[#allocation19 + $0x134] sm:$0xf0]  ;;  %v5586_v0 = vor.u32 %v6404_v53, %v5583_v54 }
 0x2bf   :  { %3262 = vmatpush.bf16.msra.mxu0 %v5478_v45  ;;  %3275 = vmatpush.bf16.msra.mxu1 %v5606_v58  ;;  %v5661_v45 = vld [vmem:[#allocation19 + $0x1a8] sm:$0xf]  ;;  %v6426_v58 = vld [vmem:[#allocation19 + $0x1b4] sm:$0xf0] }
 0x2c0   :  { %3288 = vmatpush.bf16.msra.mxu2 %v5482_v48  ;;  %3301 = vmatpush.bf16.msra.mxu3 %v5610_v49  ;;  %v6424_v48 = vld [vmem:[#allocation19 + $0x1ac] sm:$0xf]  ;;  %v5663_v49 = vld [vmem:[#allocation19 + $0x1b8] sm:$0xf0]  ;;  %v5662_v51 = vor.u32 %v6426_v58, %v5661_v45  ;;  %v5453_v45 = vld [vmem:[#allocation19 + $0x8] sm:$0xf] }
 0x2c1   :  { %v5666_v57 = vor.u32 %v6424_v48, %v5663_v49  ;;  %v6374_v58 = vld [vmem:[#allocation19 + $0x14] sm:$0xf0]  ;;  %v5581_v48 = vld [vmem:[#allocation19 + $0x108] sm:$0xf] }
 0x2c2   :  { %v6406_v49 = vld [vmem:[#allocation19 + $0x114] sm:$0xf0] }
 0x2c3   :  { %3263 = vmatpush.bf16.msra.mxu0 %v5462_v2  ;;  %3276 = vmatpush.bf16.msra.mxu1 %v5590_v63  ;;  %v5519_v2 = vld [vmem:[#allocation19 + $0x98] sm:$0xf0]  ;;  %v6420_v63 = vld [vmem:[#allocation19 + $0x18c] sm:$0xf] }
 0x2c4   :  { %3289 = vmatpush.bf16.msra.mxu2 %v5466_v7  ;;  %3302 = vmatpush.bf16.msra.mxu3 %v5594_v8  ;;  %v5501_v7 = vld [vmem:[#allocation19 + $0x68] sm:$0xf]  ;;  %v6386_v8 = vld [vmem:[#allocation19 + $0x74] sm:$0xf0]  ;;  %v5522_v9 = vor.u32 %v6388_v1, %v5519_v2  ;;  %v5650_v60 = vor.u32 %v6420_v63, %v5647_v4  ;;  %v2156_v1 = vld [vmem:[%s7399_s9] sm:$0xf] }
 0x2c5   :  { %v5502_v16 = vor.u32 %v6386_v8, %v5501_v7  ;;  %v2158_v2 = vperm.slane %v2156_v1, 0  ;;  %v2159_v7 = vperm.slane %v2156_v1, 1  ;;  %v2160_v31 = vperm.slane %v2156_v1, 2 }
 0x2c7   :  { %3264 = vmatpush.bf16.msra.mxu0 %v5446_v17  ;;  %3277 = vmatpush.bf16.msra.mxu1 %v5574_v18  ;;  %v5630_v17 = vor.u32 %v6418_v11, %v5629_v62  ;;  %v5485_v18 = vld [vmem:[#allocation19 + $0x48] sm:$0xf] }
 0x2c8   :  { %3290 = vmatpush.bf16.msra.mxu2 %v5450_v50  ;;  %3303 = vmatpush.bf16.msra.mxu3 %v5578_v55  ;;  %v5613_v50 = vld [vmem:[#allocation19 + $0x148] sm:$0xf]  ;;  %v6414_v55 = vld [vmem:[#allocation19 + $0x154] sm:$0xf0] }
 0x2ca   :  { %3265 = vmatmul.bf16.vlgmr.msra.gmra.mxu0 %v7257_v13  ;;  %3278 = vmatmul.bf16.vlgmr.msra.gmra.mxu1 %v7261_v14 }
 0x2cb   :  { %3309 = vmatpush.bf16.msrb.mxu0 %v5566_v52  ;;  %3322 = vmatpush.bf16.msrb.mxu1 %v5694_v3  ;;  %v6380_v52 = vld [vmem:[#allocation19 + $0x4c] sm:$0xf]  ;;  %v5487_v3 = vld [vmem:[#allocation19 + $0x58] sm:$0xf0] }
 0x2cc   :  { %3335 = vmatpush.bf16.msrb.mxu2 %v5570_v29  ;;  %3348 = vmatpush.bf16.msrb.mxu3 %v5698_v22  ;;  %v5486_v29 = vor.u32 %v6382_v19, %v5485_v18  ;;  %v5614_v22 = vor.u32 %v6414_v55, %v5613_v50  ;;  %v5490_v32 = vor.u32 %v6380_v52, %v5487_v3 }
 0x2cd   :  { %3291 = vmatmul.bf16.vlgmr.msra.gmra.mxu2 %v7257_v13  ;;  %3304 = vmatmul.bf16.vlgmr.msra.gmra.mxu3 %v7261_v14 }
 0x2cf   :  { %3310 = vmatpush.bf16.msrb.mxu0 %v5550_v38  ;;  %3323 = vmatpush.bf16.msrb.mxu1 %v5678_v39  ;;  %v6376_v38 = vld [vmem:[#allocation19 + $0x2c] sm:$0xf]  ;;  %v5471_v39 = vld [vmem:[#allocation19 + $0x38] sm:$0xf0] }
 0x2d0   :  { %3336 = vmatpush.bf16.msrb.mxu2 %v5554_v33  ;;  %3349 = vmatpush.bf16.msrb.mxu3 %v5682_v44  ;;  %v5470_v33 = vor.u32 %v6378_v30, %v5469_v25  ;;  %v5598_v44 = vor.u32 %v6410_v37, %v5597_v36  ;;  %v5474_v46 = vor.u32 %v6376_v38, %v5471_v39  ;;  %v2927_v37 = vld [vmem:[%s7403_s13] sm:$0xf] }
 0x2d1   :  { %v2645_v38 = vld [vmem:[%s7401_s11] sm:$0x3]  ;;  %v2929_v39 = vperm.slane %v2927_v37, 0 }
 0x2d2   :  { %v2647_v41 = vperm.slane %v2645_v38, 0 }
 0x2d3   :  { %3311 = vmatpush.bf16.msrb.mxu0 %v5534_v40  ;;  %3324 = vmatpush.bf16.msrb.mxu1 %v5662_v51  ;;  %v6372_v40 = vld [vmem:[#allocation19 + $0xc] sm:$0xf]  ;;  %v5455_v51 = vld [vmem:[#allocation19 + $0x18] sm:$0xf0] }
 0x2d4   :  { %3337 = vmatpush.bf16.msrb.mxu2 %v5538_v56  ;;  %3350 = vmatpush.bf16.msrb.mxu3 %v5666_v57  ;;  %v5454_v56 = vor.u32 %v6374_v58, %v5453_v45  ;;  %v5582_v57 = vor.u32 %v6406_v49, %v5581_v48  ;;  %v5458_v61 = vor.u32 %v6372_v40, %v5455_v51 }
 0x2d7   :  { %3312 = vmatpush.bf16.msrb.mxu0 %v5518_v5  ;;  %3325 = vmatpush.bf16.msrb.mxu1 %v5646_v6 }
 0x2d8   :  { %3338 = vmatpush.bf16.msrb.mxu2 %v5522_v9  ;;  %3351 = vmatpush.bf16.msrb.mxu3 %v5650_v60 }
 0x2db   :  { %3313 = vmatpush.bf16.msrb.mxu0 %v5502_v16  ;;  %3326 = vmatpush.bf16.msrb.mxu1 %v5630_v17 }
 0x2dc   :  { %3339 = vmatpush.bf16.msrb.mxu2 %v5506_v20  ;;  %3352 = vmatpush.bf16.msrb.mxu3 %v5634_v21  ;;  %v2161_v20 = vperm.slane %v2156_v1, 3 }
 0x2df   :  { %3314 = vmatpush.bf16.msrb.mxu0 %v5486_v29  ;;  %3327 = vmatpush.bf16.msrb.mxu1 %v5614_v22 }
 0x2e0   :  { %3340 = vmatpush.bf16.msrb.mxu2 %v5490_v32  ;;  %3353 = vmatpush.bf16.msrb.mxu3 %v5618_v34 }
 0x2e3   :  { %3315 = vmatpush.bf16.msrb.mxu0 %v5470_v33  ;;  %3328 = vmatpush.bf16.msrb.mxu1 %v5598_v44  ;;  %v2648_v44 = vperm.slane %v2645_v38, 1  ;;  %v6496_v38 = vld [vmem:[#allocation22 + $0xe4] sm:$0xf0] }
 0x2e4   :  { %3341 = vmatpush.bf16.msrb.mxu2 %v5474_v46  ;;  %3354 = vmatpush.bf16.msrb.mxu3 %v5602_v47  ;;  %v2930_v46 = vperm.slane %v2927_v37, 1 }
 0x2e7   :  { %3316 = vmatpush.bf16.msrb.mxu0 %v5454_v56  ;;  %3329 = vmatpush.bf16.msrb.mxu1 %v5582_v57 }
 0x2e8   :  { %3342 = vmatpush.bf16.msrb.mxu2 %v5458_v61  ;;  %3355 = vmatpush.bf16.msrb.mxu3 %v5586_v0 }
 0x2ea   :  { %3317 = vmatmul.bf16.vlgmr.msrb.gmra.mxu0 %v7257_v13  ;;  %3330 = vmatmul.bf16.vlgmr.msrb.gmra.mxu1 %v7261_v14 }
 0x2eb   :  { %3343 = vmatmul.bf16.vlgmr.msrb.gmra.mxu2 %v7257_v13  ;;  %3356 = vmatmul.bf16.vlgmr.msrb.gmra.mxu3 %v7261_v14 }
 0x306   :  { %v2495_v63 = vpop.f32.mrf.mxu0  ;;  %v2508_v4 = vpop.f32.mrf.mxu1 }
 0x307   :  { %v2496_v5 = vadd.f32 %v2495_v63, %v2158_v2 }
 0x309   :  { %v2509_v6 = vadd.f32 %v2508_v4, %v2496_v5 }
 0x30b   :  { %v2590_v8 = vmul.f32 %v2509_v6, %v7306_v10 }
 0x30d   :  { %v2521_v9 = vpop.f32.mrf.mxu2  ;;  %v2534_v60 = vpop.f32.mrf.mxu3 }
 0x30e   :  { %v2522_v62 = vadd.f32 %v2521_v9, %v2159_v7  ;;  %v2497_v11 = vpop.f32.mrf.mxu0  ;;  %v2510_v28 = vpop.f32.mrf.mxu1  ;;  %v7342_v9 = vmul.f32 0.0625, %v2590_v8 }
 0x310   :  { %v2535_v13 = vadd.f32 %v2534_v60, %v2522_v62  ;;  %v2931_v62 = vperm.slane %v2927_v37, 2 }
 0x312   :  { %v2591_v14 = vmul.f32 %v2535_v13, %v7309_v35 }
 0x314   :  { %v7340_v7 = vmul.f32 0.0625, %v2591_v14 }
 0x315   :  { %v2523_v12 = vpop.f32.mrf.mxu2  ;;  %v2536_v15 = vpop.f32.mrf.mxu3 }
 0x316   :  { %v2547_v16 = vpop.f32.mrf.mxu0  ;;  %v2560_v17 = vpop.f32.mrf.mxu1  ;;  %v2594_v60 = vmax.f32 %v7342_v9, %v7340_v7  ;;  %v2932_v12 = vperm.slane %v2927_v37, 3  ;;  %v5813_v37 = vld [vmem:[#allocation22 + $0xe0] sm:$0xf] }
 0x317   :  { %v2548_v18 = vadd.f32 %v2547_v16, %v2160_v31 }
 0x319   :  { %v7324_v19 = vadd.f32 %v2560_v17, %v2548_v18 }
 0x31d   :  { %v2573_v21 = vpop.f32.mrf.mxu2  ;;  %v2586_v50 = vpop.f32.mrf.mxu3 }
 0x31e   :  { %v2574_v10 = vadd.f32 %v2573_v21, %v2161_v20  ;;  %v2549_v55 = vpop.f32.mrf.mxu0  ;;  %v2562_v52 = vpop.f32.mrf.mxu1 }
 0x31f   :  { %v5821_v55 = vld [vmem:[#allocation22 + $0xf0] sm:$0xf] }
 0x320   :  { %v7326_v3 = vadd.f32 %v2586_v50, %v2574_v10  ;;  %v5757_v50 = vld [vmem:[#allocation22 + $0x70] sm:$0xf]  ;;  %v6482_v10 = vld [vmem:[#allocation22 + $0x74] sm:$0xf0] }
 0x321   :  { %v5758_v52 = vor.u32 %v6482_v10, %v5757_v50 }
 0x323   :  { %3612 = vmatpush.bf16.msra.mxu0 %v5758_v52 }
 0x325   :  { %v2575_v24 = vpop.f32.mrf.mxu2  ;;  %v2588_v27 = vpop.f32.mrf.mxu3 }
 0x326   :  { %v6498_v24 = vld [vmem:[#allocation22 + $0xf4] sm:$0xf0]  ;;  %v6481_v27 = vld [vmem:[#allocation22 + $0x74] sm:$0xf] }
 0x327   :  { %v2820_v29 = vpop.f32.mrf.mxu0  ;;  %v2833_v35 = vpop.f32.mrf.mxu1 }
 0x328   :  { %v2821_v58 = vadd.f32 %v2820_v29, %v2647_v41  ;;  %v5759_v29 = vld [vmem:[#allocation22 + $0x78] sm:$0xf0]  ;;  %v5814_v41 = vor.u32 %v6496_v38, %v5813_v37  ;;  %v5781_v37 = vld [vmem:[#allocation22 + $0xa0] sm:$0xf]  ;;  %v6488_v38 = vld [vmem:[#allocation22 + $0xa4] sm:$0xf0] }
 0x32a   :  { %v2834_v51 = vadd.f32 %v2833_v35, %v2821_v58  ;;  %v5822_v35 = vor.u32 %v6498_v24, %v5821_v55  ;;  %v5815_v58 = vld [vmem:[#allocation22 + $0xe8] sm:$0xf0]  ;;  %v5789_v55 = vld [vmem:[#allocation22 + $0xb0] sm:$0xf]  ;;  %v6490_v24 = vld [vmem:[#allocation22 + $0xb4] sm:$0xf0] }
 0x32c   :  { %3625 = vmatpush.bf16.msra.mxu1 %v5822_v35 }
 0x32f   :  { %v2822_v30 = vpop.f32.mrf.mxu0  ;;  %v2835_v32 = vpop.f32.mrf.mxu1 }
 0x330   :  { %v2846_v22 = vpop.f32.mrf.mxu2  ;;  %v2859_v25 = vpop.f32.mrf.mxu3  ;;  %v5823_v30 = vld [vmem:[#allocation22 + $0xf8] sm:$0xf0]  ;;  %v5749_v32 = vld [vmem:[#allocation22 + $0x60] sm:$0xf]  ;;  %3626 = vmatpush.bf16.msra.mxu1 %v5814_v41 }
 0x331   :  { %v2847_v47 = vadd.f32 %v2846_v22, %v2648_v44  ;;  %v5762_v22 = vor.u32 %v6481_v27, %v5759_v29  ;;  %v6495_v44 = vld [vmem:[#allocation22 + $0xe4] sm:$0xf]  ;;  %v6473_v27 = vld [vmem:[#allocation22 + $0x34] sm:$0xf]  ;;  %v5791_v29 = vld [vmem:[#allocation22 + $0xb8] sm:$0xf0] }
 0x333   :  { %v2860_v57 = vadd.f32 %v2859_v25, %v2847_v47  ;;  %v6497_v25 = vld [vmem:[#allocation22 + $0xf4] sm:$0xf]  ;;  %3638 = vmatpush.bf16.msra.mxu2 %v5762_v22  ;;  %v6478_v47 = vld [vmem:[#allocation22 + $0x54] sm:$0xf0]  ;;  %v5790_v22 = vor.u32 %v6490_v24, %v5789_v55  ;;  %v5885_v24 = vld [vmem:[#allocation20 + $0x70] sm:$0xf] }
 0x338   :  { %v2848_v34 = vpop.f32.mrf.mxu2  ;;  %v2861_v36 = vpop.f32.mrf.mxu3 }
 0x339   :  { %v5826_v34 = vor.u32 %v6497_v25, %v5823_v30  ;;  %v6480_v36 = vld [vmem:[#allocation22 + $0x64] sm:$0xf0]  ;;  %v5717_v30 = vld [vmem:[#allocation22 + $0x20] sm:$0xf] }
 0x33b   :  { %3651 = vmatpush.bf16.msra.mxu3 %v5826_v34 }
 0x347   :  { %v3266_v43 = vpop.f32.mrf.mxu0  ;;  %v3279_v33 = vpop.f32.mrf.mxu1 }
 0x348   :  { %v3267_v45 = vadd.f32 %v3266_v43, %v2929_v39  ;;  %v5750_v39 = vor.u32 %v6480_v36, %v5749_v32  ;;  %v6479_v43 = vld [vmem:[#allocation22 + $0x64] sm:$0xf]  ;;  %v6472_v32 = vld [vmem:[#allocation22 + $0x24] sm:$0xf0] }
 0x34a   :  { %v3280_v48 = vadd.f32 %v3279_v33, %v3267_v45  ;;  %v5751_v33 = vld [vmem:[#allocation22 + $0x68] sm:$0xf0]  ;;  %3613 = vmatpush.bf16.msra.mxu0 %v5750_v39  ;;  %v6471_v39 = vld [vmem:[#allocation22 + $0x24] sm:$0xf] }
 0x34b   :  { %v5754_v45 = vor.u32 %v6479_v43, %v5751_v33  ;;  %v5719_v33 = vld [vmem:[#allocation22 + $0x28] sm:$0xf0] }
 0x34c   :  { %v3361_v0 = vmul.f32 %v3280_v48, %v2834_v51  ;;  %v5818_v48 = vor.u32 %v6495_v44, %v5815_v58  ;;  %v6477_v51 = vld [vmem:[#allocation22 + $0x54] sm:$0xf]  ;;  %v6487_v44 = vld [vmem:[#allocation22 + $0xa4] sm:$0xf]  ;;  %v5718_v58 = vor.u32 %v6472_v32, %v5717_v30 }
 0x34d   :  { %3639 = vmatpush.bf16.msra.mxu2 %v5754_v45  ;;  %v5783_v45 = vld [vmem:[#allocation22 + $0xa8] sm:$0xf0]  ;;  %v6465_v32 = vld [vmem:[#allocation20 + $0xf4] sm:$0xf] }
 0x34e   :  { %v7334_v2 = vmul.f32 0.0625, %v3361_v0  ;;  %3652 = vmatpush.bf16.msra.mxu3 %v5818_v48 }
 0x34f   :  { %v3268_v54 = vpop.f32.mrf.mxu0  ;;  %v3281_v56 = vpop.f32.mrf.mxu1 }
 0x350   :  { %v3292_v49 = vpop.f32.mrf.mxu2  ;;  %v3305_v40 = vpop.f32.mrf.mxu3  ;;  %v5743_v54 = vld [vmem:[#allocation22 + $0x58] sm:$0xf0]  ;;  %v6493_v56 = vld [vmem:[#allocation22 + $0xd4] sm:$0xf] }
 0x351   :  { %v3293_v53 = vadd.f32 %v3292_v49, %v2930_v46  ;;  %v5741_v46 = vld [vmem:[#allocation22 + $0x50] sm:$0xf]  ;;  %v5746_v0 = vor.u32 %v6477_v51, %v5743_v54  ;;  %v6470_v51 = vld [vmem:[#allocation22 + $0x14] sm:$0xf0]  ;;  %v5786_v54 = vor.u32 %v6487_v44, %v5783_v45  ;;  %v5879_v44 = vld [vmem:[#allocation20 + $0x68] sm:$0xf0] }
 0x352   :  { %v5805_v49 = vld [vmem:[#allocation22 + $0xd0] sm:$0xf] }
 0x353   :  { %v3306_v61 = vadd.f32 %v3305_v40, %v3293_v53  ;;  %v6494_v40 = vld [vmem:[#allocation22 + $0xd4] sm:$0xf0]  ;;  %v5742_v53 = vor.u32 %v6478_v47, %v5741_v46  ;;  %3640 = vmatpush.bf16.msra.mxu2 %v5746_v0  ;;  %v5709_v46 = vld [vmem:[#allocation22 + $0x10] sm:$0xf]  ;;  %v5711_v0 = vld [vmem:[#allocation22 + $0x18] sm:$0xf0] }
 0x355   :  { %v3362_v1 = vmul.f32 %v3306_v61, %v2860_v57  ;;  %v5807_v57 = vld [vmem:[#allocation22 + $0xd8] sm:$0xf0]  ;;  %v5806_v61 = vor.u32 %v6494_v40, %v5805_v49  ;;  %3614 = vmatpush.bf16.msra.mxu0 %v5742_v53  ;;  %v5782_v40 = vor.u32 %v6488_v38, %v5781_v37  ;;  %v5877_v37 = vld [vmem:[#allocation20 + $0x60] sm:$0xf]  ;;  %v6448_v38 = vld [vmem:[#allocation20 + $0x64] sm:$0xf0] }
 0x357   :  { %v7336_v63 = vmul.f32 0.0625, %v3362_v1  ;;  %v5733_v1 = vld [vmem:[#allocation22 + $0x40] sm:$0xf]  ;;  %3627 = vmatpush.bf16.msra.mxu1 %v5806_v61 }
 0x358   :  { %v3294_v4 = vpop.f32.mrf.mxu2  ;;  %v3307_v5 = vpop.f32.mrf.mxu3 }
 0x359   :  { %v3365_v6 = vmax.f32 %v7334_v2, %v7336_v63  ;;  %v6476_v4 = vld [vmem:[#allocation22 + $0x44] sm:$0xf0]  ;;  %v5797_v5 = vld [vmem:[#allocation22 + $0xc0] sm:$0xf] }
 0x35b   :  { %3366 = vmax.xlane.f32.xlu2 %v3365_v6 }
 0x363   :  { %2595 = vmax.xlane.f32.xlu2 %v2594_v60  ;;  %v5810_v60 = vor.u32 %v6493_v56, %v5807_v57  ;;  %v6486_v56 = vld [vmem:[#allocation22 + $0x94] sm:$0xf0]  ;;  %v6469_v57 = vld [vmem:[#allocation22 + $0x14] sm:$0xf] }
 0x365   :  { %3653 = vmatpush.bf16.msra.mxu3 %v5810_v60  ;;  %v5701_v60 = vld [vmem:[#allocation22] sm:$0xf] }
 0x367   :  { %v3318_v11 = vpop.f32.mrf.mxu0  ;;  %v3331_v28 = vpop.f32.mrf.mxu1 }
 0x368   :  { %v3319_v13 = vadd.f32 %v3318_v11, %v2931_v62  ;;  %v6492_v62 = vld [vmem:[#allocation22 + $0xc4] sm:$0xf0]  ;;  %v6475_v11 = vld [vmem:[#allocation22 + $0x44] sm:$0xf] }
 0x369   :  { %v5798_v50 = vor.u32 %v6492_v62, %v5797_v5  ;;  %v5710_v5 = vor.u32 %v6470_v51, %v5709_v46  ;;  %v6468_v62 = vld [vmem:[#allocation22 + $0x4] sm:$0xf0]  ;;  %v6463_v46 = vld [vmem:[#allocation20 + $0xe4] sm:$0xf]  ;;  %v6446_v51 = vld [vmem:[#allocation20 + $0x54] sm:$0xf0] }
 0x36a   :  { %v7346_v31 = vadd.f32 %v3331_v28, %v3319_v13  ;;  %v5735_v28 = vld [vmem:[#allocation22 + $0x48] sm:$0xf0] }
 0x36b   :  { %v5738_v10 = vor.u32 %v6475_v11, %v5735_v28  ;;  %3628 = vmatpush.bf16.msra.mxu1 %v5798_v50  ;;  %v5714_v11 = vor.u32 %v6469_v57, %v5711_v0  ;;  %v5871_v57 = vld [vmem:[#allocation20 + $0x58] sm:$0xf0] }
 0x36d   :  { %3641 = vmatpush.bf16.msra.mxu2 %v5738_v10 }
 0x36e   :  { %v3344_v15 = vpop.f32.mrf.mxu2  ;;  %v3357_v16 = vpop.f32.mrf.mxu3 }
 0x36f   :  { %v3345_v17 = vadd.f32 %v3344_v15, %v2932_v12  ;;  %v3320_v18 = vpop.f32.mrf.mxu0  ;;  %v3333_v20 = vpop.f32.mrf.mxu1  ;;  %v6491_v15 = vld [vmem:[#allocation22 + $0xc4] sm:$0xf]  ;;  %3629 = vmatpush.bf16.msra.mxu1 %v5790_v22  ;;  %v5887_v22 = vld [vmem:[#allocation20 + $0x78] sm:$0xf0] }
 0x370   :  { %v5725_v18 = vld [vmem:[#allocation22 + $0x30] sm:$0xf]  ;;  %v6474_v20 = vld [vmem:[#allocation22 + $0x34] sm:$0xf0] }
 0x371   :  { %v7348_v14 = vadd.f32 %v3357_v16, %v3345_v17  ;;  %v5799_v16 = vld [vmem:[#allocation22 + $0xc8] sm:$0xf0]  ;;  %v5734_v17 = vor.u32 %v6476_v4, %v5733_v1  ;;  %v5726_v35 = vor.u32 %v6474_v20, %v5725_v18  ;;  %v6485_v1 = vld [vmem:[#allocation22 + $0x94] sm:$0xf]  ;;  %v5775_v4 = vld [vmem:[#allocation22 + $0x98] sm:$0xf0]  ;;  %v5702_v20 = vor.u32 %v6468_v62, %v5701_v60 }
 0x372   :  { %v5802_v52 = vor.u32 %v6491_v15, %v5799_v16  ;;  %v5778_v28 = vor.u32 %v6485_v1, %v5775_v4  ;;  %v6467_v15 = vld [vmem:[#allocation22 + $0x4] sm:$0xf]  ;;  %v5703_v16 = vld [vmem:[#allocation22 + $0x8] sm:$0xf0]  ;;  %v6461_v1 = vld [vmem:[#allocation20 + $0xd4] sm:$0xf] }
 0x373   :  { %3615 = vmatpush.bf16.msra.mxu0 %v5734_v17  ;;  %3630 = vmatpush.bf16.msra.mxu1 %v5782_v40  ;;  %v6483_v17 = vld [vmem:[#allocation22 + $0x84] sm:$0xf]  ;;  %v5767_v18 = vld [vmem:[#allocation22 + $0x88] sm:$0xf0]  ;;  %v5706_v10 = vor.u32 %v6467_v15, %v5703_v16  ;;  %v5869_v40 = vld [vmem:[#allocation20 + $0x50] sm:$0xf] }
 0x374   :  { %3654 = vmatpush.bf16.msra.mxu3 %v5802_v52  ;;  %v5770_v55 = vor.u32 %v6483_v17, %v5767_v18  ;;  %v5935_v4 = vld [vmem:[#allocation20 + $0xd8] sm:$0xf0]  ;;  %v6444_v60 = vld [vmem:[#allocation20 + $0x44] sm:$0xf0]  ;;  %v5925_v62 = vld [vmem:[#allocation20 + $0xc0] sm:$0xf] }
 0x375   :  { %v6459_v17 = vld [vmem:[#allocation20 + $0xc4] sm:$0xf]  ;;  %v5927_v18 = vld [vmem:[#allocation20 + $0xc8] sm:$0xf0] }
 0x376   :  { %v3346_v8 = vpop.f32.mrf.mxu2  ;;  %v3359_v21 = vpop.f32.mrf.mxu3 }
 0x377   :  { %3616 = vmatpush.bf16.msra.mxu0 %v5726_v35  ;;  %v6449_v35 = vld [vmem:[#allocation20 + $0x74] sm:$0xf] }
 0x378   :  { %v5890_v30 = vor.u32 %v6449_v35, %v5887_v22  ;;  %v6457_v35 = vld [vmem:[#allocation20 + $0xb4] sm:$0xf]  ;;  %v5919_v22 = vld [vmem:[#allocation20 + $0xb8] sm:$0xf0] }
 0x37b   :  { %3617 = vmatpush.bf16.msra.mxu0 %v5718_v58 }
 0x37f   :  { %3618 = vmatpush.bf16.msra.mxu0 %v5710_v5  ;;  %v5938_v5 = vor.u32 %v6461_v1, %v5935_v4  ;;  %v6436_v1 = vld [vmem:[#allocation20 + $0x4] sm:$0xf0]  ;;  %v5893_v4 = vld [vmem:[#allocation20 + $0x80] sm:$0xf] }
 0x383   :  { %3619 = vmatpush.bf16.msra.mxu0 %v5702_v20  ;;  %v5930_v20 = vor.u32 %v6459_v17, %v5927_v18 }
 0x3ce   :  { %v3367_v6 = vpop.xlane.xlu2 %3366 }
 0x3cf   :  { %v3368_v13 = vsub.f32 %v7334_v2, %v3367_v6  ;;  %v3369_v12 = vsub.f32 %v7336_v63, %v3367_v6  ;;  %v5727_v2 = vld [vmem:[#allocation22 + $0x38] sm:$0xf0]  ;;  %v6489_v63 = vld [vmem:[#allocation22 + $0xb4] sm:$0xf] }
 0x3d0   :  { %v5730_v25 = vor.u32 %v6473_v27, %v5727_v2  ;;  %v5794_v36 = vor.u32 %v6489_v63, %v5791_v29  ;;  %v6450_v27 = vld [vmem:[#allocation20 + $0x74] sm:$0xf0]  ;;  %v5949_v2 = vld [vmem:[#allocation20 + $0xf0] sm:$0xf] }
 0x3d1   :  { %v3370_v8 = vmul.f32 1.442695, %v3368_v13  ;;  %v3372_v21 = vmul.f32 1.442695, %v3369_v12  ;;  %v5765_v13 = vld [vmem:[#allocation22 + $0x80] sm:$0xf]  ;;  %v5886_v63 = vor.u32 %v6450_v27, %v5885_v24 }
 0x3d2   :  { %3642 = vmatpush.bf16.msra.mxu2 %v5730_v25  ;;  %3655 = vmatpush.bf16.msra.mxu3 %v5794_v36  ;;  %v6484_v12 = vld [vmem:[#allocation22 + $0x84] sm:$0xf0]  ;;  %v6466_v29 = vld [vmem:[#allocation20 + $0xf4] sm:$0xf0]  ;;  %v6441_v27 = vld [vmem:[#allocation20 + $0x34] sm:$0xf] }
 0x3d3   :  { %6561 = vpow2.f32 %v3370_v8  ;;  %v5950_v25 = vor.u32 %v6466_v29, %v5949_v2  ;;  %3824 = vmatpush.bf16.msrb.mxu0 %v5886_v63  ;;  %v6458_v24 = vld [vmem:[#allocation20 + $0xb4] sm:$0xf0]  ;;  %v5855_v2 = vld [vmem:[#allocation20 + $0x38] sm:$0xf0] }
 0x3d4   :  { %6563 = vpow2.f32 %v3372_v21  ;;  %v5766_v21 = vor.u32 %v6484_v12, %v5765_v13  ;;  %v6443_v13 = vld [vmem:[#allocation20 + $0x44] sm:$0xf]  ;;  %v5863_v12 = vld [vmem:[#allocation20 + $0x48] sm:$0xf0]  ;;  %v5858_v29 = vor.u32 %v6441_v27, %v5855_v2 }
 0x3d5   :  { %v5866_v16 = vor.u32 %v6443_v13, %v5863_v12  ;;  %v5895_v12 = vld [vmem:[#allocation20 + $0x88] sm:$0xf0] }
 0x3d6   :  { %v2596_v34 = vpop.xlane.xlu2 %2595  ;;  %3656 = vmatpush.bf16.msra.mxu3 %v5786_v54  ;;  %v5870_v54 = vor.u32 %v6446_v51, %v5869_v40  ;;  %v6454_v40 = vld [vmem:[#allocation20 + $0x94] sm:$0xf0]  ;;  %v6437_v51 = vld [vmem:[#allocation20 + $0x14] sm:$0xf] }
 0x3d7   :  { %v2597_v41 = vsub.f32 %v7342_v9, %v2596_v34  ;;  %v2598_v43 = vsub.f32 %v7340_v7, %v2596_v34  ;;  %v5722_v9 = vor.u32 %v6471_v39, %v5719_v33  ;;  %v5773_v7 = vld [vmem:[#allocation22 + $0x90] sm:$0xf]  ;;  %v5951_v34 = vld [vmem:[#allocation20 + $0xf8] sm:$0xf0]  ;;  %v5941_v39 = vld [vmem:[#allocation20 + $0xe0] sm:$0xf] }
 0x3d8   :  { %v5774_v6 = vor.u32 %v6486_v56, %v5773_v7  ;;  %v5954_v36 = vor.u32 %v6465_v32, %v5951_v34  ;;  %v6447_v33 = vld [vmem:[#allocation20 + $0x64] sm:$0xf]  ;;  %v6462_v7 = vld [vmem:[#allocation20 + $0xd4] sm:$0xf0]  ;;  %v6445_v56 = vld [vmem:[#allocation20 + $0x54] sm:$0xf] }
 0x3d9   :  { %v7354_v47 = vpop.eup %6561  ;;  %v2599_v48 = vmul.f32 1.442695, %v2597_v41  ;;  %v2601_v49 = vmul.f32 1.442695, %v2598_v43  ;;  %3643 = vmatpush.bf16.msra.mxu2 %v5722_v9  ;;  %v5878_v41 = vor.u32 %v6448_v38, %v5877_v37  ;;  %v6464_v43 = vld [vmem:[#allocation20 + $0xe4] sm:$0xf0]  ;;  %v5882_v58 = vor.u32 %v6447_v33, %v5879_v44 }
 0x3da   :  { %v7356_v53 = vpop.eup %6563  ;;  %3631 = vmatpush.bf16.msra.mxu1 %v5774_v6  ;;  %3657 = vmatpush.bf16.msra.mxu3 %v5778_v28  ;;  %v5942_v45 = vor.u32 %v6464_v43, %v5941_v39  ;;  %v5933_v9 = vld [vmem:[#allocation20 + $0xd0] sm:$0xf]  ;;  %v5874_v0 = vor.u32 %v6445_v56, %v5871_v57  ;;  %v5861_v6 = vld [vmem:[#allocation20 + $0x40] sm:$0xf]  ;;  %v6460_v28 = vld [vmem:[#allocation20 + $0xc4] sm:$0xf0] }
 0x3db   :  { %6565 = vpow2.f32 %v2599_v48  ;;  %v3374_v61 = vadd.f32 %v7356_v53, %v7354_v47  ;;  %v5943_v48 = vld [vmem:[#allocation20 + $0xe8] sm:$0xf0]  ;;  %3825 = vmatpush.bf16.msrb.mxu0 %v5878_v41  ;;  %v5926_v15 = vor.u32 %v6460_v28, %v5925_v62  ;;  %v6440_v32 = vld [vmem:[#allocation20 + $0x24] sm:$0xf0]  ;;  %v5909_v34 = vld [vmem:[#allocation20 + $0xa0] sm:$0xf] }
 0x3dc   :  { %6567 = vpow2.f32 %v2601_v49  ;;  %v5946_v49 = vor.u32 %v6463_v46, %v5943_v48  ;;  %v6456_v37 = vld [vmem:[#allocation20 + $0xa4] sm:$0xf0]  ;;  %v6439_v38 = vld [vmem:[#allocation20 + $0x24] sm:$0xf]  ;;  %v5847_v39 = vld [vmem:[#allocation20 + $0x28] sm:$0xf0] }
 0x3dd   :  { %3375 = vadd.xlane.f32.xlu0 %v3374_v61  ;;  %3644 = vmatpush.bf16.msra.mxu2 %v5714_v11  ;;  %v5934_v61 = vor.u32 %v6462_v7, %v5933_v9  ;;  %v5862_v11 = vor.u32 %v6444_v60, %v5861_v6  ;;  %v5910_v41 = vor.u32 %v6456_v37, %v5909_v34  ;;  %v6455_v33 = vld [vmem:[#allocation20 + $0xa4] sm:$0xf]  ;;  %v5911_v44 = vld [vmem:[#allocation20 + $0xa8] sm:$0xf0]  ;;  %v6438_v46 = vld [vmem:[#allocation20 + $0x14] sm:$0xf0] }
 0x3de   :  { %3632 = vmatpush.bf16.msra.mxu1 %v5766_v21  ;;  %3658 = vmatpush.bf16.msra.mxu3 %v5770_v55  ;;  %v5853_v21 = vld [vmem:[#allocation20 + $0x30] sm:$0xf]  ;;  %v5850_v43 = vor.u32 %v6439_v38, %v5847_v39  ;;  %v5839_v9 = vld [vmem:[#allocation20 + $0x18] sm:$0xf0]  ;;  %v6453_v56 = vld [vmem:[#allocation20 + $0x94] sm:$0xf] }
 0x3df   :  { %3826 = vmatpush.bf16.msrb.mxu0 %v5870_v54  ;;  %v5917_v55 = vld [vmem:[#allocation20 + $0xb0] sm:$0xf]  ;;  %v5842_v7 = vor.u32 %v6437_v51, %v5839_v9  ;;  %v5903_v57 = vld [vmem:[#allocation20 + $0x98] sm:$0xf0]  ;;  %v6435_v60 = vld [vmem:[#allocation20 + $0x4] sm:$0xf] }
 0x3e0   :  { %v5918_v63 = vor.u32 %v6458_v24, %v5917_v55  ;;  %v5901_v48 = vld [vmem:[#allocation20 + $0x90] sm:$0xf]  ;;  %v5831_v62 = vld [vmem:[#allocation20 + $0x8] sm:$0xf0]  ;;  %v6510_v34 = vld [vmem:[#allocation23 + $0x58] sm:$0xff] }
 0x3e1   :  { %v7360_v8 = vpop.eup %6565  ;;  %3645 = vmatpush.bf16.msra.mxu2 %v5706_v10  ;;  %v6442_v10 = vld [vmem:[#allocation20 + $0x34] sm:$0xf0]  ;;  %v5902_v54 = vor.u32 %v6454_v40, %v5901_v48  ;;  %v5834_v13 = vor.u32 %v6435_v60, %v5831_v62  ;;  %v6509_v37 = vld [vmem:[#allocation23 + $0x50] sm:$0xff]  ;;  %v6499_v38 = vld [vmem:[#allocation23] sm:$0xff] }
 0x3e2   :  { %v7362_v50 = vpop.eup %6567  ;;  %3837 = vmatpush.bf16.msrb.mxu1 %v5950_v25  ;;  %3863 = vmatpush.bf16.msrb.mxu3 %v5954_v36  ;;  %v5922_v25 = vor.u32 %v6457_v35, %v5919_v22  ;;  %v6508_v39 = vld [vmem:[#allocation23 + $0x48] sm:$0xff]  ;;  %v6519_v51 = vld [vmem:[#allocation25 + $0x20] sm:$0xff]  ;;  %v3876_v9 = vld [vmem:[%s7406_s16] sm:$0x3] }
 0x3e3   :  { %v2603_v52 = vadd.f32 %v7362_v50, %v7360_v8  ;;  %3827 = vmatpush.bf16.msrb.mxu0 %v5862_v11  ;;  %v6451_v11 = vld [vmem:[#allocation20 + $0x84] sm:$0xf]  ;;  %v6520_v40 = vld [vmem:[#allocation25 + $0x28] sm:$0xff] }
 0x3e5   :  { %2604 = vadd.xlane.f32.xlu1 %v2603_v52  ;;  %3850 = vmatpush.bf16.msrb.mxu2 %v5890_v30  ;;  %v5854_v52 = vor.u32 %v6442_v10, %v5853_v21  ;;  %v5845_v30 = vld [vmem:[#allocation20 + $0x20] sm:$0xf] }
 0x3e6   :  { %3838 = vmatpush.bf16.msrb.mxu1 %v5942_v45  ;;  %3864 = vmatpush.bf16.msrb.mxu3 %v5946_v49  ;;  %v5846_v36 = vor.u32 %v6440_v32, %v5845_v30  ;;  %v5914_v45 = vor.u32 %v6455_v33, %v5911_v44  ;;  %v6514_v30 = vld [vmem:[#allocation23 + $0x78] sm:$0xff]  ;;  %v6501_v32 = vld [vmem:[#allocation23 + $0x10] sm:$0xff] }
 0x3e7   :  { %3828 = vmatpush.bf16.msrb.mxu0 %v5854_v52  ;;  %v6522_v44 = vld [vmem:[#allocation25 + $0x38] sm:$0xff] }
 0x3e9   :  { %3851 = vmatpush.bf16.msrb.mxu2 %v5882_v58  ;;  %v5837_v58 = vld [vmem:[#allocation20 + $0x10] sm:$0xf] }
 0x3ea   :  { %3839 = vmatpush.bf16.msrb.mxu1 %v5934_v61  ;;  %3865 = vmatpush.bf16.msrb.mxu3 %v5938_v5  ;;  %v5838_v49 = vor.u32 %v6438_v46, %v5837_v58  ;;  %v5829_v61 = vld [vmem:[#allocation20] sm:$0xf]  ;;  %v6452_v5 = vld [vmem:[#allocation20 + $0x84] sm:$0xf0] }
 0x3eb   :  { %3829 = vmatpush.bf16.msrb.mxu0 %v5846_v36  ;;  %v5830_v6 = vor.u32 %v6436_v1, %v5829_v61  ;;  %v5894_v28 = vor.u32 %v6452_v5, %v5893_v4  ;;  %v6500_v36 = vld [vmem:[#allocation23 + $0x8] sm:$0xff]  ;;  %v3878_v1 = vperm.slane %v3876_v9, 0  ;;  %v6518_v4 = vld [vmem:[#allocation25 + $0x18] sm:$0xff] }
 0x3ed   :  { %3852 = vmatpush.bf16.msrb.mxu2 %v5874_v0  ;;  %v5906_v0 = vor.u32 %v6453_v56, %v5903_v57 }
 0x3ee   :  { %3840 = vmatpush.bf16.msrb.mxu1 %v5926_v15  ;;  %3866 = vmatpush.bf16.msrb.mxu3 %v5930_v20  ;;  %v5898_v15 = vor.u32 %v6451_v11, %v5895_v12  ;;  %v3879_v12 = vperm.slane %v3876_v9, 1 }
 0x3ef   :  { %3830 = vmatpush.bf16.msrb.mxu0 %v5838_v49 }
 0x3f1   :  { %3853 = vmatpush.bf16.msrb.mxu2 %v5866_v16 }
 0x3f2   :  { %3841 = vmatpush.bf16.msrb.mxu1 %v5918_v63  ;;  %3867 = vmatpush.bf16.msrb.mxu3 %v5922_v25  ;;  %v6506_v63 = vld [vmem:[#allocation23 + $0x38] sm:$0xff]  ;;  %v6505_v25 = vld [vmem:[#allocation23 + $0x30] sm:$0xff] }
 0x3f3   :  { %3831 = vmatpush.bf16.msrb.mxu0 %v5830_v6 }
 0x3f5   :  { %3854 = vmatpush.bf16.msrb.mxu2 %v5858_v29 }
 0x3f6   :  { %3842 = vmatpush.bf16.msrb.mxu1 %v5910_v41  ;;  %3868 = vmatpush.bf16.msrb.mxu3 %v5914_v45  ;;  %v6507_v41 = vld [vmem:[#allocation23 + $0x40] sm:$0xff]  ;;  %v6521_v45 = vld [vmem:[#allocation25 + $0x30] sm:$0xff] }
 0x3f9   :  { %3855 = vmatpush.bf16.msrb.mxu2 %v5850_v43 }
 0x3fa   :  { %3843 = vmatpush.bf16.msrb.mxu1 %v5902_v54  ;;  %3869 = vmatpush.bf16.msrb.mxu3 %v5906_v0 }
 0x3fd   :  { %3856 = vmatpush.bf16.msrb.mxu2 %v5842_v7 }
 0x3fe   :  { %3844 = vmatpush.bf16.msrb.mxu1 %v5894_v28  ;;  %3870 = vmatpush.bf16.msrb.mxu3 %v5898_v15 }
 0x401   :  { %3857 = vmatpush.bf16.msrb.mxu2 %v5834_v13 }
 0x450   :  { %v3376_v16 = vpop.xlane.xlu0 %3375 }
 0x451   :  { %6569 = vrcp.f32 %v3376_v16 }
 0x457   :  { %v6570_v17 = vpop.eup %6569 }
 0x458   :  { %v3378_v18 = vmul.f32 %v6570_v17, %v7354_v47  ;;  %v3379_v20 = vmul.f32 %v6570_v17, %v7356_v53  ;;  %v2605_v21 = vpop.xlane.xlu1 %2604 }
 0x459   :  { %6571 = vrcp.f32 %v2605_v21 }
 0x45a   :  { %v3380_v10 = vmul.f32 %v3378_v18, %v7346_v31  ;;  %v3381_v55 = vmul.f32 %v3379_v20, %v7348_v14 }
 0x45c   :  { %v3382_v52 = vadd.f32 %v3380_v10, %v7279_v42  ;;  %v3383_v24 = vadd.f32 %v3381_v55, %v7281_v59 }
 0x45e   :  { %v3418_v27 = vpack.c.bf16 %v3382_v52, %v3382_v52  ;;  %v3419_v2 = vpack.c.bf16 %v3383_v24, %v3383_v24 }
 0x45f   :  { %v6572_v29 = vpop.eup %6571 }
 0x460   :  { %3620 = vmatmul.bf16.vlgmr.msra.gmra.mxu0 %v3418_v27  ;;  %3633 = vmatmul.bf16.vlgmr.msra.gmra.mxu1 %v3419_v2  ;;  %v2607_v47 = vmul.f32 %v6572_v29, %v7360_v8  ;;  %v2608_v53 = vmul.f32 %v6572_v29, %v7362_v50  ;;  %v6504_v8 = vld [vmem:[#allocation23 + $0x28] sm:$0xff]  ;;  %v6513_v50 = vld [vmem:[#allocation23 + $0x70] sm:$0xff]  ;;  %v6515_v29 = vld [vmem:[#allocation25] sm:$0xff] }
 0x461   :  { %3646 = vmatmul.bf16.vlgmr.msra.gmra.mxu2 %v3418_v27  ;;  %3659 = vmatmul.bf16.vlgmr.msra.gmra.mxu3 %v3419_v2  ;;  %v6517_v2 = vld [vmem:[#allocation25 + $0x10] sm:$0xff] }
 0x462   :  { %4024 = vmatpush.bf16.msra.mxu0 %v6506_v63  ;;  %v2609_v31 = vmul.f32 %v2607_v47, %v7324_v19  ;;  %v2610_v14 = vmul.f32 %v2608_v53, %v7326_v3  ;;  %4037 = vmatpush.bf16.msra.mxu1 %v6514_v30  ;;  %v6503_v19 = vld [vmem:[#allocation23 + $0x20] sm:$0xff]  ;;  %v6512_v3 = vld [vmem:[#allocation23 + $0x68] sm:$0xff]  ;;  %v6547_v53 = vld [vmem:[%s7408_s18] ss:$0 sm:$0xff] }
 0x463   :  { %4122 = vmatpush.bf16.msra.mxu2 %v6522_v44  ;;  %v6516_v63 = vld [vmem:[#allocation25 + $0x8] sm:$0xff] }
 0x464   :  { %v2611_v42 = vadd.f32 %v2609_v31, %v7251_v23  ;;  %v2612_v59 = vadd.f32 %v2610_v14, %v7253_v26  ;;  %v6502_v23 = vld [vmem:[#allocation23 + $0x18] sm:$0xff]  ;;  %v6511_v26 = vld [vmem:[#allocation23 + $0x60] sm:$0xff] }
 0x466   :  { %v3384_v35 = vpack.c.bf16 %v2611_v42, %v2611_v42  ;;  %v3385_v22 = vpack.c.bf16 %v2612_v59, %v2612_v59  ;;  %4025 = vmatpush.bf16.msra.mxu0 %v6505_v25  ;;  %4038 = vmatpush.bf16.msra.mxu1 %v6513_v50 }
 0x467   :  { %4123 = vmatpush.bf16.msra.mxu2 %v6521_v45 }
 0x46a   :  { %4026 = vmatpush.bf16.msra.mxu0 %v6504_v8  ;;  %4039 = vmatpush.bf16.msra.mxu1 %v6512_v3  ;;  %v6548_v8 = vld [vmem:[%s7428_s0] ss:$0 sm:$0xff] }
 0x46b   :  { %4124 = vmatpush.bf16.msra.mxu2 %v6520_v40 }
 0x46e   :  { %4027 = vmatpush.bf16.msra.mxu0 %v6503_v19  ;;  %4040 = vmatpush.bf16.msra.mxu1 %v6511_v26 }
 0x46f   :  { %4125 = vmatpush.bf16.msra.mxu2 %v6519_v51 }
 0x470   :  { %3832 = vmatmul.bf16.vlgmr.msrb.gmra.mxu0 %v3384_v35  ;;  %3845 = vmatmul.bf16.vlgmr.msrb.gmra.mxu1 %v3385_v22 }
 0x471   :  { %3858 = vmatmul.bf16.vlgmr.msrb.gmra.mxu2 %v3384_v35  ;;  %3871 = vmatmul.bf16.vlgmr.msrb.gmra.mxu3 %v3385_v22 }
 0x472   :  { %4028 = vmatpush.bf16.msra.mxu0 %v6502_v23  ;;  %4041 = vmatpush.bf16.msra.mxu1 %v6510_v34 }
 0x473   :  { %4126 = vmatpush.bf16.msra.mxu2 %v6518_v4 }
 0x476   :  { %4029 = vmatpush.bf16.msra.mxu0 %v6501_v32  ;;  %4042 = vmatpush.bf16.msra.mxu1 %v6509_v37 }
 0x477   :  { %4127 = vmatpush.bf16.msra.mxu2 %v6517_v2 }
 0x47a   :  { %4030 = vmatpush.bf16.msra.mxu0 %v6500_v36  ;;  %4043 = vmatpush.bf16.msra.mxu1 %v6508_v39 }
 0x47b   :  { %4128 = vmatpush.bf16.msra.mxu2 %v6516_v63 }
 0x47e   :  { %4031 = vmatpush.bf16.msra.mxu0 %v6499_v38  ;;  %4044 = vmatpush.bf16.msra.mxu1 %v6507_v41 }
 0x47f   :  { %4129 = vmatpush.bf16.msra.mxu2 %v6515_v29 }
 0x4dd   :  { %v3621_v43 = vpop.f32.mrf.mxu0  ;;  %v3634_v33 = vpop.f32.mrf.mxu1 }
 0x4de   :  { %v3635_v54 = vadd.f32 %v3634_v33, %v3621_v43 }
 0x4e4   :  { %v3647_v58 = vpop.f32.mrf.mxu2  ;;  %v3660_v46 = vpop.f32.mrf.mxu3 }
 0x4e5   :  { %v3623_v48 = vpop.f32.mrf.mxu0  ;;  %v3636_v49 = vpop.f32.mrf.mxu1  ;;  %v3661_v60 = vadd.f32 %v3660_v46, %v3647_v58 }
 0x4ec   :  { %v3649_v7 = vpop.f32.mrf.mxu2  ;;  %v3662_v56 = vpop.f32.mrf.mxu3 }
 0x4ed   :  { %v3833_v57 = vpop.f32.mrf.mxu0  ;;  %v3846_v61 = vpop.f32.mrf.mxu1 }
 0x4ee   :  { %v3834_v0 = vadd.f32 %v3833_v57, %v3635_v54 }
 0x4f0   :  { %v3847_v5 = vadd.f32 %v3846_v61, %v3834_v0 }
 0x4f2   :  { %v3882_v6 = vadd.f32 %v3878_v1, %v3847_v5 }
 0x4f4   :  { %vm3884_vm0 = vcmp.ge.f32.partialorder %v3882_v6, 0.0  ;;  %v3886_v62 = vmul.f32 0.01, %v3882_v6  ;;  %v3859_v11 = vpop.f32.mrf.mxu2  ;;  %v3872_v28 = vpop.f32.mrf.mxu3 }
 0x4f5   :  { %v3860_v13 = vadd.f32 %v3859_v11, %v3661_v60  ;;  %v3835_v15 = vpop.f32.mrf.mxu0  ;;  %v3848_v16 = vpop.f32.mrf.mxu1 }
 0x4f6   :  { %v3888_v17 = vsel %vm3884_vm0, %v3882_v6, %v3886_v62 }
 0x4f7   :  { %v3890_v18 = vpack.c.bf16 %v3888_v17, %v3888_v17  ;;  %v3873_v20 = vadd.f32 %v3872_v28, %v3860_v13 }
 0x4f9   :  { %v3883_v21 = vadd.f32 %v3879_v12, %v3873_v20  ;;  %4032 = vmatmul.bf16.vlgmr.msra.gmra.mxu0 %v3890_v18 }
 0x4fb   :  { %vm3885_vm1 = vcmp.ge.f32.partialorder %v3883_v21, 0.0  ;;  %v3887_v10 = vmul.f32 0.01, %v3883_v21 }
 0x4fc   :  { %v3861_v55 = vpop.f32.mrf.mxu2  ;;  %v3874_v52 = vpop.f32.mrf.mxu3 }
 0x4fd   :  { %v3889_v24 = vsel %vm3885_vm1, %v3883_v21, %v3887_v10 }
 0x4fe   :  { %v3891_v27 = vpack.c.bf16 %v3889_v24, %v3889_v24 }
 0x500   :  { %4045 = vmatmul.bf16.vlgmr.msra.gmra.mxu1 %v3891_v27 }
 0x576   :  { %v4033_v47 = vpop.f32.mrf.mxu0 }
 0x577   :  { %v4034_v31 = vadd.f32 %v6547_v53, %v4033_v47 }
 0x57d   :  { %v4046_v14 = vpop.f32.mrf.mxu1 }
 0x57e   :  { %v4047_v42 = vadd.f32 %v4046_v14, %v4034_v31  ;;  %v4035_v59 = vpop.f32.mrf.mxu0 }
 0x580   :  { %vm4050_vm2 = vcmp.ge.f32.partialorder %v4047_v42, 0.0  ;;  %v4051_v35 = vmul.f32 0.01, %v4047_v42 }
 0x582   :  { %v4052_v22 = vsel %vm4050_vm2, %v4047_v42, %v4051_v35 }
 0x583   :  { %v4053_v25 = vpack.c.bf16 %v4052_v22, %v4052_v22 }
 0x585   :  { %v4048_v30 = vpop.f32.mrf.mxu1  ;;  %4130 = vmatmul.bf16.vlgmr.msra.gmra.mxu2 %v4053_v25 }
 0x608   :  { %v4131_v50 = vpop.f32.mrf.mxu2 }
 0x609   :  { %v4132_v19 = vadd.f32 %v6548_v8, %v4131_v50 }
 0x60b   :  { %vm4135_vm3 = vcmp.ge.f32.partialorder %v4132_v19, 0.0  ;;  %v4136_v3 = vmul.f32 0.01, %v4132_v19 }
 0x60d   :  { %v4137_v23 = vsel %vm4135_vm3, %v4132_v19, %v4136_v3 }
 0x60e   :  { %4138 = vst [vmem:[#allocation26] sm:$0xff] %v4137_v23 }
 0x60f   :  { %4149 = dma.vmem_to_hbm [thread:$0]  %s4145_s2, 128, %s4147_s8, [#allocation4]  }
 0x610   :  { %v4133_v26 = vpop.f32.mrf.mxu2 }
 0x611   :  { %6978 = dma.done.wait [#allocation4], 128  }
 0x612   :  { %6979 = vsyncadd [#allocation4], 4294967168 }
 0x613   :  { %4154 = vsyncpa [#allocation3], 1 }
 0x614   :  { %4155 = vsyncpa [#allocation6], 1 }
 0x615   :  { %4156 = vsyncpa [#allocation9], 1 }
 0x616   :  { %4157 = vsyncpa [#allocation12], 1 }
 0x617   :  { %4158 = vsyncpa [#allocation15], 1 }
 0x618   :  { %4159 = vsyncpa [#allocation18], 1 }
 0x619   :  { %4160 = vsyncpa [#allocation21], 1 }
 0x61a   :  { %4161 = vsyncpa [#allocation24], 1 }
 0x61b   :  { %4162 = vsyncpa [#allocation4], 1 }

</bundles_post_ra>
